<compile_context>
chip_gen: v7x
topology: tpu7x:2x2x1
jax: 0.10.0
libtpu: 0.0.40
codegen_flags: <defaults>
</compile_context>

<pallas_src>
import jax
import jax.numpy as jnp
from jax import lax
from jax.experimental import pallas as pl
from jax.experimental.pallas import tpu as pltpu


def _ode_rk4_kernel(dt_ref, hdt_ref, sdt_ref,
                    h0_ref, w1_ref, b1_ref, w2_ref, b2_ref, out_ref):
    """Integrates dh/dt = f(h) with fixed-grid RK4 for one batch tile.

    dt_ref / hdt_ref / sdt_ref : SMEM [T-1]   dt, 0.5*dt, dt/6 per interval
    h0_ref : VMEM [TB, H]      initial latent state tile
    w1_ref : VMEM [H, D]       first linear layer
    b1_ref : VMEM [1, D]
    w2_ref : VMEM [D, H]       second linear layer
    b2_ref : VMEM [1, H]
    out_ref: VMEM [TB, T*H]    trajectory, time-major along the lane axis
    """
    tb, h_dims = h0_ref.shape
    num_t = dt_ref.shape[0] + 1

    # Hoisted once (JAX does not CSE loads).  Biases stay as a single [1, D]
    # row; the '+' below broadcasts along sublanes for free on the VPU.
    w1 = w1_ref[...]
    w2 = w2_ref[...]
    b1 = b1_ref[...]
    b2 = b2_ref[...]

    def f(h):
        z = jnp.tanh(jnp.dot(h, w1, preferred_element_type=jnp.float32) + b1)
        return jnp.dot(z, w2, preferred_element_type=jnp.float32) + b2

    # Split the tile into two independent RK4 chains (interleaved stage
    # evaluations) when the split point lands on an 8-sublane boundary.
    n_chains = 2 if (tb % 16 == 0) else 1
    rows = tb // n_chains
    row_lo = [c * rows for c in range(n_chains)]

    h_c = [h0_ref[lo:lo + rows, :].astype(jnp.float32) for lo in row_lo]

    # Coalesce trajectory stores into aligned >=128-lane groups when possible
    # (h_dims=32 -> 4 time steps per store instead of 4 masked 32-lane stores).
    group = (128 // h_dims) if (h_dims <= 128 and 128 % h_dims == 0) else 1

    def flush(pend, start_t):
        n_steps = len(pend[0])
        lo = start_t * h_dims
        hi = lo + n_steps * h_dims
        for c in range(n_chains):
            blk = pend[c][0] if n_steps == 1 else jnp.concatenate(pend[c], axis=1)
            out_ref[row_lo[c]:row_lo[c] + rows, lo:hi] = blk.astype(out_ref.dtype)

    pend = [[h] for h in h_c]
    store_t0 = 0

    # Fully unrolled time loop: num_t is small & static, so every slice offset
    # is static and the LLO scheduler sees both dependent matmul chains.
    # TODO(synk): for very large num_t switch to lax.fori_loop(unroll=4).
    for i in range(1, num_t):
        dt = dt_ref[i - 1]
        hdt = hdt_ref[i - 1]
        sdt = sdt_ref[i - 1]

        # RK4 with incremental accumulation: per chain, at most one stage
        # value + one accumulator are live (k1..k4 are never held together).
        k = [f(h) for h in h_c]                                     # k1
        acc = list(k)
        k = [f(h_c[c] + hdt * k[c]) for c in range(n_chains)]       # k2
        acc = [acc[c] + 2.0 * k[c] for c in range(n_chains)]
        k = [f(h_c[c] + hdt * k[c]) for c in range(n_chains)]       # k3
        acc = [acc[c] + 2.0 * k[c] for c in range(n_chains)]
        k = [f(h_c[c] + dt * k[c]) for c in range(n_chains)]        # k4
        h_c = [h_c[c] + sdt * (acc[c] + k[c]) for c in range(n_chains)]

        for c in range(n_chains):
            pend[c].append(h_c[c])
        if len(pend[0]) >= group:
            flush(pend, store_t0)
            store_t0 = i + 1
            pend = [[] for _ in range(n_chains)]

    if pend[0]:
        flush(pend, store_t0)


def _round_up(x, m):
    return ((x + m - 1) // m) * m


@jax.jit
def _solve_flat(h0_flat, t, w1, b1, w2, b2):
    """h0_flat: [N, H] -> trajectory [N, T, H] via a batch-tiled Pallas call."""
    n, h_dims = h0_flat.shape
    hidden = w1.shape[1]
    num_t = t.shape[0]

    if num_t == 1:
        # Degenerate trajectory: only the initial state (avoids shape-(0,)
        # SMEM inputs in the kernel).
        return h0_flat.astype(jnp.float32)[:, None, :]

    t32 = t.astype(jnp.float32)
    dt = t32[1:] - t32[:-1]          # [T-1]
    half_dt = 0.5 * dt
    sixth_dt = dt / 6.0

    # Batch tile: multiple of 16 sublanes (so the kernel can split every tile
    # into two interleaved RK4 chains), capped at 256 rows.  When the batch is
    # large enough, shrink the tile so the "parallel" grid has >= 2 tiles and
    # both v7x TensorCores get work (harmless on single-TC v5e/v6e).
    tb = min(256, _round_up(n, 16))
    if n >= 32 and _round_up(n, tb) // tb < 2:
        tb = max(16, _round_up((n + 1) // 2, 16))
    n_pad = _round_up(n, tb)
    num_tiles = n_pad // tb

    h0_p = h0_flat.astype(jnp.float32)
    if n_pad != n:
        h0_p = jnp.pad(h0_p, ((0, n_pad - n), (0, 0)))

    smem = pl.BlockSpec(memory_space=pltpu.MemorySpace.SMEM)

    cost = pl.CostEstimate(
        flops=int(16 * (num_t - 1) * n_pad * h_dims * hidden),
        transcendentals=int(4 * (num_t - 1) * n_pad * hidden),
        bytes_accessed=int(4 * (n_pad * h_dims + n_pad * num_t * h_dims
                                + 2 * h_dims * hidden + hidden + h_dims
                                + 3 * (num_t - 1))),
    )

    out = pl.pallas_call(
        _ode_rk4_kernel,
        out_shape=jax.ShapeDtypeStruct((n_pad, num_t * h_dims), jnp.float32),
        grid=(num_tiles,),
        in_specs=[
            smem, smem, smem,                                    # dt, dt/2, dt/6
            pl.BlockSpec((tb, h_dims), lambda b: (b, 0)),        # h0 tile
            pl.BlockSpec(w1.shape, lambda b: (0, 0)),            # weights stay
            pl.BlockSpec(b1.shape, lambda b: (0, 0)),            # resident
            pl.BlockSpec(w2.shape, lambda b: (0, 0)),            # across the
            pl.BlockSpec(b2.shape, lambda b: (0, 0)),            # batch grid
        ],
        out_specs=pl.BlockSpec((tb, num_t * h_dims), lambda b: (b, 0)),
        compiler_params=pltpu.CompilerParams(
            dimension_semantics=("parallel",),
            vmem_limit_bytes=32 * 1024 * 1024,
        ),
        cost_estimate=cost,
    )(dt, half_dt, sixth_dt, h0_p, w1, b1, w2, b2)

    # [N, T*H] -> [N, T, H] is a contiguous reshape (no transpose, no extra
    # HBM round trip): each row already holds its trajectory time-major.
    return out[:n].reshape(n, num_t, h_dims)


class DiffeqSolverPallas:
    """JAX/Pallas port of DiffeqSolver (ODE_RNN branch, fixed-grid RK4)."""

    def __init__(self, h_dims, hidden_dims, method="rk4",
                 odeint_rtol=1e-4, odeint_atol=1e-5, seed=0):
        self.ode_method = method
        self.odeint_rtol = odeint_rtol  # unused by fixed-grid RK4
        self.odeint_atol = odeint_atol  # unused by fixed-grid RK4
        self.using = "ODE_RNN"

        key = jax.random.PRNGKey(seed)
        k1, k2, k3, k4 = jax.random.split(key, 4)
        scale1 = 1.0 / jnp.sqrt(jnp.float32(h_dims))
        scale2 = 1.0 / jnp.sqrt(jnp.float32(hidden_dims))
        # diff_func params (deterministic synthetic init)
        self.w1 = (jax.random.normal(k1, (h_dims, hidden_dims), jnp.float32)
                   * scale1)
        self.b1 = (jax.random.normal(k2, (1, hidden_dims), jnp.float32) * 0.01)
        self.w2 = (jax.random.normal(k3, (hidden_dims, h_dims), jnp.float32)
                   * scale2)
        self.b2 = (jax.random.normal(k4, (1, h_dims), jnp.float32) * 0.01)

    def __call__(self, h0, t, X=None):
        if h0.ndim == 2:
            # odeint -> [T, B, H]; permute(1, 0, 2) -> [B, T, H]
            hs_pred = _solve_flat(h0, t, self.w1, self.b1, self.w2, self.b2)
            assert hs_pred.shape[-3] == h0.shape[0]
            assert hs_pred.shape[-1] == h0.shape[1]
            return hs_pred
        elif h0.ndim == 3:
            # odeint -> [T, S, B, H]; permute(1, 2, 0, 3) -> [S, B, T, H]
            s, b, h = h0.shape
            traj = _solve_flat(h0.reshape(s * b, h), t,
                               self.w1, self.b1, self.w2, self.b2)
            hs_pred = traj.reshape(s, b, t.shape[0], h)
            assert hs_pred.shape[0] == s
            assert hs_pred.shape[-3] == b
            assert hs_pred.shape[-1] == h
            return hs_pred
        else:
            raise NotImplementedError


def _reference_rk4(h0, t, w1, b1, w2, b2):
    """Pure-JAX reference for correctness checking ([B, T, H])."""
    def f(h):
        return jnp.tanh(h @ w1 + b1) @ w2 + b2

    def step(h, i):
        dt = t[i] - t[i - 1]
        k1 = f(h)
        k2 = f(h + 0.5 * dt * k1)
        k3 = f(h + 0.5 * dt * k2)
        k4 = f(h + dt * k3)
        h_new = h + (dt / 6.0) * (k1 + 2 * k2 + 2 * k3 + k4)
        return h_new, h_new

    _, traj = lax.scan(step, h0, jnp.arange(1, t.shape[0]))
    traj = jnp.concatenate([h0[None], traj], axis=0)   # [T, B, H]
    return jnp.transpose(traj, (1, 0, 2))              # [B, T, H]


if __name__ == "__main__":
    batch = 8
    h_dims = 32
    hidden_dims = 64
    num_t = 8

    key = jax.random.PRNGKey(0)
    k_h0, k_h3, k_big = jax.random.split(key, 3)
    h0 = jax.random.normal(k_h0, (batch, h_dims), jnp.float32)
    t = jnp.linspace(0.0, 1.0, num_t, dtype=jnp.float32)

    solver = DiffeqSolverPallas(h_dims, hidden_dims, method="rk4", seed=0)

    # 2-D case: [B, H] -> [B, T, H]
    hs_pred = jax.block_until_ready(solver(h0, t))
    assert hs_pred.shape == (batch, num_t, h_dims), hs_pred.shape
    ref = jax.block_until_ready(
        _reference_rk4(h0, t, solver.w1, solver.b1, solver.w2, solver.b2))
    err2 = float(jnp.max(jnp.abs(hs_pred - ref)))
    assert err2 < 1e-4, f"2d mismatch vs reference: {err2}"

    # 3-D case: [S, B, H] -> [S, B, T, H]
    s, b3 = 2, 4
    h0_3d = jax.random.normal(k_h3, (s, b3, h_dims), jnp.float32)
    hs3 = jax.block_until_ready(solver(h0_3d, t))
    assert hs3.shape == (s, b3, num_t, h_dims), hs3.shape
    ref3 = _reference_rk4(h0_3d.reshape(s * b3, h_dims), t,
                          solver.w1, solver.b1, solver.w2, solver.b2)
    ref3 = jax.block_until_ready(ref3.reshape(s, b3, num_t, h_dims))
    err3 = float(jnp.max(jnp.abs(hs3 - ref3)))
    assert err3 < 1e-4, f"3d mismatch vs reference: {err3}"

    # Larger batch / non-group-multiple T: exercises the >=2-tile grid path,
    # padded rows, and the trailing (partially coalesced) trajectory store.
    nb, nt = 40, 6
    hb = jax.random.normal(k_big, (nb, h_dims), jnp.float32)
    t_b = jnp.linspace(0.0, 0.5, nt, dtype=jnp.float32)
    hsb = jax.block_until_ready(solver(hb, t_b))
    assert hsb.shape == (nb, nt, h_dims), hsb.shape
    refb = jax.block_until_ready(
        _reference_rk4(hb, t_b, solver.w1, solver.b1, solver.w2, solver.b2))
    errb = float(jnp.max(jnp.abs(hsb - refb)))
    assert errb < 1e-4, f"big-batch mismatch vs reference: {errb}"

    print("KERNEL_OK")
</pallas_src>

<mosaic_0001>
module attributes {stable_mosaic.version = 11 : i64} {
  func.func @_ode_rk4_kernel(%arg0: i32, %arg1: memref<7xf32, #tpu.memory_space<smem>>, %arg2: memref<7xf32, #tpu.memory_space<smem>>, %arg3: memref<7xf32, #tpu.memory_space<smem>>, %arg4: memref<16x32xf32, #tpu.memory_space<vmem>>, %arg5: memref<32x64xf32, #tpu.memory_space<vmem>>, %arg6: memref<1x64xf32, #tpu.memory_space<vmem>>, %arg7: memref<64x32xf32, #tpu.memory_space<vmem>>, %arg8: memref<1x32xf32, #tpu.memory_space<vmem>>, %arg9: memref<16x256xf32, #tpu.memory_space<vmem>>) attributes {dimension_semantics = [#tpu.dimension_semantics<parallel>], iteration_bounds = array<i64: 1>, scalar_prefetch = 0 : i64, scratch_operands = 0 : i64, tpu.core_type = #tpu.core_type<tc>, window_params = [{transform_indices = @transform_0, window_bounds = array<i64: 7>}, {transform_indices = @transform_1, window_bounds = array<i64: 7>}, {transform_indices = @transform_2, window_bounds = array<i64: 7>}, {transform_indices = @transform_3, window_bounds = array<i64: 16, 32>}, {pipeline_mode = #tpu.pipeline_mode<synchronous>, transform_indices = @transform_4, window_bounds = array<i64: 32, 64>}, {pipeline_mode = #tpu.pipeline_mode<synchronous>, transform_indices = @transform_5, window_bounds = array<i64: 1, 64>}, {pipeline_mode = #tpu.pipeline_mode<synchronous>, transform_indices = @transform_6, window_bounds = array<i64: 64, 32>}, {pipeline_mode = #tpu.pipeline_mode<synchronous>, transform_indices = @transform_7, window_bounds = array<i64: 1, 32>}, {transform_indices = @transform_8, window_bounds = array<i64: 16, 256>}]} {
    %c0 = arith.constant 0 : index
    %c0_0 = arith.constant 0 : index
    %0 = vector.load %arg5[%c0, %c0_0] : memref<32x64xf32, #tpu.memory_space<vmem>>, vector<32x64xf32>
    %c0_1 = arith.constant 0 : index
    %c0_2 = arith.constant 0 : index
    %1 = vector.load %arg7[%c0_1, %c0_2] : memref<64x32xf32, #tpu.memory_space<vmem>>, vector<64x32xf32>
    %c0_3 = arith.constant 0 : index
    %c0_4 = arith.constant 0 : index
    %2 = vector.load %arg6[%c0_3, %c0_4] : memref<1x64xf32, #tpu.memory_space<vmem>>, vector<1x64xf32>
    %c0_5 = arith.constant 0 : index
    %c0_6 = arith.constant 0 : index
    %3 = vector.load %arg8[%c0_5, %c0_6] : memref<1x32xf32, #tpu.memory_space<vmem>>, vector<1x32xf32>
    %c0_7 = arith.constant 0 : index
    %c0_8 = arith.constant 0 : index
    %4 = vector.load %arg4[%c0_7, %c0_8] : memref<16x32xf32, #tpu.memory_space<vmem>>, vector<8x32xf32>
    %c8 = arith.constant 8 : index
    %c0_9 = arith.constant 0 : index
    %5 = vector.load %arg4[%c8, %c0_9] : memref<16x32xf32, #tpu.memory_space<vmem>>, vector<8x32xf32>
    %c0_10 = arith.constant 0 : index
    %6 = memref.load %arg1[%c0_10] : memref<7xf32, #tpu.memory_space<smem>>
    %c0_11 = arith.constant 0 : index
    %7 = memref.load %arg2[%c0_11] : memref<7xf32, #tpu.memory_space<smem>>
    %c0_12 = arith.constant 0 : index
    %8 = memref.load %arg3[%c0_12] : memref<7xf32, #tpu.memory_space<smem>>
    %cst = arith.constant dense<0.000000e+00> : vector<8x64xf32>
    %9 = tpu.matmul %4, %0, %cst {dimension_numbers = #tpu.dot_dimension_numbers<[1], [0], [0], [1], [0, 0, 1, 1], [], []>} : vector<8x32xf32>, vector<32x64xf32>, vector<8x64xf32> -> vector<8x64xf32>
    %10 = vector.broadcast %2 : vector<1x64xf32> to vector<8x64xf32>
    %11 = arith.addf %9, %10 : vector<8x64xf32>
    %12 = math.tanh %11 : vector<8x64xf32>
    %cst_13 = arith.constant dense<0.000000e+00> : vector<8x32xf32>
    %13 = tpu.matmul %12, %1, %cst_13 {dimension_numbers = #tpu.dot_dimension_numbers<[1], [0], [0], [1], [0, 0, 1, 1], [], []>} : vector<8x64xf32>, vector<64x32xf32>, vector<8x32xf32> -> vector<8x32xf32>
    %14 = vector.broadcast %3 : vector<1x32xf32> to vector<8x32xf32>
    %15 = arith.addf %13, %14 : vector<8x32xf32>
    %cst_14 = arith.constant dense<0.000000e+00> : vector<8x64xf32>
    %16 = tpu.matmul %5, %0, %cst_14 {dimension_numbers = #tpu.dot_dimension_numbers<[1], [0], [0], [1], [0, 0, 1, 1], [], []>} : vector<8x32xf32>, vector<32x64xf32>, vector<8x64xf32> -> vector<8x64xf32>
    %17 = vector.broadcast %2 : vector<1x64xf32> to vector<8x64xf32>
    %18 = arith.addf %16, %17 : vector<8x64xf32>
    %19 = math.tanh %18 : vector<8x64xf32>
    %cst_15 = arith.constant dense<0.000000e+00> : vector<8x32xf32>
    %20 = tpu.matmul %19, %1, %cst_15 {dimension_numbers = #tpu.dot_dimension_numbers<[1], [0], [0], [1], [0, 0, 1, 1], [], []>} : vector<8x64xf32>, vector<64x32xf32>, vector<8x32xf32> -> vector<8x32xf32>
    %21 = vector.broadcast %3 : vector<1x32xf32> to vector<8x32xf32>
    %22 = arith.addf %20, %21 : vector<8x32xf32>
    %23 = vector.broadcast %7 : f32 to vector<8x32xf32>
    %24 = arith.mulf %23, %15 : vector<8x32xf32>
    %25 = arith.addf %4, %24 : vector<8x32xf32>
    %cst_16 = arith.constant dense<0.000000e+00> : vector<8x64xf32>
    %26 = tpu.matmul %25, %0, %cst_16 {dimension_numbers = #tpu.dot_dimension_numbers<[1], [0], [0], [1], [0, 0, 1, 1], [], []>} : vector<8x32xf32>, vector<32x64xf32>, vector<8x64xf32> -> vector<8x64xf32>
    %27 = vector.broadcast %2 : vector<1x64xf32> to vector<8x64xf32>
    %28 = arith.addf %26, %27 : vector<8x64xf32>
    %29 = math.tanh %28 : vector<8x64xf32>
    %cst_17 = arith.constant dense<0.000000e+00> : vector<8x32xf32>
    %30 = tpu.matmul %29, %1, %cst_17 {dimension_numbers = #tpu.dot_dimension_numbers<[1], [0], [0], [1], [0, 0, 1, 1], [], []>} : vector<8x64xf32>, vector<64x32xf32>, vector<8x32xf32> -> vector<8x32xf32>
    %31 = vector.broadcast %3 : vector<1x32xf32> to vector<8x32xf32>
    %32 = arith.addf %30, %31 : vector<8x32xf32>
    %33 = vector.broadcast %7 : f32 to vector<8x32xf32>
    %34 = arith.mulf %33, %22 : vector<8x32xf32>
    %35 = arith.addf %5, %34 : vector<8x32xf32>
    %cst_18 = arith.constant dense<0.000000e+00> : vector<8x64xf32>
    %36 = tpu.matmul %35, %0, %cst_18 {dimension_numbers = #tpu.dot_dimension_numbers<[1], [0], [0], [1], [0, 0, 1, 1], [], []>} : vector<8x32xf32>, vector<32x64xf32>, vector<8x64xf32> -> vector<8x64xf32>
    %37 = vector.broadcast %2 : vector<1x64xf32> to vector<8x64xf32>
    %38 = arith.addf %36, %37 : vector<8x64xf32>
    %39 = math.tanh %38 : vector<8x64xf32>
    %cst_19 = arith.constant dense<0.000000e+00> : vector<8x32xf32>
    %40 = tpu.matmul %39, %1, %cst_19 {dimension_numbers = #tpu.dot_dimension_numbers<[1], [0], [0], [1], [0, 0, 1, 1], [], []>} : vector<8x64xf32>, vector<64x32xf32>, vector<8x32xf32> -> vector<8x32xf32>
    %41 = vector.broadcast %3 : vector<1x32xf32> to vector<8x32xf32>
    %42 = arith.addf %40, %41 : vector<8x32xf32>
    %cst_20 = arith.constant 2.000000e+00 : f32
    %43 = vector.broadcast %cst_20 : f32 to vector<8x32xf32>
    %44 = arith.mulf %43, %32 : vector<8x32xf32>
    %45 = arith.addf %15, %44 : vector<8x32xf32>
    %cst_21 = arith.constant 2.000000e+00 : f32
    %46 = vector.broadcast %cst_21 : f32 to vector<8x32xf32>
    %47 = arith.mulf %46, %42 : vector<8x32xf32>
    %48 = arith.addf %22, %47 : vector<8x32xf32>
    %49 = vector.broadcast %7 : f32 to vector<8x32xf32>
    %50 = arith.mulf %49, %32 : vector<8x32xf32>
    %51 = arith.addf %4, %50 : vector<8x32xf32>
    %cst_22 = arith.constant dense<0.000000e+00> : vector<8x64xf32>
    %52 = tpu.matmul %51, %0, %cst_22 {dimension_numbers = #tpu.dot_dimension_numbers<[1], [0], [0], [1], [0, 0, 1, 1], [], []>} : vector<8x32xf32>, vector<32x64xf32>, vector<8x64xf32> -> vector<8x64xf32>
    %53 = vector.broadcast %2 : vector<1x64xf32> to vector<8x64xf32>
    %54 = arith.addf %52, %53 : vector<8x64xf32>
    %55 = math.tanh %54 : vector<8x64xf32>
    %cst_23 = arith.constant dense<0.000000e+00> : vector<8x32xf32>
    %56 = tpu.matmul %55, %1, %cst_23 {dimension_numbers = #tpu.dot_dimension_numbers<[1], [0], [0], [1], [0, 0, 1, 1], [], []>} : vector<8x64xf32>, vector<64x32xf32>, vector<8x32xf32> -> vector<8x32xf32>
    %57 = vector.broadcast %3 : vector<1x32xf32> to vector<8x32xf32>
    %58 = arith.addf %56, %57 : vector<8x32xf32>
    %59 = vector.broadcast %7 : f32 to vector<8x32xf32>
    %60 = arith.mulf %59, %42 : vector<8x32xf32>
    %61 = arith.addf %5, %60 : vector<8x32xf32>
    %cst_24 = arith.constant dense<0.000000e+00> : vector<8x64xf32>
    %62 = tpu.matmul %61, %0, %cst_24 {dimension_numbers = #tpu.dot_dimension_numbers<[1], [0], [0], [1], [0, 0, 1, 1], [], []>} : vector<8x32xf32>, vector<32x64xf32>, vector<8x64xf32> -> vector<8x64xf32>
    %63 = vector.broadcast %2 : vector<1x64xf32> to vector<8x64xf32>
    %64 = arith.addf %62, %63 : vector<8x64xf32>
    %65 = math.tanh %64 : vector<8x64xf32>
    %cst_25 = arith.constant dense<0.000000e+00> : vector<8x32xf32>
    %66 = tpu.matmul %65, %1, %cst_25 {dimension_numbers = #tpu.dot_dimension_numbers<[1], [0], [0], [1], [0, 0, 1, 1], [], []>} : vector<8x64xf32>, vector<64x32xf32>, vector<8x32xf32> -> vector<8x32xf32>
    %67 = vector.broadcast %3 : vector<1x32xf32> to vector<8x32xf32>
    %68 = arith.addf %66, %67 : vector<8x32xf32>
    %cst_26 = arith.constant 2.000000e+00 : f32
    %69 = vector.broadcast %cst_26 : f32 to vector<8x32xf32>
    %70 = arith.mulf %69, %58 : vector<8x32xf32>
    %71 = arith.addf %45, %70 : vector<8x32xf32>
    %cst_27 = arith.constant 2.000000e+00 : f32
    %72 = vector.broadcast %cst_27 : f32 to vector<8x32xf32>
    %73 = arith.mulf %72, %68 : vector<8x32xf32>
    %74 = arith.addf %48, %73 : vector<8x32xf32>
    %75 = vector.broadcast %6 : f32 to vector<8x32xf32>
    %76 = arith.mulf %75, %58 : vector<8x32xf32>
    %77 = arith.addf %4, %76 : vector<8x32xf32>
    %cst_28 = arith.constant dense<0.000000e+00> : vector<8x64xf32>
    %78 = tpu.matmul %77, %0, %cst_28 {dimension_numbers = #tpu.dot_dimension_numbers<[1], [0], [0], [1], [0, 0, 1, 1], [], []>} : vector<8x32xf32>, vector<32x64xf32>, vector<8x64xf32> -> vector<8x64xf32>
    %79 = vector.broadcast %2 : vector<1x64xf32> to vector<8x64xf32>
    %80 = arith.addf %78, %79 : vector<8x64xf32>
    %81 = math.tanh %80 : vector<8x64xf32>
    %cst_29 = arith.constant dense<0.000000e+00> : vector<8x32xf32>
    %82 = tpu.matmul %81, %1, %cst_29 {dimension_numbers = #tpu.dot_dimension_numbers<[1], [0], [0], [1], [0, 0, 1, 1], [], []>} : vector<8x64xf32>, vector<64x32xf32>, vector<8x32xf32> -> vector<8x32xf32>
    %83 = vector.broadcast %3 : vector<1x32xf32> to vector<8x32xf32>
    %84 = arith.addf %82, %83 : vector<8x32xf32>
    %85 = vector.broadcast %6 : f32 to vector<8x32xf32>
    %86 = arith.mulf %85, %68 : vector<8x32xf32>
    %87 = arith.addf %5, %86 : vector<8x32xf32>
    %cst_30 = arith.constant dense<0.000000e+00> : vector<8x64xf32>
    %88 = tpu.matmul %87, %0, %cst_30 {dimension_numbers = #tpu.dot_dimension_numbers<[1], [0], [0], [1], [0, 0, 1, 1], [], []>} : vector<8x32xf32>, vector<32x64xf32>, vector<8x64xf32> -> vector<8x64xf32>
    %89 = vector.broadcast %2 : vector<1x64xf32> to vector<8x64xf32>
    %90 = arith.addf %88, %89 : vector<8x64xf32>
    %91 = math.tanh %90 : vector<8x64xf32>
    %cst_31 = arith.constant dense<0.000000e+00> : vector<8x32xf32>
    %92 = tpu.matmul %91, %1, %cst_31 {dimension_numbers = #tpu.dot_dimension_numbers<[1], [0], [0], [1], [0, 0, 1, 1], [], []>} : vector<8x64xf32>, vector<64x32xf32>, vector<8x32xf32> -> vector<8x32xf32>
    %93 = vector.broadcast %3 : vector<1x32xf32> to vector<8x32xf32>
    %94 = arith.addf %92, %93 : vector<8x32xf32>
    %95 = arith.addf %71, %84 : vector<8x32xf32>
    %96 = vector.broadcast %8 : f32 to vector<8x32xf32>
    %97 = arith.mulf %96, %95 : vector<8x32xf32>
    %98 = arith.addf %4, %97 : vector<8x32xf32>
    %99 = arith.addf %74, %94 : vector<8x32xf32>
    %100 = vector.broadcast %8 : f32 to vector<8x32xf32>
    %101 = arith.mulf %100, %99 : vector<8x32xf32>
    %102 = arith.addf %5, %101 : vector<8x32xf32>
    %c1 = arith.constant 1 : index
    %103 = memref.load %arg1[%c1] : memref<7xf32, #tpu.memory_space<smem>>
    %c1_32 = arith.constant 1 : index
    %104 = memref.load %arg2[%c1_32] : memref<7xf32, #tpu.memory_space<smem>>
    %c1_33 = arith.constant 1 : index
    %105 = memref.load %arg3[%c1_33] : memref<7xf32, #tpu.memory_space<smem>>
    %cst_34 = arith.constant dense<0.000000e+00> : vector<8x64xf32>
    %106 = tpu.matmul %98, %0, %cst_34 {dimension_numbers = #tpu.dot_dimension_numbers<[1], [0], [0], [1], [0, 0, 1, 1], [], []>} : vector<8x32xf32>, vector<32x64xf32>, vector<8x64xf32> -> vector<8x64xf32>
    %107 = vector.broadcast %2 : vector<1x64xf32> to vector<8x64xf32>
    %108 = arith.addf %106, %107 : vector<8x64xf32>
    %109 = math.tanh %108 : vector<8x64xf32>
    %cst_35 = arith.constant dense<0.000000e+00> : vector<8x32xf32>
    %110 = tpu.matmul %109, %1, %cst_35 {dimension_numbers = #tpu.dot_dimension_numbers<[1], [0], [0], [1], [0, 0, 1, 1], [], []>} : vector<8x64xf32>, vector<64x32xf32>, vector<8x32xf32> -> vector<8x32xf32>
    %111 = vector.broadcast %3 : vector<1x32xf32> to vector<8x32xf32>
    %112 = arith.addf %110, %111 : vector<8x32xf32>
    %cst_36 = arith.constant dense<0.000000e+00> : vector<8x64xf32>
    %113 = tpu.matmul %102, %0, %cst_36 {dimension_numbers = #tpu.dot_dimension_numbers<[1], [0], [0], [1], [0, 0, 1, 1], [], []>} : vector<8x32xf32>, vector<32x64xf32>, vector<8x64xf32> -> vector<8x64xf32>
    %114 = vector.broadcast %2 : vector<1x64xf32> to vector<8x64xf32>
    %115 = arith.addf %113, %114 : vector<8x64xf32>
    %116 = math.tanh %115 : vector<8x64xf32>
    %cst_37 = arith.constant dense<0.000000e+00> : vector<8x32xf32>
    %117 = tpu.matmul %116, %1, %cst_37 {dimension_numbers = #tpu.dot_dimension_numbers<[1], [0], [0], [1], [0, 0, 1, 1], [], []>} : vector<8x64xf32>, vector<64x32xf32>, vector<8x32xf32> -> vector<8x32xf32>
    %118 = vector.broadcast %3 : vector<1x32xf32> to vector<8x32xf32>
    %119 = arith.addf %117, %118 : vector<8x32xf32>
    %120 = vector.broadcast %104 : f32 to vector<8x32xf32>
    %121 = arith.mulf %120, %112 : vector<8x32xf32>
    %122 = arith.addf %98, %121 : vector<8x32xf32>
    %cst_38 = arith.constant dense<0.000000e+00> : vector<8x64xf32>
    %123 = tpu.matmul %122, %0, %cst_38 {dimension_numbers = #tpu.dot_dimension_numbers<[1], [0], [0], [1], [0, 0, 1, 1], [], []>} : vector<8x32xf32>, vector<32x64xf32>, vector<8x64xf32> -> vector<8x64xf32>
    %124 = vector.broadcast %2 : vector<1x64xf32> to vector<8x64xf32>
    %125 = arith.addf %123, %124 : vector<8x64xf32>
    %126 = math.tanh %125 : vector<8x64xf32>
    %cst_39 = arith.constant dense<0.000000e+00> : vector<8x32xf32>
    %127 = tpu.matmul %126, %1, %cst_39 {dimension_numbers = #tpu.dot_dimension_numbers<[1], [0], [0], [1], [0, 0, 1, 1], [], []>} : vector<8x64xf32>, vector<64x32xf32>, vector<8x32xf32> -> vector<8x32xf32>
    %128 = vector.broadcast %3 : vector<1x32xf32> to vector<8x32xf32>
    %129 = arith.addf %127, %128 : vector<8x32xf32>
    %130 = vector.broadcast %104 : f32 to vector<8x32xf32>
    %131 = arith.mulf %130, %119 : vector<8x32xf32>
    %132 = arith.addf %102, %131 : vector<8x32xf32>
    %cst_40 = arith.constant dense<0.000000e+00> : vector<8x64xf32>
    %133 = tpu.matmul %132, %0, %cst_40 {dimension_numbers = #tpu.dot_dimension_numbers<[1], [0], [0], [1], [0, 0, 1, 1], [], []>} : vector<8x32xf32>, vector<32x64xf32>, vector<8x64xf32> -> vector<8x64xf32>
    %134 = vector.broadcast %2 : vector<1x64xf32> to vector<8x64xf32>
    %135 = arith.addf %133, %134 : vector<8x64xf32>
    %136 = math.tanh %135 : vector<8x64xf32>
    %cst_41 = arith.constant dense<0.000000e+00> : vector<8x32xf32>
    %137 = tpu.matmul %136, %1, %cst_41 {dimension_numbers = #tpu.dot_dimension_numbers<[1], [0], [0], [1], [0, 0, 1, 1], [], []>} : vector<8x64xf32>, vector<64x32xf32>, vector<8x32xf32> -> vector<8x32xf32>
    %138 = vector.broadcast %3 : vector<1x32xf32> to vector<8x32xf32>
    %139 = arith.addf %137, %138 : vector<8x32xf32>
    %cst_42 = arith.constant 2.000000e+00 : f32
    %140 = vector.broadcast %cst_42 : f32 to vector<8x32xf32>
    %141 = arith.mulf %140, %129 : vector<8x32xf32>
    %142 = arith.addf %112, %141 : vector<8x32xf32>
    %cst_43 = arith.constant 2.000000e+00 : f32
    %143 = vector.broadcast %cst_43 : f32 to vector<8x32xf32>
    %144 = arith.mulf %143, %139 : vector<8x32xf32>
    %145 = arith.addf %119, %144 : vector<8x32xf32>
    %146 = vector.broadcast %104 : f32 to vector<8x32xf32>
    %147 = arith.mulf %146, %129 : vector<8x32xf32>
    %148 = arith.addf %98, %147 : vector<8x32xf32>
    %cst_44 = arith.constant dense<0.000000e+00> : vector<8x64xf32>
    %149 = tpu.matmul %148, %0, %cst_44 {dimension_numbers = #tpu.dot_dimension_numbers<[1], [0], [0], [1], [0, 0, 1, 1], [], []>} : vector<8x32xf32>, vector<32x64xf32>, vector<8x64xf32> -> vector<8x64xf32>
    %150 = vector.broadcast %2 : vector<1x64xf32> to vector<8x64xf32>
    %151 = arith.addf %149, %150 : vector<8x64xf32>
    %152 = math.tanh %151 : vector<8x64xf32>
    %cst_45 = arith.constant dense<0.000000e+00> : vector<8x32xf32>
    %153 = tpu.matmul %152, %1, %cst_45 {dimension_numbers = #tpu.dot_dimension_numbers<[1], [0], [0], [1], [0, 0, 1, 1], [], []>} : vector<8x64xf32>, vector<64x32xf32>, vector<8x32xf32> -> vector<8x32xf32>
    %154 = vector.broadcast %3 : vector<1x32xf32> to vector<8x32xf32>
    %155 = arith.addf %153, %154 : vector<8x32xf32>
    %156 = vector.broadcast %104 : f32 to vector<8x32xf32>
    %157 = arith.mulf %156, %139 : vector<8x32xf32>
    %158 = arith.addf %102, %157 : vector<8x32xf32>
    %cst_46 = arith.constant dense<0.000000e+00> : vector<8x64xf32>
    %159 = tpu.matmul %158, %0, %cst_46 {dimension_numbers = #tpu.dot_dimension_numbers<[1], [0], [0], [1], [0, 0, 1, 1], [], []>} : vector<8x32xf32>, vector<32x64xf32>, vector<8x64xf32> -> vector<8x64xf32>
    %160 = vector.broadcast %2 : vector<1x64xf32> to vector<8x64xf32>
    %161 = arith.addf %159, %160 : vector<8x64xf32>
    %162 = math.tanh %161 : vector<8x64xf32>
    %cst_47 = arith.constant dense<0.000000e+00> : vector<8x32xf32>
    %163 = tpu.matmul %162, %1, %cst_47 {dimension_numbers = #tpu.dot_dimension_numbers<[1], [0], [0], [1], [0, 0, 1, 1], [], []>} : vector<8x64xf32>, vector<64x32xf32>, vector<8x32xf32> -> vector<8x32xf32>
    %164 = vector.broadcast %3 : vector<1x32xf32> to vector<8x32xf32>
    %165 = arith.addf %163, %164 : vector<8x32xf32>
    %cst_48 = arith.constant 2.000000e+00 : f32
    %166 = vector.broadcast %cst_48 : f32 to vector<8x32xf32>
    %167 = arith.mulf %166, %155 : vector<8x32xf32>
    %168 = arith.addf %142, %167 : vector<8x32xf32>
    %cst_49 = arith.constant 2.000000e+00 : f32
    %169 = vector.broadcast %cst_49 : f32 to vector<8x32xf32>
    %170 = arith.mulf %169, %165 : vector<8x32xf32>
    %171 = arith.addf %145, %170 : vector<8x32xf32>
    %172 = vector.broadcast %103 : f32 to vector<8x32xf32>
    %173 = arith.mulf %172, %155 : vector<8x32xf32>
    %174 = arith.addf %98, %173 : vector<8x32xf32>
    %cst_50 = arith.constant dense<0.000000e+00> : vector<8x64xf32>
    %175 = tpu.matmul %174, %0, %cst_50 {dimension_numbers = #tpu.dot_dimension_numbers<[1], [0], [0], [1], [0, 0, 1, 1], [], []>} : vector<8x32xf32>, vector<32x64xf32>, vector<8x64xf32> -> vector<8x64xf32>
    %176 = vector.broadcast %2 : vector<1x64xf32> to vector<8x64xf32>
    %177 = arith.addf %175, %176 : vector<8x64xf32>
    %178 = math.tanh %177 : vector<8x64xf32>
    %cst_51 = arith.constant dense<0.000000e+00> : vector<8x32xf32>
    %179 = tpu.matmul %178, %1, %cst_51 {dimension_numbers = #tpu.dot_dimension_numbers<[1], [0], [0], [1], [0, 0, 1, 1], [], []>} : vector<8x64xf32>, vector<64x32xf32>, vector<8x32xf32> -> vector<8x32xf32>
    %180 = vector.broadcast %3 : vector<1x32xf32> to vector<8x32xf32>
    %181 = arith.addf %179, %180 : vector<8x32xf32>
    %182 = vector.broadcast %103 : f32 to vector<8x32xf32>
    %183 = arith.mulf %182, %165 : vector<8x32xf32>
    %184 = arith.addf %102, %183 : vector<8x32xf32>
    %cst_52 = arith.constant dense<0.000000e+00> : vector<8x64xf32>
    %185 = tpu.matmul %184, %0, %cst_52 {dimension_numbers = #tpu.dot_dimension_numbers<[1], [0], [0], [1], [0, 0, 1, 1], [], []>} : vector<8x32xf32>, vector<32x64xf32>, vector<8x64xf32> -> vector<8x64xf32>
    %186 = vector.broadcast %2 : vector<1x64xf32> to vector<8x64xf32>
    %187 = arith.addf %185, %186 : vector<8x64xf32>
    %188 = math.tanh %187 : vector<8x64xf32>
    %cst_53 = arith.constant dense<0.000000e+00> : vector<8x32xf32>
    %189 = tpu.matmul %188, %1, %cst_53 {dimension_numbers = #tpu.dot_dimension_numbers<[1], [0], [0], [1], [0, 0, 1, 1], [], []>} : vector<8x64xf32>, vector<64x32xf32>, vector<8x32xf32> -> vector<8x32xf32>
    %190 = vector.broadcast %3 : vector<1x32xf32> to vector<8x32xf32>
    %191 = arith.addf %189, %190 : vector<8x32xf32>
    %192 = arith.addf %168, %181 : vector<8x32xf32>
    %193 = vector.broadcast %105 : f32 to vector<8x32xf32>
    %194 = arith.mulf %193, %192 : vector<8x32xf32>
    %195 = arith.addf %98, %194 : vector<8x32xf32>
    %196 = arith.addf %171, %191 : vector<8x32xf32>
    %197 = vector.broadcast %105 : f32 to vector<8x32xf32>
    %198 = arith.mulf %197, %196 : vector<8x32xf32>
    %199 = arith.addf %102, %198 : vector<8x32xf32>
    %c2 = arith.constant 2 : index
    %200 = memref.load %arg1[%c2] : memref<7xf32, #tpu.memory_space<smem>>
    %c2_54 = arith.constant 2 : index
    %201 = memref.load %arg2[%c2_54] : memref<7xf32, #tpu.memory_space<smem>>
    %c2_55 = arith.constant 2 : index
    %202 = memref.load %arg3[%c2_55] : memref<7xf32, #tpu.memory_space<smem>>
    %cst_56 = arith.constant dense<0.000000e+00> : vector<8x64xf32>
    %203 = tpu.matmul %195, %0, %cst_56 {dimension_numbers = #tpu.dot_dimension_numbers<[1], [0], [0], [1], [0, 0, 1, 1], [], []>} : vector<8x32xf32>, vector<32x64xf32>, vector<8x64xf32> -> vector<8x64xf32>
    %204 = vector.broadcast %2 : vector<1x64xf32> to vector<8x64xf32>
    %205 = arith.addf %203, %204 : vector<8x64xf32>
    %206 = math.tanh %205 : vector<8x64xf32>
    %cst_57 = arith.constant dense<0.000000e+00> : vector<8x32xf32>
    %207 = tpu.matmul %206, %1, %cst_57 {dimension_numbers = #tpu.dot_dimension_numbers<[1], [0], [0], [1], [0, 0, 1, 1], [], []>} : vector<8x64xf32>, vector<64x32xf32>, vector<8x32xf32> -> vector<8x32xf32>
    %208 = vector.broadcast %3 : vector<1x32xf32> to vector<8x32xf32>
    %209 = arith.addf %207, %208 : vector<8x32xf32>
    %cst_58 = arith.constant dense<0.000000e+00> : vector<8x64xf32>
    %210 = tpu.matmul %199, %0, %cst_58 {dimension_numbers = #tpu.dot_dimension_numbers<[1], [0], [0], [1], [0, 0, 1, 1], [], []>} : vector<8x32xf32>, vector<32x64xf32>, vector<8x64xf32> -> vector<8x64xf32>
    %211 = vector.broadcast %2 : vector<1x64xf32> to vector<8x64xf32>
    %212 = arith.addf %210, %211 : vector<8x64xf32>
    %213 = math.tanh %212 : vector<8x64xf32>
    %cst_59 = arith.constant dense<0.000000e+00> : vector<8x32xf32>
    %214 = tpu.matmul %213, %1, %cst_59 {dimension_numbers = #tpu.dot_dimension_numbers<[1], [0], [0], [1], [0, 0, 1, 1], [], []>} : vector<8x64xf32>, vector<64x32xf32>, vector<8x32xf32> -> vector<8x32xf32>
    %215 = vector.broadcast %3 : vector<1x32xf32> to vector<8x32xf32>
    %216 = arith.addf %214, %215 : vector<8x32xf32>
    %217 = vector.broadcast %201 : f32 to vector<8x32xf32>
    %218 = arith.mulf %217, %209 : vector<8x32xf32>
    %219 = arith.addf %195, %218 : vector<8x32xf32>
    %cst_60 = arith.constant dense<0.000000e+00> : vector<8x64xf32>
    %220 = tpu.matmul %219, %0, %cst_60 {dimension_numbers = #tpu.dot_dimension_numbers<[1], [0], [0], [1], [0, 0, 1, 1], [], []>} : vector<8x32xf32>, vector<32x64xf32>, vector<8x64xf32> -> vector<8x64xf32>
    %221 = vector.broadcast %2 : vector<1x64xf32> to vector<8x64xf32>
    %222 = arith.addf %220, %221 : vector<8x64xf32>
    %223 = math.tanh %222 : vector<8x64xf32>
    %cst_61 = arith.constant dense<0.000000e+00> : vector<8x32xf32>
    %224 = tpu.matmul %223, %1, %cst_61 {dimension_numbers = #tpu.dot_dimension_numbers<[1], [0], [0], [1], [0, 0, 1, 1], [], []>} : vector<8x64xf32>, vector<64x32xf32>, vector<8x32xf32> -> vector<8x32xf32>
    %225 = vector.broadcast %3 : vector<1x32xf32> to vector<8x32xf32>
    %226 = arith.addf %224, %225 : vector<8x32xf32>
    %227 = vector.broadcast %201 : f32 to vector<8x32xf32>
    %228 = arith.mulf %227, %216 : vector<8x32xf32>
    %229 = arith.addf %199, %228 : vector<8x32xf32>
    %cst_62 = arith.constant dense<0.000000e+00> : vector<8x64xf32>
    %230 = tpu.matmul %229, %0, %cst_62 {dimension_numbers = #tpu.dot_dimension_numbers<[1], [0], [0], [1], [0, 0, 1, 1], [], []>} : vector<8x32xf32>, vector<32x64xf32>, vector<8x64xf32> -> vector<8x64xf32>
    %231 = vector.broadcast %2 : vector<1x64xf32> to vector<8x64xf32>
    %232 = arith.addf %230, %231 : vector<8x64xf32>
    %233 = math.tanh %232 : vector<8x64xf32>
    %cst_63 = arith.constant dense<0.000000e+00> : vector<8x32xf32>
    %234 = tpu.matmul %233, %1, %cst_63 {dimension_numbers = #tpu.dot_dimension_numbers<[1], [0], [0], [1], [0, 0, 1, 1], [], []>} : vector<8x64xf32>, vector<64x32xf32>, vector<8x32xf32> -> vector<8x32xf32>
    %235 = vector.broadcast %3 : vector<1x32xf32> to vector<8x32xf32>
    %236 = arith.addf %234, %235 : vector<8x32xf32>
    %cst_64 = arith.constant 2.000000e+00 : f32
    %237 = vector.broadcast %cst_64 : f32 to vector<8x32xf32>
    %238 = arith.mulf %237, %226 : vector<8x32xf32>
    %239 = arith.addf %209, %238 : vector<8x32xf32>
    %cst_65 = arith.constant 2.000000e+00 : f32
    %240 = vector.broadcast %cst_65 : f32 to vector<8x32xf32>
    %241 = arith.mulf %240, %236 : vector<8x32xf32>
    %242 = arith.addf %216, %241 : vector<8x32xf32>
    %243 = vector.broadcast %201 : f32 to vector<8x32xf32>
    %244 = arith.mulf %243, %226 : vector<8x32xf32>
    %245 = arith.addf %195, %244 : vector<8x32xf32>
    %cst_66 = arith.constant dense<0.000000e+00> : vector<8x64xf32>
    %246 = tpu.matmul %245, %0, %cst_66 {dimension_numbers = #tpu.dot_dimension_numbers<[1], [0], [0], [1], [0, 0, 1, 1], [], []>} : vector<8x32xf32>, vector<32x64xf32>, vector<8x64xf32> -> vector<8x64xf32>
    %247 = vector.broadcast %2 : vector<1x64xf32> to vector<8x64xf32>
    %248 = arith.addf %246, %247 : vector<8x64xf32>
    %249 = math.tanh %248 : vector<8x64xf32>
    %cst_67 = arith.constant dense<0.000000e+00> : vector<8x32xf32>
    %250 = tpu.matmul %249, %1, %cst_67 {dimension_numbers = #tpu.dot_dimension_numbers<[1], [0], [0], [1], [0, 0, 1, 1], [], []>} : vector<8x64xf32>, vector<64x32xf32>, vector<8x32xf32> -> vector<8x32xf32>
    %251 = vector.broadcast %3 : vector<1x32xf32> to vector<8x32xf32>
    %252 = arith.addf %250, %251 : vector<8x32xf32>
    %253 = vector.broadcast %201 : f32 to vector<8x32xf32>
    %254 = arith.mulf %253, %236 : vector<8x32xf32>
    %255 = arith.addf %199, %254 : vector<8x32xf32>
    %cst_68 = arith.constant dense<0.000000e+00> : vector<8x64xf32>
    %256 = tpu.matmul %255, %0, %cst_68 {dimension_numbers = #tpu.dot_dimension_numbers<[1], [0], [0], [1], [0, 0, 1, 1], [], []>} : vector<8x32xf32>, vector<32x64xf32>, vector<8x64xf32> -> vector<8x64xf32>
    %257 = vector.broadcast %2 : vector<1x64xf32> to vector<8x64xf32>
    %258 = arith.addf %256, %257 : vector<8x64xf32>
    %259 = math.tanh %258 : vector<8x64xf32>
    %cst_69 = arith.constant dense<0.000000e+00> : vector<8x32xf32>
    %260 = tpu.matmul %259, %1, %cst_69 {dimension_numbers = #tpu.dot_dimension_numbers<[1], [0], [0], [1], [0, 0, 1, 1], [], []>} : vector<8x64xf32>, vector<64x32xf32>, vector<8x32xf32> -> vector<8x32xf32>
    %261 = vector.broadcast %3 : vector<1x32xf32> to vector<8x32xf32>
    %262 = arith.addf %260, %261 : vector<8x32xf32>
    %cst_70 = arith.constant 2.000000e+00 : f32
    %263 = vector.broadcast %cst_70 : f32 to vector<8x32xf32>
    %264 = arith.mulf %263, %252 : vector<8x32xf32>
    %265 = arith.addf %239, %264 : vector<8x32xf32>
    %cst_71 = arith.constant 2.000000e+00 : f32
    %266 = vector.broadcast %cst_71 : f32 to vector<8x32xf32>
    %267 = arith.mulf %266, %262 : vector<8x32xf32>
    %268 = arith.addf %242, %267 : vector<8x32xf32>
    %269 = vector.broadcast %200 : f32 to vector<8x32xf32>
    %270 = arith.mulf %269, %252 : vector<8x32xf32>
    %271 = arith.addf %195, %270 : vector<8x32xf32>
    %cst_72 = arith.constant dense<0.000000e+00> : vector<8x64xf32>
    %272 = tpu.matmul %271, %0, %cst_72 {dimension_numbers = #tpu.dot_dimension_numbers<[1], [0], [0], [1], [0, 0, 1, 1], [], []>} : vector<8x32xf32>, vector<32x64xf32>, vector<8x64xf32> -> vector<8x64xf32>
    %273 = vector.broadcast %2 : vector<1x64xf32> to vector<8x64xf32>
    %274 = arith.addf %272, %273 : vector<8x64xf32>
    %275 = math.tanh %274 : vector<8x64xf32>
    %cst_73 = arith.constant dense<0.000000e+00> : vector<8x32xf32>
    %276 = tpu.matmul %275, %1, %cst_73 {dimension_numbers = #tpu.dot_dimension_numbers<[1], [0], [0], [1], [0, 0, 1, 1], [], []>} : vector<8x64xf32>, vector<64x32xf32>, vector<8x32xf32> -> vector<8x32xf32>
    %277 = vector.broadcast %3 : vector<1x32xf32> to vector<8x32xf32>
    %278 = arith.addf %276, %277 : vector<8x32xf32>
    %279 = vector.broadcast %200 : f32 to vector<8x32xf32>
    %280 = arith.mulf %279, %262 : vector<8x32xf32>
    %281 = arith.addf %199, %280 : vector<8x32xf32>
    %cst_74 = arith.constant dense<0.000000e+00> : vector<8x64xf32>
    %282 = tpu.matmul %281, %0, %cst_74 {dimension_numbers = #tpu.dot_dimension_numbers<[1], [0], [0], [1], [0, 0, 1, 1], [], []>} : vector<8x32xf32>, vector<32x64xf32>, vector<8x64xf32> -> vector<8x64xf32>
    %283 = vector.broadcast %2 : vector<1x64xf32> to vector<8x64xf32>
    %284 = arith.addf %282, %283 : vector<8x64xf32>
    %285 = math.tanh %284 : vector<8x64xf32>
    %cst_75 = arith.constant dense<0.000000e+00> : vector<8x32xf32>
    %286 = tpu.matmul %285, %1, %cst_75 {dimension_numbers = #tpu.dot_dimension_numbers<[1], [0], [0], [1], [0, 0, 1, 1], [], []>} : vector<8x64xf32>, vector<64x32xf32>, vector<8x32xf32> -> vector<8x32xf32>
    %287 = vector.broadcast %3 : vector<1x32xf32> to vector<8x32xf32>
    %288 = arith.addf %286, %287 : vector<8x32xf32>
    %289 = arith.addf %265, %278 : vector<8x32xf32>
    %290 = vector.broadcast %202 : f32 to vector<8x32xf32>
    %291 = arith.mulf %290, %289 : vector<8x32xf32>
    %292 = arith.addf %195, %291 : vector<8x32xf32>
    %293 = arith.addf %268, %288 : vector<8x32xf32>
    %294 = vector.broadcast %202 : f32 to vector<8x32xf32>
    %295 = arith.mulf %294, %293 : vector<8x32xf32>
    %296 = arith.addf %199, %295 : vector<8x32xf32>
    %297 = tpu.concatenate %4, %98, %195, %292 in 1 : vector<8x32xf32>, vector<8x32xf32>, vector<8x32xf32>, vector<8x32xf32> -> vector<8x128xf32>
    %c0_76 = arith.constant 0 : index
    %c0_77 = arith.constant 0 : index
    %298 = vector.load %arg9[%c0_76, %c0_77] : memref<16x256xf32, #tpu.memory_space<vmem>>, vector<8x128xf32>
    tpu.vector_store %arg9[%c0_76, %c0_77], %297 {strides = array<i32>} : memref<16x256xf32, #tpu.memory_space<vmem>>, vector<8x128xf32>,
    %299 = tpu.concatenate %5, %102, %199, %296 in 1 : vector<8x32xf32>, vector<8x32xf32>, vector<8x32xf32>, vector<8x32xf32> -> vector<8x128xf32>
    %c8_78 = arith.constant 8 : index
    %c0_79 = arith.constant 0 : index
    %300 = vector.load %arg9[%c8_78, %c0_79] : memref<16x256xf32, #tpu.memory_space<vmem>>, vector<8x128xf32>
    tpu.vector_store %arg9[%c8_78, %c0_79], %299 {strides = array<i32>} : memref<16x256xf32, #tpu.memory_space<vmem>>, vector<8x128xf32>,
    %c3 = arith.constant 3 : index
    %301 = memref.load %arg1[%c3] : memref<7xf32, #tpu.memory_space<smem>>
    %c3_80 = arith.constant 3 : index
    %302 = memref.load %arg2[%c3_80] : memref<7xf32, #tpu.memory_space<smem>>
    %c3_81 = arith.constant 3 : index
    %303 = memref.load %arg3[%c3_81] : memref<7xf32, #tpu.memory_space<smem>>
    %cst_82 = arith.constant dense<0.000000e+00> : vector<8x64xf32>
    %304 = tpu.matmul %292, %0, %cst_82 {dimension_numbers = #tpu.dot_dimension_numbers<[1], [0], [0], [1], [0, 0, 1, 1], [], []>} : vector<8x32xf32>, vector<32x64xf32>, vector<8x64xf32> -> vector<8x64xf32>
    %305 = vector.broadcast %2 : vector<1x64xf32> to vector<8x64xf32>
    %306 = arith.addf %304, %305 : vector<8x64xf32>
    %307 = math.tanh %306 : vector<8x64xf32>
    %cst_83 = arith.constant dense<0.000000e+00> : vector<8x32xf32>
    %308 = tpu.matmul %307, %1, %cst_83 {dimension_numbers = #tpu.dot_dimension_numbers<[1], [0], [0], [1], [0, 0, 1, 1], [], []>} : vector<8x64xf32>, vector<64x32xf32>, vector<8x32xf32> -> vector<8x32xf32>
    %309 = vector.broadcast %3 : vector<1x32xf32> to vector<8x32xf32>
    %310 = arith.addf %308, %309 : vector<8x32xf32>
    %cst_84 = arith.constant dense<0.000000e+00> : vector<8x64xf32>
    %311 = tpu.matmul %296, %0, %cst_84 {dimension_numbers = #tpu.dot_dimension_numbers<[1], [0], [0], [1], [0, 0, 1, 1], [], []>} : vector<8x32xf32>, vector<32x64xf32>, vector<8x64xf32> -> vector<8x64xf32>
    %312 = vector.broadcast %2 : vector<1x64xf32> to vector<8x64xf32>
    %313 = arith.addf %311, %312 : vector<8x64xf32>
    %314 = math.tanh %313 : vector<8x64xf32>
    %cst_85 = arith.constant dense<0.000000e+00> : vector<8x32xf32>
    %315 = tpu.matmul %314, %1, %cst_85 {dimension_numbers = #tpu.dot_dimension_numbers<[1], [0], [0], [1], [0, 0, 1, 1], [], []>} : vector<8x64xf32>, vector<64x32xf32>, vector<8x32xf32> -> vector<8x32xf32>
    %316 = vector.broadcast %3 : vector<1x32xf32> to vector<8x32xf32>
    %317 = arith.addf %315, %316 : vector<8x32xf32>
    %318 = vector.broadcast %302 : f32 to vector<8x32xf32>
    %319 = arith.mulf %318, %310 : vector<8x32xf32>
    %320 = arith.addf %292, %319 : vector<8x32xf32>
    %cst_86 = arith.constant dense<0.000000e+00> : vector<8x64xf32>
    %321 = tpu.matmul %320, %0, %cst_86 {dimension_numbers = #tpu.dot_dimension_numbers<[1], [0], [0], [1], [0, 0, 1, 1], [], []>} : vector<8x32xf32>, vector<32x64xf32>, vector<8x64xf32> -> vector<8x64xf32>
    %322 = vector.broadcast %2 : vector<1x64xf32> to vector<8x64xf32>
    %323 = arith.addf %321, %322 : vector<8x64xf32>
    %324 = math.tanh %323 : vector<8x64xf32>
    %cst_87 = arith.constant dense<0.000000e+00> : vector<8x32xf32>
    %325 = tpu.matmul %324, %1, %cst_87 {dimension_numbers = #tpu.dot_dimension_numbers<[1], [0], [0], [1], [0, 0, 1, 1], [], []>} : vector<8x64xf32>, vector<64x32xf32>, vector<8x32xf32> -> vector<8x32xf32>
    %326 = vector.broadcast %3 : vector<1x32xf32> to vector<8x32xf32>
    %327 = arith.addf %325, %326 : vector<8x32xf32>
    %328 = vector.broadcast %302 : f32 to vector<8x32xf32>
    %329 = arith.mulf %328, %317 : vector<8x32xf32>
    %330 = arith.addf %296, %329 : vector<8x32xf32>
    %cst_88 = arith.constant dense<0.000000e+00> : vector<8x64xf32>
    %331 = tpu.matmul %330, %0, %cst_88 {dimension_numbers = #tpu.dot_dimension_numbers<[1], [0], [0], [1], [0, 0, 1, 1], [], []>} : vector<8x32xf32>, vector<32x64xf32>, vector<8x64xf32> -> vector<8x64xf32>
    %332 = vector.broadcast %2 : vector<1x64xf32> to vector<8x64xf32>
    %333 = arith.addf %331, %332 : vector<8x64xf32>
    %334 = math.tanh %333 : vector<8x64xf32>
    %cst_89 = arith.constant dense<0.000000e+00> : vector<8x32xf32>
    %335 = tpu.matmul %334, %1, %cst_89 {dimension_numbers = #tpu.dot_dimension_numbers<[1], [0], [0], [1], [0, 0, 1, 1], [], []>} : vector<8x64xf32>, vector<64x32xf32>, vector<8x32xf32> -> vector<8x32xf32>
    %336 = vector.broadcast %3 : vector<1x32xf32> to vector<8x32xf32>
    %337 = arith.addf %335, %336 : vector<8x32xf32>
    %cst_90 = arith.constant 2.000000e+00 : f32
    %338 = vector.broadcast %cst_90 : f32 to vector<8x32xf32>
    %339 = arith.mulf %338, %327 : vector<8x32xf32>
    %340 = arith.addf %310, %339 : vector<8x32xf32>
    %cst_91 = arith.constant 2.000000e+00 : f32
    %341 = vector.broadcast %cst_91 : f32 to vector<8x32xf32>
    %342 = arith.mulf %341, %337 : vector<8x32xf32>
    %343 = arith.addf %317, %342 : vector<8x32xf32>
    %344 = vector.broadcast %302 : f32 to vector<8x32xf32>
    %345 = arith.mulf %344, %327 : vector<8x32xf32>
    %346 = arith.addf %292, %345 : vector<8x32xf32>
    %cst_92 = arith.constant dense<0.000000e+00> : vector<8x64xf32>
    %347 = tpu.matmul %346, %0, %cst_92 {dimension_numbers = #tpu.dot_dimension_numbers<[1], [0], [0], [1], [0, 0, 1, 1], [], []>} : vector<8x32xf32>, vector<32x64xf32>, vector<8x64xf32> -> vector<8x64xf32>
    %348 = vector.broadcast %2 : vector<1x64xf32> to vector<8x64xf32>
    %349 = arith.addf %347, %348 : vector<8x64xf32>
    %350 = math.tanh %349 : vector<8x64xf32>
    %cst_93 = arith.constant dense<0.000000e+00> : vector<8x32xf32>
    %351 = tpu.matmul %350, %1, %cst_93 {dimension_numbers = #tpu.dot_dimension_numbers<[1], [0], [0], [1], [0, 0, 1, 1], [], []>} : vector<8x64xf32>, vector<64x32xf32>, vector<8x32xf32> -> vector<8x32xf32>
    %352 = vector.broadcast %3 : vector<1x32xf32> to vector<8x32xf32>
    %353 = arith.addf %351, %352 : vector<8x32xf32>
    %354 = vector.broadcast %302 : f32 to vector<8x32xf32>
    %355 = arith.mulf %354, %337 : vector<8x32xf32>
    %356 = arith.addf %296, %355 : vector<8x32xf32>
    %cst_94 = arith.constant dense<0.000000e+00> : vector<8x64xf32>
    %357 = tpu.matmul %356, %0, %cst_94 {dimension_numbers = #tpu.dot_dimension_numbers<[1], [0], [0], [1], [0, 0, 1, 1], [], []>} : vector<8x32xf32>, vector<32x64xf32>, vector<8x64xf32> -> vector<8x64xf32>
    %358 = vector.broadcast %2 : vector<1x64xf32> to vector<8x64xf32>
    %359 = arith.addf %357, %358 : vector<8x64xf32>
    %360 = math.tanh %359 : vector<8x64xf32>
    %cst_95 = arith.constant dense<0.000000e+00> : vector<8x32xf32>
    %361 = tpu.matmul %360, %1, %cst_95 {dimension_numbers = #tpu.dot_dimension_numbers<[1], [0], [0], [1], [0, 0, 1, 1], [], []>} : vector<8x64xf32>, vector<64x32xf32>, vector<8x32xf32> -> vector<8x32xf32>
    %362 = vector.broadcast %3 : vector<1x32xf32> to vector<8x32xf32>
    %363 = arith.addf %361, %362 : vector<8x32xf32>
    %cst_96 = arith.constant 2.000000e+00 : f32
    %364 = vector.broadcast %cst_96 : f32 to vector<8x32xf32>
    %365 = arith.mulf %364, %353 : vector<8x32xf32>
    %366 = arith.addf %340, %365 : vector<8x32xf32>
    %cst_97 = arith.constant 2.000000e+00 : f32
    %367 = vector.broadcast %cst_97 : f32 to vector<8x32xf32>
    %368 = arith.mulf %367, %363 : vector<8x32xf32>
    %369 = arith.addf %343, %368 : vector<8x32xf32>
    %370 = vector.broadcast %301 : f32 to vector<8x32xf32>
    %371 = arith.mulf %370, %353 : vector<8x32xf32>
    %372 = arith.addf %292, %371 : vector<8x32xf32>
    %cst_98 = arith.constant dense<0.000000e+00> : vector<8x64xf32>
    %373 = tpu.matmul %372, %0, %cst_98 {dimension_numbers = #tpu.dot_dimension_numbers<[1], [0], [0], [1], [0, 0, 1, 1], [], []>} : vector<8x32xf32>, vector<32x64xf32>, vector<8x64xf32> -> vector<8x64xf32>
    %374 = vector.broadcast %2 : vector<1x64xf32> to vector<8x64xf32>
    %375 = arith.addf %373, %374 : vector<8x64xf32>
    %376 = math.tanh %375 : vector<8x64xf32>
    %cst_99 = arith.constant dense<0.000000e+00> : vector<8x32xf32>
    %377 = tpu.matmul %376, %1, %cst_99 {dimension_numbers = #tpu.dot_dimension_numbers<[1], [0], [0], [1], [0, 0, 1, 1], [], []>} : vector<8x64xf32>, vector<64x32xf32>, vector<8x32xf32> -> vector<8x32xf32>
    %378 = vector.broadcast %3 : vector<1x32xf32> to vector<8x32xf32>
    %379 = arith.addf %377, %378 : vector<8x32xf32>
    %380 = vector.broadcast %301 : f32 to vector<8x32xf32>
    %381 = arith.mulf %380, %363 : vector<8x32xf32>
    %382 = arith.addf %296, %381 : vector<8x32xf32>
    %cst_100 = arith.constant dense<0.000000e+00> : vector<8x64xf32>
    %383 = tpu.matmul %382, %0, %cst_100 {dimension_numbers = #tpu.dot_dimension_numbers<[1], [0], [0], [1], [0, 0, 1, 1], [], []>} : vector<8x32xf32>, vector<32x64xf32>, vector<8x64xf32> -> vector<8x64xf32>
    %384 = vector.broadcast %2 : vector<1x64xf32> to vector<8x64xf32>
    %385 = arith.addf %383, %384 : vector<8x64xf32>
    %386 = math.tanh %385 : vector<8x64xf32>
    %cst_101 = arith.constant dense<0.000000e+00> : vector<8x32xf32>
    %387 = tpu.matmul %386, %1, %cst_101 {dimension_numbers = #tpu.dot_dimension_numbers<[1], [0], [0], [1], [0, 0, 1, 1], [], []>} : vector<8x64xf32>, vector<64x32xf32>, vector<8x32xf32> -> vector<8x32xf32>
    %388 = vector.broadcast %3 : vector<1x32xf32> to vector<8x32xf32>
    %389 = arith.addf %387, %388 : vector<8x32xf32>
    %390 = arith.addf %366, %379 : vector<8x32xf32>
    %391 = vector.broadcast %303 : f32 to vector<8x32xf32>
    %392 = arith.mulf %391, %390 : vector<8x32xf32>
    %393 = arith.addf %292, %392 : vector<8x32xf32>
    %394 = arith.addf %369, %389 : vector<8x32xf32>
    %395 = vector.broadcast %303 : f32 to vector<8x32xf32>
    %396 = arith.mulf %395, %394 : vector<8x32xf32>
    %397 = arith.addf %296, %396 : vector<8x32xf32>
    %c4 = arith.constant 4 : index
    %398 = memref.load %arg1[%c4] : memref<7xf32, #tpu.memory_space<smem>>
    %c4_102 = arith.constant 4 : index
    %399 = memref.load %arg2[%c4_102] : memref<7xf32, #tpu.memory_space<smem>>
    %c4_103 = arith.constant 4 : index
    %400 = memref.load %arg3[%c4_103] : memref<7xf32, #tpu.memory_space<smem>>
    %cst_104 = arith.constant dense<0.000000e+00> : vector<8x64xf32>
    %401 = tpu.matmul %393, %0, %cst_104 {dimension_numbers = #tpu.dot_dimension_numbers<[1], [0], [0], [1], [0, 0, 1, 1], [], []>} : vector<8x32xf32>, vector<32x64xf32>, vector<8x64xf32> -> vector<8x64xf32>
    %402 = vector.broadcast %2 : vector<1x64xf32> to vector<8x64xf32>
    %403 = arith.addf %401, %402 : vector<8x64xf32>
    %404 = math.tanh %403 : vector<8x64xf32>
    %cst_105 = arith.constant dense<0.000000e+00> : vector<8x32xf32>
    %405 = tpu.matmul %404, %1, %cst_105 {dimension_numbers = #tpu.dot_dimension_numbers<[1], [0], [0], [1], [0, 0, 1, 1], [], []>} : vector<8x64xf32>, vector<64x32xf32>, vector<8x32xf32> -> vector<8x32xf32>
    %406 = vector.broadcast %3 : vector<1x32xf32> to vector<8x32xf32>
    %407 = arith.addf %405, %406 : vector<8x32xf32>
    %cst_106 = arith.constant dense<0.000000e+00> : vector<8x64xf32>
    %408 = tpu.matmul %397, %0, %cst_106 {dimension_numbers = #tpu.dot_dimension_numbers<[1], [0], [0], [1], [0, 0, 1, 1], [], []>} : vector<8x32xf32>, vector<32x64xf32>, vector<8x64xf32> -> vector<8x64xf32>
    %409 = vector.broadcast %2 : vector<1x64xf32> to vector<8x64xf32>
    %410 = arith.addf %408, %409 : vector<8x64xf32>
    %411 = math.tanh %410 : vector<8x64xf32>
    %cst_107 = arith.constant dense<0.000000e+00> : vector<8x32xf32>
    %412 = tpu.matmul %411, %1, %cst_107 {dimension_numbers = #tpu.dot_dimension_numbers<[1], [0], [0], [1], [0, 0, 1, 1], [], []>} : vector<8x64xf32>, vector<64x32xf32>, vector<8x32xf32> -> vector<8x32xf32>
    %413 = vector.broadcast %3 : vector<1x32xf32> to vector<8x32xf32>
    %414 = arith.addf %412, %413 : vector<8x32xf32>
    %415 = vector.broadcast %399 : f32 to vector<8x32xf32>
    %416 = arith.mulf %415, %407 : vector<8x32xf32>
    %417 = arith.addf %393, %416 : vector<8x32xf32>
    %cst_108 = arith.constant dense<0.000000e+00> : vector<8x64xf32>
    %418 = tpu.matmul %417, %0, %cst_108 {dimension_numbers = #tpu.dot_dimension_numbers<[1], [0], [0], [1], [0, 0, 1, 1], [], []>} : vector<8x32xf32>, vector<32x64xf32>, vector<8x64xf32> -> vector<8x64xf32>
    %419 = vector.broadcast %2 : vector<1x64xf32> to vector<8x64xf32>
    %420 = arith.addf %418, %419 : vector<8x64xf32>
    %421 = math.tanh %420 : vector<8x64xf32>
    %cst_109 = arith.constant dense<0.000000e+00> : vector<8x32xf32>
    %422 = tpu.matmul %421, %1, %cst_109 {dimension_numbers = #tpu.dot_dimension_numbers<[1], [0], [0], [1], [0, 0, 1, 1], [], []>} : vector<8x64xf32>, vector<64x32xf32>, vector<8x32xf32> -> vector<8x32xf32>
    %423 = vector.broadcast %3 : vector<1x32xf32> to vector<8x32xf32>
    %424 = arith.addf %422, %423 : vector<8x32xf32>
    %425 = vector.broadcast %399 : f32 to vector<8x32xf32>
    %426 = arith.mulf %425, %414 : vector<8x32xf32>
    %427 = arith.addf %397, %426 : vector<8x32xf32>
    %cst_110 = arith.constant dense<0.000000e+00> : vector<8x64xf32>
    %428 = tpu.matmul %427, %0, %cst_110 {dimension_numbers = #tpu.dot_dimension_numbers<[1], [0], [0], [1], [0, 0, 1, 1], [], []>} : vector<8x32xf32>, vector<32x64xf32>, vector<8x64xf32> -> vector<8x64xf32>
    %429 = vector.broadcast %2 : vector<1x64xf32> to vector<8x64xf32>
    %430 = arith.addf %428, %429 : vector<8x64xf32>
    %431 = math.tanh %430 : vector<8x64xf32>
    %cst_111 = arith.constant dense<0.000000e+00> : vector<8x32xf32>
    %432 = tpu.matmul %431, %1, %cst_111 {dimension_numbers = #tpu.dot_dimension_numbers<[1], [0], [0], [1], [0, 0, 1, 1], [], []>} : vector<8x64xf32>, vector<64x32xf32>, vector<8x32xf32> -> vector<8x32xf32>
    %433 = vector.broadcast %3 : vector<1x32xf32> to vector<8x32xf32>
    %434 = arith.addf %432, %433 : vector<8x32xf32>
    %cst_112 = arith.constant 2.000000e+00 : f32
    %435 = vector.broadcast %cst_112 : f32 to vector<8x32xf32>
    %436 = arith.mulf %435, %424 : vector<8x32xf32>
    %437 = arith.addf %407, %436 : vector<8x32xf32>
    %cst_113 = arith.constant 2.000000e+00 : f32
    %438 = vector.broadcast %cst_113 : f32 to vector<8x32xf32>
    %439 = arith.mulf %438, %434 : vector<8x32xf32>
    %440 = arith.addf %414, %439 : vector<8x32xf32>
    %441 = vector.broadcast %399 : f32 to vector<8x32xf32>
    %442 = arith.mulf %441, %424 : vector<8x32xf32>
    %443 = arith.addf %393, %442 : vector<8x32xf32>
    %cst_114 = arith.constant dense<0.000000e+00> : vector<8x64xf32>
    %444 = tpu.matmul %443, %0, %cst_114 {dimension_numbers = #tpu.dot_dimension_numbers<[1], [0], [0], [1], [0, 0, 1, 1], [], []>} : vector<8x32xf32>, vector<32x64xf32>, vector<8x64xf32> -> vector<8x64xf32>
    %445 = vector.broadcast %2 : vector<1x64xf32> to vector<8x64xf32>
    %446 = arith.addf %444, %445 : vector<8x64xf32>
    %447 = math.tanh %446 : vector<8x64xf32>
    %cst_115 = arith.constant dense<0.000000e+00> : vector<8x32xf32>
    %448 = tpu.matmul %447, %1, %cst_115 {dimension_numbers = #tpu.dot_dimension_numbers<[1], [0], [0], [1], [0, 0, 1, 1], [], []>} : vector<8x64xf32>, vector<64x32xf32>, vector<8x32xf32> -> vector<8x32xf32>
    %449 = vector.broadcast %3 : vector<1x32xf32> to vector<8x32xf32>
    %450 = arith.addf %448, %449 : vector<8x32xf32>
    %451 = vector.broadcast %399 : f32 to vector<8x32xf32>
    %452 = arith.mulf %451, %434 : vector<8x32xf32>
    %453 = arith.addf %397, %452 : vector<8x32xf32>
    %cst_116 = arith.constant dense<0.000000e+00> : vector<8x64xf32>
    %454 = tpu.matmul %453, %0, %cst_116 {dimension_numbers = #tpu.dot_dimension_numbers<[1], [0], [0], [1], [0, 0, 1, 1], [], []>} : vector<8x32xf32>, vector<32x64xf32>, vector<8x64xf32> -> vector<8x64xf32>
    %455 = vector.broadcast %2 : vector<1x64xf32> to vector<8x64xf32>
    %456 = arith.addf %454, %455 : vector<8x64xf32>
    %457 = math.tanh %456 : vector<8x64xf32>
    %cst_117 = arith.constant dense<0.000000e+00> : vector<8x32xf32>
    %458 = tpu.matmul %457, %1, %cst_117 {dimension_numbers = #tpu.dot_dimension_numbers<[1], [0], [0], [1], [0, 0, 1, 1], [], []>} : vector<8x64xf32>, vector<64x32xf32>, vector<8x32xf32> -> vector<8x32xf32>
    %459 = vector.broadcast %3 : vector<1x32xf32> to vector<8x32xf32>
    %460 = arith.addf %458, %459 : vector<8x32xf32>
    %cst_118 = arith.constant 2.000000e+00 : f32
    %461 = vector.broadcast %cst_118 : f32 to vector<8x32xf32>
    %462 = arith.mulf %461, %450 : vector<8x32xf32>
    %463 = arith.addf %437, %462 : vector<8x32xf32>
    %cst_119 = arith.constant 2.000000e+00 : f32
    %464 = vector.broadcast %cst_119 : f32 to vector<8x32xf32>
    %465 = arith.mulf %464, %460 : vector<8x32xf32>
    %466 = arith.addf %440, %465 : vector<8x32xf32>
    %467 = vector.broadcast %398 : f32 to vector<8x32xf32>
    %468 = arith.mulf %467, %450 : vector<8x32xf32>
    %469 = arith.addf %393, %468 : vector<8x32xf32>
    %cst_120 = arith.constant dense<0.000000e+00> : vector<8x64xf32>
    %470 = tpu.matmul %469, %0, %cst_120 {dimension_numbers = #tpu.dot_dimension_numbers<[1], [0], [0], [1], [0, 0, 1, 1], [], []>} : vector<8x32xf32>, vector<32x64xf32>, vector<8x64xf32> -> vector<8x64xf32>
    %471 = vector.broadcast %2 : vector<1x64xf32> to vector<8x64xf32>
    %472 = arith.addf %470, %471 : vector<8x64xf32>
    %473 = math.tanh %472 : vector<8x64xf32>
    %cst_121 = arith.constant dense<0.000000e+00> : vector<8x32xf32>
    %474 = tpu.matmul %473, %1, %cst_121 {dimension_numbers = #tpu.dot_dimension_numbers<[1], [0], [0], [1], [0, 0, 1, 1], [], []>} : vector<8x64xf32>, vector<64x32xf32>, vector<8x32xf32> -> vector<8x32xf32>
    %475 = vector.broadcast %3 : vector<1x32xf32> to vector<8x32xf32>
    %476 = arith.addf %474, %475 : vector<8x32xf32>
    %477 = vector.broadcast %398 : f32 to vector<8x32xf32>
    %478 = arith.mulf %477, %460 : vector<8x32xf32>
    %479 = arith.addf %397, %478 : vector<8x32xf32>
    %cst_122 = arith.constant dense<0.000000e+00> : vector<8x64xf32>
    %480 = tpu.matmul %479, %0, %cst_122 {dimension_numbers = #tpu.dot_dimension_numbers<[1], [0], [0], [1], [0, 0, 1, 1], [], []>} : vector<8x32xf32>, vector<32x64xf32>, vector<8x64xf32> -> vector<8x64xf32>
    %481 = vector.broadcast %2 : vector<1x64xf32> to vector<8x64xf32>
    %482 = arith.addf %480, %481 : vector<8x64xf32>
    %483 = math.tanh %482 : vector<8x64xf32>
    %cst_123 = arith.constant dense<0.000000e+00> : vector<8x32xf32>
    %484 = tpu.matmul %483, %1, %cst_123 {dimension_numbers = #tpu.dot_dimension_numbers<[1], [0], [0], [1], [0, 0, 1, 1], [], []>} : vector<8x64xf32>, vector<64x32xf32>, vector<8x32xf32> -> vector<8x32xf32>
    %485 = vector.broadcast %3 : vector<1x32xf32> to vector<8x32xf32>
    %486 = arith.addf %484, %485 : vector<8x32xf32>
    %487 = arith.addf %463, %476 : vector<8x32xf32>
    %488 = vector.broadcast %400 : f32 to vector<8x32xf32>
    %489 = arith.mulf %488, %487 : vector<8x32xf32>
    %490 = arith.addf %393, %489 : vector<8x32xf32>
    %491 = arith.addf %466, %486 : vector<8x32xf32>
    %492 = vector.broadcast %400 : f32 to vector<8x32xf32>
    %493 = arith.mulf %492, %491 : vector<8x32xf32>
    %494 = arith.addf %397, %493 : vector<8x32xf32>
    %c5 = arith.constant 5 : index
    %495 = memref.load %arg1[%c5] : memref<7xf32, #tpu.memory_space<smem>>
    %c5_124 = arith.constant 5 : index
    %496 = memref.load %arg2[%c5_124] : memref<7xf32, #tpu.memory_space<smem>>
    %c5_125 = arith.constant 5 : index
    %497 = memref.load %arg3[%c5_125] : memref<7xf32, #tpu.memory_space<smem>>
    %cst_126 = arith.constant dense<0.000000e+00> : vector<8x64xf32>
    %498 = tpu.matmul %490, %0, %cst_126 {dimension_numbers = #tpu.dot_dimension_numbers<[1], [0], [0], [1], [0, 0, 1, 1], [], []>} : vector<8x32xf32>, vector<32x64xf32>, vector<8x64xf32> -> vector<8x64xf32>
    %499 = vector.broadcast %2 : vector<1x64xf32> to vector<8x64xf32>
    %500 = arith.addf %498, %499 : vector<8x64xf32>
    %501 = math.tanh %500 : vector<8x64xf32>
    %cst_127 = arith.constant dense<0.000000e+00> : vector<8x32xf32>
    %502 = tpu.matmul %501, %1, %cst_127 {dimension_numbers = #tpu.dot_dimension_numbers<[1], [0], [0], [1], [0, 0, 1, 1], [], []>} : vector<8x64xf32>, vector<64x32xf32>, vector<8x32xf32> -> vector<8x32xf32>
    %503 = vector.broadcast %3 : vector<1x32xf32> to vector<8x32xf32>
    %504 = arith.addf %502, %503 : vector<8x32xf32>
    %cst_128 = arith.constant dense<0.000000e+00> : vector<8x64xf32>
    %505 = tpu.matmul %494, %0, %cst_128 {dimension_numbers = #tpu.dot_dimension_numbers<[1], [0], [0], [1], [0, 0, 1, 1], [], []>} : vector<8x32xf32>, vector<32x64xf32>, vector<8x64xf32> -> vector<8x64xf32>
    %506 = vector.broadcast %2 : vector<1x64xf32> to vector<8x64xf32>
    %507 = arith.addf %505, %506 : vector<8x64xf32>
    %508 = math.tanh %507 : vector<8x64xf32>
    %cst_129 = arith.constant dense<0.000000e+00> : vector<8x32xf32>
    %509 = tpu.matmul %508, %1, %cst_129 {dimension_numbers = #tpu.dot_dimension_numbers<[1], [0], [0], [1], [0, 0, 1, 1], [], []>} : vector<8x64xf32>, vector<64x32xf32>, vector<8x32xf32> -> vector<8x32xf32>
    %510 = vector.broadcast %3 : vector<1x32xf32> to vector<8x32xf32>
    %511 = arith.addf %509, %510 : vector<8x32xf32>
    %512 = vector.broadcast %496 : f32 to vector<8x32xf32>
    %513 = arith.mulf %512, %504 : vector<8x32xf32>
    %514 = arith.addf %490, %513 : vector<8x32xf32>
    %cst_130 = arith.constant dense<0.000000e+00> : vector<8x64xf32>
    %515 = tpu.matmul %514, %0, %cst_130 {dimension_numbers = #tpu.dot_dimension_numbers<[1], [0], [0], [1], [0, 0, 1, 1], [], []>} : vector<8x32xf32>, vector<32x64xf32>, vector<8x64xf32> -> vector<8x64xf32>
    %516 = vector.broadcast %2 : vector<1x64xf32> to vector<8x64xf32>
    %517 = arith.addf %515, %516 : vector<8x64xf32>
    %518 = math.tanh %517 : vector<8x64xf32>
    %cst_131 = arith.constant dense<0.000000e+00> : vector<8x32xf32>
    %519 = tpu.matmul %518, %1, %cst_131 {dimension_numbers = #tpu.dot_dimension_numbers<[1], [0], [0], [1], [0, 0, 1, 1], [], []>} : vector<8x64xf32>, vector<64x32xf32>, vector<8x32xf32> -> vector<8x32xf32>
    %520 = vector.broadcast %3 : vector<1x32xf32> to vector<8x32xf32>
    %521 = arith.addf %519, %520 : vector<8x32xf32>
    %522 = vector.broadcast %496 : f32 to vector<8x32xf32>
    %523 = arith.mulf %522, %511 : vector<8x32xf32>
    %524 = arith.addf %494, %523 : vector<8x32xf32>
    %cst_132 = arith.constant dense<0.000000e+00> : vector<8x64xf32>
    %525 = tpu.matmul %524, %0, %cst_132 {dimension_numbers = #tpu.dot_dimension_numbers<[1], [0], [0], [1], [0, 0, 1, 1], [], []>} : vector<8x32xf32>, vector<32x64xf32>, vector<8x64xf32> -> vector<8x64xf32>
    %526 = vector.broadcast %2 : vector<1x64xf32> to vector<8x64xf32>
    %527 = arith.addf %525, %526 : vector<8x64xf32>
    %528 = math.tanh %527 : vector<8x64xf32>
    %cst_133 = arith.constant dense<0.000000e+00> : vector<8x32xf32>
    %529 = tpu.matmul %528, %1, %cst_133 {dimension_numbers = #tpu.dot_dimension_numbers<[1], [0], [0], [1], [0, 0, 1, 1], [], []>} : vector<8x64xf32>, vector<64x32xf32>, vector<8x32xf32> -> vector<8x32xf32>
    %530 = vector.broadcast %3 : vector<1x32xf32> to vector<8x32xf32>
    %531 = arith.addf %529, %530 : vector<8x32xf32>
    %cst_134 = arith.constant 2.000000e+00 : f32
    %532 = vector.broadcast %cst_134 : f32 to vector<8x32xf32>
    %533 = arith.mulf %532, %521 : vector<8x32xf32>
    %534 = arith.addf %504, %533 : vector<8x32xf32>
    %cst_135 = arith.constant 2.000000e+00 : f32
    %535 = vector.broadcast %cst_135 : f32 to vector<8x32xf32>
    %536 = arith.mulf %535, %531 : vector<8x32xf32>
    %537 = arith.addf %511, %536 : vector<8x32xf32>
    %538 = vector.broadcast %496 : f32 to vector<8x32xf32>
    %539 = arith.mulf %538, %521 : vector<8x32xf32>
    %540 = arith.addf %490, %539 : vector<8x32xf32>
    %cst_136 = arith.constant dense<0.000000e+00> : vector<8x64xf32>
    %541 = tpu.matmul %540, %0, %cst_136 {dimension_numbers = #tpu.dot_dimension_numbers<[1], [0], [0], [1], [0, 0, 1, 1], [], []>} : vector<8x32xf32>, vector<32x64xf32>, vector<8x64xf32> -> vector<8x64xf32>
    %542 = vector.broadcast %2 : vector<1x64xf32> to vector<8x64xf32>
    %543 = arith.addf %541, %542 : vector<8x64xf32>
    %544 = math.tanh %543 : vector<8x64xf32>
    %cst_137 = arith.constant dense<0.000000e+00> : vector<8x32xf32>
    %545 = tpu.matmul %544, %1, %cst_137 {dimension_numbers = #tpu.dot_dimension_numbers<[1], [0], [0], [1], [0, 0, 1, 1], [], []>} : vector<8x64xf32>, vector<64x32xf32>, vector<8x32xf32> -> vector<8x32xf32>
    %546 = vector.broadcast %3 : vector<1x32xf32> to vector<8x32xf32>
    %547 = arith.addf %545, %546 : vector<8x32xf32>
    %548 = vector.broadcast %496 : f32 to vector<8x32xf32>
    %549 = arith.mulf %548, %531 : vector<8x32xf32>
    %550 = arith.addf %494, %549 : vector<8x32xf32>
    %cst_138 = arith.constant dense<0.000000e+00> : vector<8x64xf32>
    %551 = tpu.matmul %550, %0, %cst_138 {dimension_numbers = #tpu.dot_dimension_numbers<[1], [0], [0], [1], [0, 0, 1, 1], [], []>} : vector<8x32xf32>, vector<32x64xf32>, vector<8x64xf32> -> vector<8x64xf32>
    %552 = vector.broadcast %2 : vector<1x64xf32> to vector<8x64xf32>
    %553 = arith.addf %551, %552 : vector<8x64xf32>
    %554 = math.tanh %553 : vector<8x64xf32>
    %cst_139 = arith.constant dense<0.000000e+00> : vector<8x32xf32>
    %555 = tpu.matmul %554, %1, %cst_139 {dimension_numbers = #tpu.dot_dimension_numbers<[1], [0], [0], [1], [0, 0, 1, 1], [], []>} : vector<8x64xf32>, vector<64x32xf32>, vector<8x32xf32> -> vector<8x32xf32>
    %556 = vector.broadcast %3 : vector<1x32xf32> to vector<8x32xf32>
    %557 = arith.addf %555, %556 : vector<8x32xf32>
    %cst_140 = arith.constant 2.000000e+00 : f32
    %558 = vector.broadcast %cst_140 : f32 to vector<8x32xf32>
    %559 = arith.mulf %558, %547 : vector<8x32xf32>
    %560 = arith.addf %534, %559 : vector<8x32xf32>
    %cst_141 = arith.constant 2.000000e+00 : f32
    %561 = vector.broadcast %cst_141 : f32 to vector<8x32xf32>
    %562 = arith.mulf %561, %557 : vector<8x32xf32>
    %563 = arith.addf %537, %562 : vector<8x32xf32>
    %564 = vector.broadcast %495 : f32 to vector<8x32xf32>
    %565 = arith.mulf %564, %547 : vector<8x32xf32>
    %566 = arith.addf %490, %565 : vector<8x32xf32>
    %cst_142 = arith.constant dense<0.000000e+00> : vector<8x64xf32>
    %567 = tpu.matmul %566, %0, %cst_142 {dimension_numbers = #tpu.dot_dimension_numbers<[1], [0], [0], [1], [0, 0, 1, 1], [], []>} : vector<8x32xf32>, vector<32x64xf32>, vector<8x64xf32> -> vector<8x64xf32>
    %568 = vector.broadcast %2 : vector<1x64xf32> to vector<8x64xf32>
    %569 = arith.addf %567, %568 : vector<8x64xf32>
    %570 = math.tanh %569 : vector<8x64xf32>
    %cst_143 = arith.constant dense<0.000000e+00> : vector<8x32xf32>
    %571 = tpu.matmul %570, %1, %cst_143 {dimension_numbers = #tpu.dot_dimension_numbers<[1], [0], [0], [1], [0, 0, 1, 1], [], []>} : vector<8x64xf32>, vector<64x32xf32>, vector<8x32xf32> -> vector<8x32xf32>
    %572 = vector.broadcast %3 : vector<1x32xf32> to vector<8x32xf32>
    %573 = arith.addf %571, %572 : vector<8x32xf32>
    %574 = vector.broadcast %495 : f32 to vector<8x32xf32>
    %575 = arith.mulf %574, %557 : vector<8x32xf32>
    %576 = arith.addf %494, %575 : vector<8x32xf32>
    %cst_144 = arith.constant dense<0.000000e+00> : vector<8x64xf32>
    %577 = tpu.matmul %576, %0, %cst_144 {dimension_numbers = #tpu.dot_dimension_numbers<[1], [0], [0], [1], [0, 0, 1, 1], [], []>} : vector<8x32xf32>, vector<32x64xf32>, vector<8x64xf32> -> vector<8x64xf32>
    %578 = vector.broadcast %2 : vector<1x64xf32> to vector<8x64xf32>
    %579 = arith.addf %577, %578 : vector<8x64xf32>
    %580 = math.tanh %579 : vector<8x64xf32>
    %cst_145 = arith.constant dense<0.000000e+00> : vector<8x32xf32>
    %581 = tpu.matmul %580, %1, %cst_145 {dimension_numbers = #tpu.dot_dimension_numbers<[1], [0], [0], [1], [0, 0, 1, 1], [], []>} : vector<8x64xf32>, vector<64x32xf32>, vector<8x32xf32> -> vector<8x32xf32>
    %582 = vector.broadcast %3 : vector<1x32xf32> to vector<8x32xf32>
    %583 = arith.addf %581, %582 : vector<8x32xf32>
    %584 = arith.addf %560, %573 : vector<8x32xf32>
    %585 = vector.broadcast %497 : f32 to vector<8x32xf32>
    %586 = arith.mulf %585, %584 : vector<8x32xf32>
    %587 = arith.addf %490, %586 : vector<8x32xf32>
    %588 = arith.addf %563, %583 : vector<8x32xf32>
    %589 = vector.broadcast %497 : f32 to vector<8x32xf32>
    %590 = arith.mulf %589, %588 : vector<8x32xf32>
    %591 = arith.addf %494, %590 : vector<8x32xf32>
    %c6 = arith.constant 6 : index
    %592 = memref.load %arg1[%c6] : memref<7xf32, #tpu.memory_space<smem>>
    %c6_146 = arith.constant 6 : index
    %593 = memref.load %arg2[%c6_146] : memref<7xf32, #tpu.memory_space<smem>>
    %c6_147 = arith.constant 6 : index
    %594 = memref.load %arg3[%c6_147] : memref<7xf32, #tpu.memory_space<smem>>
    %cst_148 = arith.constant dense<0.000000e+00> : vector<8x64xf32>
    %595 = tpu.matmul %587, %0, %cst_148 {dimension_numbers = #tpu.dot_dimension_numbers<[1], [0], [0], [1], [0, 0, 1, 1], [], []>} : vector<8x32xf32>, vector<32x64xf32>, vector<8x64xf32> -> vector<8x64xf32>
    %596 = vector.broadcast %2 : vector<1x64xf32> to vector<8x64xf32>
    %597 = arith.addf %595, %596 : vector<8x64xf32>
    %598 = math.tanh %597 : vector<8x64xf32>
    %cst_149 = arith.constant dense<0.000000e+00> : vector<8x32xf32>
    %599 = tpu.matmul %598, %1, %cst_149 {dimension_numbers = #tpu.dot_dimension_numbers<[1], [0], [0], [1], [0, 0, 1, 1], [], []>} : vector<8x64xf32>, vector<64x32xf32>, vector<8x32xf32> -> vector<8x32xf32>
    %600 = vector.broadcast %3 : vector<1x32xf32> to vector<8x32xf32>
    %601 = arith.addf %599, %600 : vector<8x32xf32>
    %cst_150 = arith.constant dense<0.000000e+00> : vector<8x64xf32>
    %602 = tpu.matmul %591, %0, %cst_150 {dimension_numbers = #tpu.dot_dimension_numbers<[1], [0], [0], [1], [0, 0, 1, 1], [], []>} : vector<8x32xf32>, vector<32x64xf32>, vector<8x64xf32> -> vector<8x64xf32>
    %603 = vector.broadcast %2 : vector<1x64xf32> to vector<8x64xf32>
    %604 = arith.addf %602, %603 : vector<8x64xf32>
    %605 = math.tanh %604 : vector<8x64xf32>
    %cst_151 = arith.constant dense<0.000000e+00> : vector<8x32xf32>
    %606 = tpu.matmul %605, %1, %cst_151 {dimension_numbers = #tpu.dot_dimension_numbers<[1], [0], [0], [1], [0, 0, 1, 1], [], []>} : vector<8x64xf32>, vector<64x32xf32>, vector<8x32xf32> -> vector<8x32xf32>
    %607 = vector.broadcast %3 : vector<1x32xf32> to vector<8x32xf32>
    %608 = arith.addf %606, %607 : vector<8x32xf32>
    %609 = vector.broadcast %593 : f32 to vector<8x32xf32>
    %610 = arith.mulf %609, %601 : vector<8x32xf32>
    %611 = arith.addf %587, %610 : vector<8x32xf32>
    %cst_152 = arith.constant dense<0.000000e+00> : vector<8x64xf32>
    %612 = tpu.matmul %611, %0, %cst_152 {dimension_numbers = #tpu.dot_dimension_numbers<[1], [0], [0], [1], [0, 0, 1, 1], [], []>} : vector<8x32xf32>, vector<32x64xf32>, vector<8x64xf32> -> vector<8x64xf32>
    %613 = vector.broadcast %2 : vector<1x64xf32> to vector<8x64xf32>
    %614 = arith.addf %612, %613 : vector<8x64xf32>
    %615 = math.tanh %614 : vector<8x64xf32>
    %cst_153 = arith.constant dense<0.000000e+00> : vector<8x32xf32>
    %616 = tpu.matmul %615, %1, %cst_153 {dimension_numbers = #tpu.dot_dimension_numbers<[1], [0], [0], [1], [0, 0, 1, 1], [], []>} : vector<8x64xf32>, vector<64x32xf32>, vector<8x32xf32> -> vector<8x32xf32>
    %617 = vector.broadcast %3 : vector<1x32xf32> to vector<8x32xf32>
    %618 = arith.addf %616, %617 : vector<8x32xf32>
    %619 = vector.broadcast %593 : f32 to vector<8x32xf32>
    %620 = arith.mulf %619, %608 : vector<8x32xf32>
    %621 = arith.addf %591, %620 : vector<8x32xf32>
    %cst_154 = arith.constant dense<0.000000e+00> : vector<8x64xf32>
    %622 = tpu.matmul %621, %0, %cst_154 {dimension_numbers = #tpu.dot_dimension_numbers<[1], [0], [0], [1], [0, 0, 1, 1], [], []>} : vector<8x32xf32>, vector<32x64xf32>, vector<8x64xf32> -> vector<8x64xf32>
    %623 = vector.broadcast %2 : vector<1x64xf32> to vector<8x64xf32>
    %624 = arith.addf %622, %623 : vector<8x64xf32>
    %625 = math.tanh %624 : vector<8x64xf32>
    %cst_155 = arith.constant dense<0.000000e+00> : vector<8x32xf32>
    %626 = tpu.matmul %625, %1, %cst_155 {dimension_numbers = #tpu.dot_dimension_numbers<[1], [0], [0], [1], [0, 0, 1, 1], [], []>} : vector<8x64xf32>, vector<64x32xf32>, vector<8x32xf32> -> vector<8x32xf32>
    %627 = vector.broadcast %3 : vector<1x32xf32> to vector<8x32xf32>
    %628 = arith.addf %626, %627 : vector<8x32xf32>
    %cst_156 = arith.constant 2.000000e+00 : f32
    %629 = vector.broadcast %cst_156 : f32 to vector<8x32xf32>
    %630 = arith.mulf %629, %618 : vector<8x32xf32>
    %631 = arith.addf %601, %630 : vector<8x32xf32>
    %cst_157 = arith.constant 2.000000e+00 : f32
    %632 = vector.broadcast %cst_157 : f32 to vector<8x32xf32>
    %633 = arith.mulf %632, %628 : vector<8x32xf32>
    %634 = arith.addf %608, %633 : vector<8x32xf32>
    %635 = vector.broadcast %593 : f32 to vector<8x32xf32>
    %636 = arith.mulf %635, %618 : vector<8x32xf32>
    %637 = arith.addf %587, %636 : vector<8x32xf32>
    %cst_158 = arith.constant dense<0.000000e+00> : vector<8x64xf32>
    %638 = tpu.matmul %637, %0, %cst_158 {dimension_numbers = #tpu.dot_dimension_numbers<[1], [0], [0], [1], [0, 0, 1, 1], [], []>} : vector<8x32xf32>, vector<32x64xf32>, vector<8x64xf32> -> vector<8x64xf32>
    %639 = vector.broadcast %2 : vector<1x64xf32> to vector<8x64xf32>
    %640 = arith.addf %638, %639 : vector<8x64xf32>
    %641 = math.tanh %640 : vector<8x64xf32>
    %cst_159 = arith.constant dense<0.000000e+00> : vector<8x32xf32>
    %642 = tpu.matmul %641, %1, %cst_159 {dimension_numbers = #tpu.dot_dimension_numbers<[1], [0], [0], [1], [0, 0, 1, 1], [], []>} : vector<8x64xf32>, vector<64x32xf32>, vector<8x32xf32> -> vector<8x32xf32>
    %643 = vector.broadcast %3 : vector<1x32xf32> to vector<8x32xf32>
    %644 = arith.addf %642, %643 : vector<8x32xf32>
    %645 = vector.broadcast %593 : f32 to vector<8x32xf32>
    %646 = arith.mulf %645, %628 : vector<8x32xf32>
    %647 = arith.addf %591, %646 : vector<8x32xf32>
    %cst_160 = arith.constant dense<0.000000e+00> : vector<8x64xf32>
    %648 = tpu.matmul %647, %0, %cst_160 {dimension_numbers = #tpu.dot_dimension_numbers<[1], [0], [0], [1], [0, 0, 1, 1], [], []>} : vector<8x32xf32>, vector<32x64xf32>, vector<8x64xf32> -> vector<8x64xf32>
    %649 = vector.broadcast %2 : vector<1x64xf32> to vector<8x64xf32>
    %650 = arith.addf %648, %649 : vector<8x64xf32>
    %651 = math.tanh %650 : vector<8x64xf32>
    %cst_161 = arith.constant dense<0.000000e+00> : vector<8x32xf32>
    %652 = tpu.matmul %651, %1, %cst_161 {dimension_numbers = #tpu.dot_dimension_numbers<[1], [0], [0], [1], [0, 0, 1, 1], [], []>} : vector<8x64xf32>, vector<64x32xf32>, vector<8x32xf32> -> vector<8x32xf32>
    %653 = vector.broadcast %3 : vector<1x32xf32> to vector<8x32xf32>
    %654 = arith.addf %652, %653 : vector<8x32xf32>
    %cst_162 = arith.constant 2.000000e+00 : f32
    %655 = vector.broadcast %cst_162 : f32 to vector<8x32xf32>
    %656 = arith.mulf %655, %644 : vector<8x32xf32>
    %657 = arith.addf %631, %656 : vector<8x32xf32>
    %cst_163 = arith.constant 2.000000e+00 : f32
    %658 = vector.broadcast %cst_163 : f32 to vector<8x32xf32>
    %659 = arith.mulf %658, %654 : vector<8x32xf32>
    %660 = arith.addf %634, %659 : vector<8x32xf32>
    %661 = vector.broadcast %592 : f32 to vector<8x32xf32>
    %662 = arith.mulf %661, %644 : vector<8x32xf32>
    %663 = arith.addf %587, %662 : vector<8x32xf32>
    %cst_164 = arith.constant dense<0.000000e+00> : vector<8x64xf32>
    %664 = tpu.matmul %663, %0, %cst_164 {dimension_numbers = #tpu.dot_dimension_numbers<[1], [0], [0], [1], [0, 0, 1, 1], [], []>} : vector<8x32xf32>, vector<32x64xf32>, vector<8x64xf32> -> vector<8x64xf32>
    %665 = vector.broadcast %2 : vector<1x64xf32> to vector<8x64xf32>
    %666 = arith.addf %664, %665 : vector<8x64xf32>
    %667 = math.tanh %666 : vector<8x64xf32>
    %cst_165 = arith.constant dense<0.000000e+00> : vector<8x32xf32>
    %668 = tpu.matmul %667, %1, %cst_165 {dimension_numbers = #tpu.dot_dimension_numbers<[1], [0], [0], [1], [0, 0, 1, 1], [], []>} : vector<8x64xf32>, vector<64x32xf32>, vector<8x32xf32> -> vector<8x32xf32>
    %669 = vector.broadcast %3 : vector<1x32xf32> to vector<8x32xf32>
    %670 = arith.addf %668, %669 : vector<8x32xf32>
    %671 = vector.broadcast %592 : f32 to vector<8x32xf32>
    %672 = arith.mulf %671, %654 : vector<8x32xf32>
    %673 = arith.addf %591, %672 : vector<8x32xf32>
    %cst_166 = arith.constant dense<0.000000e+00> : vector<8x64xf32>
    %674 = tpu.matmul %673, %0, %cst_166 {dimension_numbers = #tpu.dot_dimension_numbers<[1], [0], [0], [1], [0, 0, 1, 1], [], []>} : vector<8x32xf32>, vector<32x64xf32>, vector<8x64xf32> -> vector<8x64xf32>
    %675 = vector.broadcast %2 : vector<1x64xf32> to vector<8x64xf32>
    %676 = arith.addf %674, %675 : vector<8x64xf32>
    %677 = math.tanh %676 : vector<8x64xf32>
    %cst_167 = arith.constant dense<0.000000e+00> : vector<8x32xf32>
    %678 = tpu.matmul %677, %1, %cst_167 {dimension_numbers = #tpu.dot_dimension_numbers<[1], [0], [0], [1], [0, 0, 1, 1], [], []>} : vector<8x64xf32>, vector<64x32xf32>, vector<8x32xf32> -> vector<8x32xf32>
    %679 = vector.broadcast %3 : vector<1x32xf32> to vector<8x32xf32>
    %680 = arith.addf %678, %679 : vector<8x32xf32>
    %681 = arith.addf %657, %670 : vector<8x32xf32>
    %682 = vector.broadcast %594 : f32 to vector<8x32xf32>
    %683 = arith.mulf %682, %681 : vector<8x32xf32>
    %684 = arith.addf %587, %683 : vector<8x32xf32>
    %685 = arith.addf %660, %680 : vector<8x32xf32>
    %686 = vector.broadcast %594 : f32 to vector<8x32xf32>
    %687 = arith.mulf %686, %685 : vector<8x32xf32>
    %688 = arith.addf %591, %687 : vector<8x32xf32>
    %689 = tpu.concatenate %393, %490, %587, %684 in 1 : vector<8x32xf32>, vector<8x32xf32>, vector<8x32xf32>, vector<8x32xf32> -> vector<8x128xf32>
    %c0_168 = arith.constant 0 : index
    %c128 = arith.constant 128 : index
    %690 = vector.load %arg9[%c0_168, %c128] : memref<16x256xf32, #tpu.memory_space<vmem>>, vector<8x128xf32>
    tpu.vector_store %arg9[%c0_168, %c128], %689 {strides = array<i32>} : memref<16x256xf32, #tpu.memory_space<vmem>>, vector<8x128xf32>,
    %691 = tpu.concatenate %397, %494, %591, %688 in 1 : vector<8x32xf32>, vector<8x32xf32>, vector<8x32xf32>, vector<8x32xf32> -> vector<8x128xf32>
    %c8_169 = arith.constant 8 : index
    %c128_170 = arith.constant 128 : index
    %692 = vector.load %arg9[%c8_169, %c128_170] : memref<16x256xf32, #tpu.memory_space<vmem>>, vector<8x128xf32>
    tpu.vector_store %arg9[%c8_169, %c128_170], %691 {strides = array<i32>} : memref<16x256xf32, #tpu.memory_space<vmem>>, vector<8x128xf32>,
    return
  }
  func.func @transform_0(%arg0: i32) -> i32 {
    %c0_i32 = arith.constant 0 : i32
    %c0_i32_0 = arith.constant 0 : i32
    return %c0_i32 : i32
  }
  func.func @transform_1(%arg0: i32) -> i32 {
    %c0_i32 = arith.constant 0 : i32
    %c0_i32_0 = arith.constant 0 : i32
    return %c0_i32 : i32
  }
  func.func @transform_2(%arg0: i32) -> i32 {
    %c0_i32 = arith.constant 0 : i32
    %c0_i32_0 = arith.constant 0 : i32
    return %c0_i32 : i32
  }
  func.func @transform_3(%arg0: i32) -> (i32, i32) {
    %c0_i32 = arith.constant 0 : i32
    %c0_i32_0 = arith.constant 0 : i32
    return %arg0, %c0_i32 : i32, i32
  }
  func.func @transform_4(%arg0: i32) -> (i32, i32) {
    %c0_i32 = arith.constant 0 : i32
    %c0_i32_0 = arith.constant 0 : i32
    %c0_i32_1 = arith.constant 0 : i32
    return %c0_i32, %c0_i32_0 : i32, i32
  }
  func.func @transform_5(%arg0: i32) -> (i32, i32) {
    %c0_i32 = arith.constant 0 : i32
    %c0_i32_0 = arith.constant 0 : i32
    %c0_i32_1 = arith.constant 0 : i32
    return %c0_i32, %c0_i32_0 : i32, i32
  }
  func.func @transform_6(%arg0: i32) -> (i32, i32) {
    %c0_i32 = arith.constant 0 : i32
    %c0_i32_0 = arith.constant 0 : i32
    %c0_i32_1 = arith.constant 0 : i32
    return %c0_i32, %c0_i32_0 : i32, i32
  }
  func.func @transform_7(%arg0: i32) -> (i32, i32) {
    %c0_i32 = arith.constant 0 : i32
    %c0_i32_0 = arith.constant 0 : i32
    %c0_i32_1 = arith.constant 0 : i32
    return %c0_i32, %c0_i32_0 : i32, i32
  }
  func.func @transform_8(%arg0: i32) -> (i32, i32) {
    %c0_i32 = arith.constant 0 : i32
    %c0_i32_0 = arith.constant 0 : i32
    return %arg0, %c0_i32 : i32, i32
  }
}

</mosaic_0001>

<bundles_post_ra>
// kernel: _solve_flat.1
= control target key start
LH: loop header
LB: loop body
LE: loop exit
PB: predicated region body
PF: predicated region fallthrough
CT: control target
= control target key end

     0   :  { %13 = vsyncpa [#allocation3], 0  ;;  %s13860_s0 = inlined_call_operand.vmem [shape: f32[7], index: 0, kind: input, shape index: {}]   ;;  %s13861_s1 = inlined_call_operand.vmem [shape: f32[7], index: 1, kind: input, shape index: {}]   ;;  %s13862_s2 = inlined_call_operand.vmem [shape: f32[7], index: 2, kind: input, shape index: {}]   ;;  %s13863_s3 = inlined_call_operand.vmem [shape: f32[16,32], index: 3, kind: input, shape index: {}]   ;;  %s13864_s4 = inlined_call_operand.vmem [shape: f32[32,64], index: 4, kind: input, shape index: {}]   ;;  %s13865_s5 = inlined_call_operand.vmem [shape: f32[1,64], index: 5, kind: input, shape index: {}]   ;;  %s13866_s6 = inlined_call_operand.vmem [shape: f32[64,32], index: 6, kind: input, shape index: {}]   ;;  %s13867_s7 = inlined_call_operand.vmem [shape: f32[1,32], index: 7, kind: input, shape index: {}]   ;;  %s13868_s8 = inlined_call_operand.vmem [shape: f32[16,256], index: 8, kind: output, shape index: {}]  }
   0x1   :  { %14 = vsyncpa [#allocation5], 0  ;;  %s31_s29 = sshll.u32 %s13861_s1, 4  ;;  %s21_s10 = sshll.u32 %s13860_s0, 4  ;;  %s32_s29 = int_to_ptr.vmem [resolvable:$true] %s31_s29  ;;  %s22_s10 = int_to_ptr.vmem [resolvable:$true] %s21_s10 }
   0x2   :  { %s12344_s11 = scalar_lea.vmem %s32_s29, 16  ;;  %p12349_p1 = scmp.lt.s32.totalorder %s32_s29, %s32_s29 }
   0x3   :  { %p12345_p0 = scmp.ne.s32.totalorder %s32_s29, %s12344_s11  ;;  %p12350_p2 = scmp.lt.s32.totalorder %s12344_s11, %s12344_s11 }
   0x5   :  { %p12351_p3 = por %p12350_p2, %p12349_p1 }
   0x7   :  { %p12352_p4 = pnand %p12351_p3, %p12345_p0 }
   0x9   :  { %12355 = shalt.err (!%p12352_p4)
}
   0xa   :  { %s12384_s12 = smov [#allocation4]   ;;  %s12356_s13 = scalar_lea.vmem %s22_s10, 16 }
   0xb   :  { %34 = dma.vmem_to_smem %s32_s29, 16, %s12384_s12, [#allocation5]  }
   0xc   :  { %p12357_p5 = scmp.ne.s32.totalorder %s22_s10, %s12356_s13  ;;  %p12361_p6 = scmp.lt.s32.totalorder %s22_s10, %s22_s10 }
   0xd   :  { %p12362_p7 = scmp.lt.s32.totalorder %s12356_s13, %s12356_s13 }
   0xf   :  { %p12363_p8 = por %p12362_p7, %p12361_p6 }
  0x11   :  { %p12364_p9 = pnand %p12363_p8, %p12357_p5 }
  0x13   :  { %12367 = shalt.err (!%p12364_p9)
}
  0x14   :  { %s12385_s1 = smov [#allocation2]   ;;  %s41_s15 = sshll.u32 %s13862_s2, 4  ;;  %s42_s15 = int_to_ptr.vmem [resolvable:$true] %s41_s15 }
  0x15   :  { %24 = dma.vmem_to_smem %s22_s10, 16, %s12385_s1, [#allocation3]  }
  0x16   :  { %s12368_s16 = scalar_lea.vmem %s42_s15, 16  ;;  %p12373_p11 = scmp.lt.s32.totalorder %s42_s15, %s42_s15 }
  0x17   :  { %p12369_p10 = scmp.ne.s32.totalorder %s42_s15, %s12368_s16  ;;  %p12374_p12 = scmp.lt.s32.totalorder %s12368_s16, %s12368_s16 }
  0x19   :  { %p12375_p13 = por %p12374_p12, %p12373_p11 }
  0x1b   :  { %p12376_p0 = pnand %p12375_p13, %p12369_p10 }
  0x1d   :  { %12379 = shalt.err (!%p12376_p0)
}
  0x1e   :  { %s12386_s17 = smov [#allocation6]  }
  0x1f   :  { %44 = dma.vmem_to_smem %s42_s15, 16, %s12386_s17, [#allocation5]  }
  0x20   :  { %12380 = dma.done.wait [#allocation3], 16  }
  0x21   :  { %12381 = vsyncadd [#allocation3], 4294967280 }
  0x22   :  { %12382 = dma.done.wait [#allocation5], 32  }
  0x23   :  { %12383 = vsyncadd [#allocation5], 4294967264 }
  0x24   :  { %64 = sfence }
  0x25   :  { %v65_v0 = vld [vmem:[%s13864_s4] sm:$0xff]  ;;  %v66_v1 = vld [vmem:[%s13864_s4 + $0x8] sm:$0xff]  ;;  %v67_v2 = vld [vmem:[%s13864_s4 + $0x10] sm:$0xff]  ;;  %v12387_v3 = vmov 0.0|0.0   ;;  %vm12388_vm0 = vmmov 0   ;;  %v12389_v6 = vmov 0.0  }
  0x26   :  { %11208 = vmatprep.subr.bf16.mxu1 %v12387_v3  ;;  %11226 = vmatprep.subr.bf16.mxu0 %v12387_v3  ;;  %v12458_v4 = vpack.c.bf16 %v66_v1, %v65_v0  ;;  %v68_v5 = vld [vmem:[%s13864_s4 + $0x18] sm:$0xff]  ;;  %v69_v8 = vld [vmem:[%s13866_s6] sm:$0xff]  ;;  %v70_v9 = vld [vmem:[%s13866_s6 + $0x8] sm:$0xff]  ;;  %vm90_vm1 = vcmask 261120   ;;  %vm171_vm2 = vcmask 523264   ;;  %s82_s20 = sld [smem:[#allocation4]] }
  0x27   :  { %9536 = vmatprep.mubr.msk.f32.mxu1 %vm12388_vm0, %v12389_v6  ;;  %9566 = vmatprep.mubr.msk.f32.mxu0 %vm12388_vm0, %v12389_v6  ;;  %v12469_v7 = vpack.c.bf16 %v68_v5, %v67_v2  ;;  %v12484_v10 = vld [vmem:[%s13863_s3] sm:$0xff]  ;;  %v12489_v11 = vld [vmem:[%s13863_s3 + $0x8] sm:$0xff]  ;;  %v12491_v12 = vpack.c.bf16 %v70_v9, %v69_v8  ;;  %v71_v13 = vld [vmem:[%s13866_s6 + $0x10] sm:$0xff]  ;;  %s81_s23 = sld [smem:[#allocation2]]  ;;  %s12390_s25 = smov 32   ;;  %vm3731_vm3 = vcmask 785408  }
  0x28   :  { %11210 = vmatpush3.bf16.msra.mxu1 %v12458_v4  ;;  %11228 = vmatpush3.bf16.msra.mxu0 %v12458_v4  ;;  %v72_v14 = vld [vmem:[%s13866_s6 + $0x18] sm:$0xff]  ;;  %v73_v16 = vld [vmem:[%s13866_s6 + $0x20] sm:$0xff]  ;;  %v74_v17 = vld [vmem:[%s13866_s6 + $0x28] sm:$0xff]  ;;  %s83_s24 = sld [smem:[#allocation6]]  ;;  %s8631_s4 = sld [smem:[#allocation4 + $0x1]] }
  0x29   :  { %11211 = vmatprep.subr.bf16.mxu1 %v12387_v3  ;;  %11229 = vmatprep.subr.bf16.mxu0 %v12387_v3  ;;  %v12513_v15 = vpack.c.bf16 %v72_v14, %v71_v13  ;;  %v12525_v18 = vpack.c.bf16 %v74_v17, %v73_v16  ;;  %v75_v19 = vld [vmem:[%s13866_s6 + $0x30] sm:$0xff]  ;;  %v76_v20 = vld [vmem:[%s13866_s6 + $0x38] sm:$0xff]  ;;  %v12546_v22 = vld [vmem:[%s13865_s5] ss:$0 sm:$0xff]  ;;  %s8630_s26 = sld [smem:[#allocation2 + $0x1]]  ;;  %s12391_s28 = smov 64  }
  0x2a   :  { %v12535_v21 = vpack.c.bf16 %v76_v20, %v75_v19  ;;  %v12567_v31 = vld [vmem:[%s13867_s7] ss:$0 sm:$0xff]  ;;  %s8632_s27 = sld [smem:[#allocation6 + $0x1]]  ;;  %s8650_s29 = sld [smem:[#allocation4 + $0x2]] }
  0x2b   :  { %s8649_s12 = sld [smem:[#allocation2 + $0x2]]  ;;  %s12392_s1 = smov 96  }
  0x2c   :  { %11213 = vmatpush3.bf16.msra.mxu1 %v12469_v7  ;;  %11231 = vmatpush3.bf16.msra.mxu0 %v12469_v7  ;;  %v392_v33 = vstv %s82_s20  ;;  %s8651_s13 = sld [smem:[#allocation6 + $0x2]]  ;;  %s8668_s6 = sld [smem:[#allocation2 + $0x3]] }
  0x2d   :  { %11214 = vmatprep.subr.bf16.mxu1 %v12387_v3  ;;  %11232 = vmatprep.subr.bf16.mxu0 %v12387_v3  ;;  %v997_v16 = vstv %s81_s23  ;;  %s8670_s20 = sld [smem:[#allocation6 + $0x3]]  ;;  %s8688_s21 = sld [smem:[#allocation4 + $0x4]] }
  0x2e   :  { %s8725_s30 = sld [smem:[#allocation2 + $0x6]] }
  0x2f   :  { %9537 = vmatmul.mubr.msk.f32.vlgmr.msra.gmra.mrb[0].mxu1 %vm90_vm1, %v12484_v10  ;;  %9567 = vmatmul.mubr.msk.f32.vlgmr.msra.gmra.mrb[0].mxu0 %vm90_vm1, %v12489_v11  ;;  %s8727_s11 = sld [smem:[#allocation6 + $0x6]] }
  0x30   :  { %11216 = vmatpush3.bf16.msra.mxu1 %v12491_v12  ;;  %11234 = vmatpush3.bf16.msra.mxu0 %v12491_v12 }
  0x31   :  { %11217 = vmatprep.subr.bf16.mxu1 %v12387_v3  ;;  %11235 = vmatprep.subr.bf16.mxu0 %v12387_v3 }
  0x32   :  { %9555 = vmatprep.mubr.msk.f32.mxu1 %vm12388_vm0, %v12389_v6  ;;  %9585 = vmatprep.mubr.msk.f32.mxu0 %vm12388_vm0, %v12389_v6 }
  0x34   :  { %11219 = vmatpush3.bf16.msra.mxu1 %v12513_v15  ;;  %11237 = vmatpush3.bf16.msra.mxu0 %v12513_v15 }
  0x35   :  { %11220 = vmatprep.subr.bf16.mxu1 %v12387_v3  ;;  %11238 = vmatprep.subr.bf16.mxu0 %v12387_v3 }
  0x38   :  { %11222 = vmatpush3.bf16.msra.mxu1 %v12525_v18  ;;  %11240 = vmatpush3.bf16.msra.mxu0 %v12525_v18 }
  0x39   :  { %11223 = vmatprep.subr.bf16.mxu1 %v12387_v3  ;;  %11241 = vmatprep.subr.bf16.mxu0 %v12387_v3 }
  0x3c   :  { %11225 = vmatpush3.bf16.msra.mxu1 %v12535_v21  ;;  %11243 = vmatpush3.bf16.msra.mxu0 %v12535_v21 }
  0x3d   :  { %11244 = vmatprep.subr.bf16.mxu1 %v12387_v3  ;;  %11262 = vmatprep.subr.bf16.mxu0 %v12387_v3 }
 0x102   :  { %v160_v23 = vpop.f32.mrb[0].mxu1  ;;  %v314_v24 = vpop.f32.mrb[0].mxu0 }
 0x103   :  { %v161_v25 = vadd.f32 %v12546_v22, %v160_v23  ;;  %v315_v26 = vadd.f32 %v12546_v22, %v314_v24  ;;  %v9538_v27 = vpop.f32.mrb[1].mxu1  ;;  %v9568_v28 = vpop.f32.mrb[1].mxu0 }
 0x105   :  { %12225 = vtanh.f32 %v161_v25 }
 0x106   :  { %12227 = vtanh.f32 %v315_v26 }
 0x10f   :  { %v12226_v29 = vpop.eup %12225 }
 0x110   :  { %v12228_v30 = vpop.eup %12227  ;;  %9556 = vmatmul.mubr.msk.f32.vlgmr.msra.gmra.mrb[2].mxu1 %vm171_vm2, %v12226_v29 }
 0x111   :  { %9586 = vmatmul.mubr.msk.f32.vlgmr.msra.gmra.mrb[2].mxu0 %vm171_vm2, %v12228_v30  ;;  %11246 = vmatpush3.bf16.msra.mxu1 %v12458_v4 }
 0x112   :  { %11264 = vmatpush3.bf16.msra.mxu0 %v12458_v4  ;;  %11247 = vmatprep.subr.bf16.mxu1 %v12387_v3 }
 0x113   :  { %11265 = vmatprep.subr.bf16.mxu0 %v12387_v3  ;;  %9596 = vmatprep.mubr.msk.f32.mxu1 %vm12388_vm0, %v12389_v6 }
 0x114   :  { %9626 = vmatprep.mubr.msk.f32.mxu0 %vm12388_vm0, %v12389_v6 }
 0x115   :  { %11249 = vmatpush3.bf16.msra.mxu1 %v12469_v7 }
 0x116   :  { %11267 = vmatpush3.bf16.msra.mxu0 %v12469_v7  ;;  %11250 = vmatprep.subr.bf16.mxu1 %v12387_v3 }
 0x117   :  { %11268 = vmatprep.subr.bf16.mxu0 %v12387_v3 }
 0x1e3   :  { %v241_v32 = vpop.f32.mrb[2].mxu1 }
 0x1e4   :  { %v12570_v34 = vadd.f32 %v12567_v31, %v241_v32  ;;  %v388_v35 = vpop.f32.mrb[2].mxu0  ;;  %v9557_v36 = vpop.f32.mrb[3].mxu1 }
 0x1e5   :  { %v12573_v37 = vadd.f32 %v12567_v31, %v388_v35  ;;  %v9587_v38 = vpop.f32.mrb[3].mxu0 }
 0x1e6   :  { %v393_v39 = vmul.f32 %v392_v33, %v12570_v34 }
 0x1e7   :  { %v542_v40 = vmul.f32 %v392_v33, %v12573_v37 }
 0x1e8   :  { %v394_v41 = vadd.f32 %v393_v39, %v12484_v10 }
 0x1e9   :  { %v543_v42 = vadd.f32 %v542_v40, %v12489_v11 }
 0x1ea   :  { %9597 = vmatmul.mubr.msk.f32.vlgmr.msra.gmra.mrb[4].mxu1 %vm90_vm1, %v394_v41 }
 0x1eb   :  { %9627 = vmatmul.mubr.msk.f32.vlgmr.msra.gmra.mrb[4].mxu0 %vm90_vm1, %v543_v42  ;;  %11252 = vmatpush3.bf16.msra.mxu1 %v12491_v12 }
 0x1ec   :  { %11270 = vmatpush3.bf16.msra.mxu0 %v12491_v12  ;;  %11253 = vmatprep.subr.bf16.mxu1 %v12387_v3 }
 0x1ed   :  { %11271 = vmatprep.subr.bf16.mxu0 %v12387_v3  ;;  %9615 = vmatprep.mubr.msk.f32.mxu1 %vm12388_vm0, %v12389_v6 }
 0x1ee   :  { %9645 = vmatprep.mubr.msk.f32.mxu0 %vm12388_vm0, %v12389_v6 }
 0x1ef   :  { %11255 = vmatpush3.bf16.msra.mxu1 %v12513_v15 }
 0x1f0   :  { %11273 = vmatpush3.bf16.msra.mxu0 %v12513_v15  ;;  %11256 = vmatprep.subr.bf16.mxu1 %v12387_v3 }
 0x1f1   :  { %11274 = vmatprep.subr.bf16.mxu0 %v12387_v3 }
 0x1f3   :  { %11258 = vmatpush3.bf16.msra.mxu1 %v12525_v18 }
 0x1f4   :  { %11276 = vmatpush3.bf16.msra.mxu0 %v12525_v18  ;;  %11259 = vmatprep.subr.bf16.mxu1 %v12387_v3 }
 0x1f5   :  { %11277 = vmatprep.subr.bf16.mxu0 %v12387_v3 }
 0x1f7   :  { %11261 = vmatpush3.bf16.msra.mxu1 %v12535_v21 }
 0x1f8   :  { %11279 = vmatpush3.bf16.msra.mxu0 %v12535_v21  ;;  %11280 = vmatprep.subr.bf16.mxu1 %v12387_v3 }
 0x1f9   :  { %11298 = vmatprep.subr.bf16.mxu0 %v12387_v3 }
 0x2bd   :  { %v464_v43 = vpop.f32.mrb[4].mxu1 }
 0x2be   :  { %v465_v44 = vadd.f32 %v12546_v22, %v464_v43  ;;  %v613_v45 = vpop.f32.mrb[4].mxu0  ;;  %v9598_v46 = vpop.f32.mrb[5].mxu1 }
 0x2bf   :  { %v614_v47 = vadd.f32 %v12546_v22, %v613_v45  ;;  %v9628_v48 = vpop.f32.mrb[5].mxu0 }
 0x2c0   :  { %12229 = vtanh.f32 %v465_v44  ;;  %v1297_v48 = vstv %s83_s24  ;;  %s8687_s24 = sld [smem:[#allocation2 + $0x4]] }
 0x2c1   :  { %12231 = vtanh.f32 %v614_v47 }
 0x2ca   :  { %v12230_v49 = vpop.eup %12229 }
 0x2cb   :  { %v12232_v50 = vpop.eup %12231  ;;  %9616 = vmatmul.mubr.msk.f32.vlgmr.msra.gmra.mrb[6].mxu1 %vm171_vm2, %v12230_v49 }
 0x2cc   :  { %9646 = vmatmul.mubr.msk.f32.vlgmr.msra.gmra.mrb[6].mxu0 %vm171_vm2, %v12232_v50  ;;  %11282 = vmatpush3.bf16.msra.mxu1 %v12458_v4 }
 0x2cd   :  { %11300 = vmatpush3.bf16.msra.mxu0 %v12458_v4  ;;  %11283 = vmatprep.subr.bf16.mxu1 %v12387_v3 }
 0x2ce   :  { %11301 = vmatprep.subr.bf16.mxu0 %v12387_v3  ;;  %9656 = vmatprep.mubr.msk.f32.mxu1 %vm12388_vm0, %v12389_v6 }
 0x2cf   :  { %9686 = vmatprep.mubr.msk.f32.mxu0 %vm12388_vm0, %v12389_v6 }
 0x2d0   :  { %11285 = vmatpush3.bf16.msra.mxu1 %v12469_v7 }
 0x2d1   :  { %11303 = vmatpush3.bf16.msra.mxu0 %v12469_v7  ;;  %11286 = vmatprep.subr.bf16.mxu1 %v12387_v3 }
 0x2d2   :  { %11304 = vmatprep.subr.bf16.mxu0 %v12387_v3 }
 0x39e   :  { %v538_v51 = vpop.f32.mrb[6].mxu1 }
 0x39f   :  { %v539_v52 = vadd.f32 %v12567_v31, %v538_v51  ;;  %v687_v53 = vpop.f32.mrb[6].mxu0  ;;  %v9617_v54 = vpop.f32.mrb[7].mxu1 }
 0x3a0   :  { %v688_v55 = vadd.f32 %v12567_v31, %v687_v53  ;;  %v9647_v56 = vpop.f32.mrb[7].mxu0 }
 0x3a1   :  { %v695_v57 = vmul.f32 %v539_v52, %v392_v33  ;;  %v691_v9 = vmul.f32 2.0, %v539_v52 }
 0x3a2   :  { %v844_v58 = vmul.f32 %v688_v55, %v392_v33  ;;  %v693_v13 = vmul.f32 2.0, %v688_v55 }
 0x3a3   :  { %v696_v59 = vadd.f32 %v695_v57, %v12484_v10  ;;  %v692_v25 = vadd.f32 %v691_v9, %v12570_v34 }
 0x3a4   :  { %v845_v60 = vadd.f32 %v844_v58, %v12489_v11  ;;  %v694_v28 = vadd.f32 %v693_v13, %v12573_v37 }
 0x3a5   :  { %9657 = vmatmul.mubr.msk.f32.vlgmr.msra.gmra.mrb[8].mxu1 %vm90_vm1, %v696_v59 }
 0x3a6   :  { %9687 = vmatmul.mubr.msk.f32.vlgmr.msra.gmra.mrb[8].mxu0 %vm90_vm1, %v845_v60  ;;  %11288 = vmatpush3.bf16.msra.mxu1 %v12491_v12 }
 0x3a7   :  { %11306 = vmatpush3.bf16.msra.mxu0 %v12491_v12  ;;  %11289 = vmatprep.subr.bf16.mxu1 %v12387_v3 }
 0x3a8   :  { %11307 = vmatprep.subr.bf16.mxu0 %v12387_v3  ;;  %9675 = vmatprep.mubr.msk.f32.mxu1 %vm12388_vm0, %v12389_v6 }
 0x3a9   :  { %9705 = vmatprep.mubr.msk.f32.mxu0 %vm12388_vm0, %v12389_v6 }
 0x3aa   :  { %11291 = vmatpush3.bf16.msra.mxu1 %v12513_v15 }
 0x3ab   :  { %11309 = vmatpush3.bf16.msra.mxu0 %v12513_v15  ;;  %11292 = vmatprep.subr.bf16.mxu1 %v12387_v3 }
 0x3ac   :  { %11310 = vmatprep.subr.bf16.mxu0 %v12387_v3 }
 0x3ae   :  { %11294 = vmatpush3.bf16.msra.mxu1 %v12525_v18 }
 0x3af   :  { %11312 = vmatpush3.bf16.msra.mxu0 %v12525_v18  ;;  %11295 = vmatprep.subr.bf16.mxu1 %v12387_v3 }
 0x3b0   :  { %11313 = vmatprep.subr.bf16.mxu0 %v12387_v3 }
 0x3b2   :  { %11297 = vmatpush3.bf16.msra.mxu1 %v12535_v21 }
 0x3b3   :  { %11315 = vmatpush3.bf16.msra.mxu0 %v12535_v21  ;;  %11316 = vmatprep.subr.bf16.mxu1 %v12387_v3 }
 0x3b4   :  { %11334 = vmatprep.subr.bf16.mxu0 %v12387_v3 }
 0x478   :  { %v766_v61 = vpop.f32.mrb[8].mxu1 }
 0x479   :  { %v767_v62 = vadd.f32 %v12546_v22, %v766_v61  ;;  %v915_v63 = vpop.f32.mrb[8].mxu0  ;;  %v9658_v0 = vpop.f32.mrb[9].mxu1 }
 0x47a   :  { %v916_v1 = vadd.f32 %v12546_v22, %v915_v63  ;;  %v9688_v2 = vpop.f32.mrb[9].mxu0  ;;  %v1600_v0 = vstv %s8631_s4 }
 0x47b   :  { %12233 = vtanh.f32 %v767_v62 }
 0x47c   :  { %12235 = vtanh.f32 %v916_v1 }
 0x485   :  { %v12234_v5 = vpop.eup %12233 }
 0x486   :  { %v12236_v8 = vpop.eup %12235  ;;  %9676 = vmatmul.mubr.msk.f32.vlgmr.msra.gmra.mrb[10].mxu1 %vm171_vm2, %v12234_v5 }
 0x487   :  { %9706 = vmatmul.mubr.msk.f32.vlgmr.msra.gmra.mrb[10].mxu0 %vm171_vm2, %v12236_v8  ;;  %11318 = vmatpush3.bf16.msra.mxu1 %v12458_v4 }
 0x488   :  { %11336 = vmatpush3.bf16.msra.mxu0 %v12458_v4  ;;  %11319 = vmatprep.subr.bf16.mxu1 %v12387_v3 }
 0x489   :  { %11337 = vmatprep.subr.bf16.mxu0 %v12387_v3  ;;  %9716 = vmatprep.mubr.msk.f32.mxu1 %vm12388_vm0, %v12389_v6 }
 0x48a   :  { %9746 = vmatprep.mubr.msk.f32.mxu0 %vm12388_vm0, %v12389_v6 }
 0x48b   :  { %11321 = vmatpush3.bf16.msra.mxu1 %v12469_v7 }
 0x48c   :  { %11339 = vmatpush3.bf16.msra.mxu0 %v12469_v7  ;;  %11322 = vmatprep.subr.bf16.mxu1 %v12387_v3 }
 0x48d   :  { %11340 = vmatprep.subr.bf16.mxu0 %v12387_v3 }
 0x559   :  { %v840_v14 = vpop.f32.mrb[10].mxu1 }
 0x55a   :  { %v841_v17 = vadd.f32 %v12567_v31, %v840_v14  ;;  %v989_v19 = vpop.f32.mrb[10].mxu0  ;;  %v9677_v20 = vpop.f32.mrb[11].mxu1 }
 0x55b   :  { %v990_v23 = vadd.f32 %v12567_v31, %v989_v19  ;;  %v9707_v24 = vpop.f32.mrb[11].mxu0 }
 0x55c   :  { %v993_v26 = vmul.f32 2.0, %v841_v17  ;;  %v998_v27 = vmul.f32 %v997_v16, %v841_v17 }
 0x55d   :  { %v995_v29 = vmul.f32 2.0, %v990_v23  ;;  %v1147_v30 = vmul.f32 %v997_v16, %v990_v23 }
 0x55e   :  { %v999_v32 = vadd.f32 %v998_v27, %v12484_v10  ;;  %v994_v33 = vadd.f32 %v993_v26, %v692_v25 }
 0x55f   :  { %v1148_v35 = vadd.f32 %v1147_v30, %v12489_v11  ;;  %v996_v36 = vadd.f32 %v995_v29, %v694_v28 }
 0x560   :  { %9717 = vmatmul.mubr.msk.f32.vlgmr.msra.gmra.mrb[12].mxu1 %vm90_vm1, %v999_v32 }
 0x561   :  { %9747 = vmatmul.mubr.msk.f32.vlgmr.msra.gmra.mrb[12].mxu0 %vm90_vm1, %v1148_v35  ;;  %11324 = vmatpush3.bf16.msra.mxu1 %v12491_v12 }
 0x562   :  { %11342 = vmatpush3.bf16.msra.mxu0 %v12491_v12  ;;  %11325 = vmatprep.subr.bf16.mxu1 %v12387_v3 }
 0x563   :  { %11343 = vmatprep.subr.bf16.mxu0 %v12387_v3  ;;  %9735 = vmatprep.mubr.msk.f32.mxu1 %vm12388_vm0, %v12389_v6 }
 0x564   :  { %9765 = vmatprep.mubr.msk.f32.mxu0 %vm12388_vm0, %v12389_v6 }
 0x565   :  { %11327 = vmatpush3.bf16.msra.mxu1 %v12513_v15 }
 0x566   :  { %11345 = vmatpush3.bf16.msra.mxu0 %v12513_v15  ;;  %11328 = vmatprep.subr.bf16.mxu1 %v12387_v3 }
 0x567   :  { %11346 = vmatprep.subr.bf16.mxu0 %v12387_v3 }
 0x569   :  { %11330 = vmatpush3.bf16.msra.mxu1 %v12525_v18 }
 0x56a   :  { %11348 = vmatpush3.bf16.msra.mxu0 %v12525_v18  ;;  %11331 = vmatprep.subr.bf16.mxu1 %v12387_v3 }
 0x56b   :  { %11349 = vmatprep.subr.bf16.mxu0 %v12387_v3 }
 0x56d   :  { %11333 = vmatpush3.bf16.msra.mxu1 %v12535_v21 }
 0x56e   :  { %11351 = vmatpush3.bf16.msra.mxu0 %v12535_v21  ;;  %11352 = vmatprep.subr.bf16.mxu1 %v12387_v3 }
 0x56f   :  { %11370 = vmatprep.subr.bf16.mxu0 %v12387_v3 }
 0x633   :  { %v1069_v34 = vpop.f32.mrb[12].mxu1 }
 0x634   :  { %v1070_v37 = vadd.f32 %v12546_v22, %v1069_v34  ;;  %v1218_v38 = vpop.f32.mrb[12].mxu0  ;;  %v9718_v39 = vpop.f32.mrb[13].mxu1 }
 0x635   :  { %v1219_v40 = vadd.f32 %v12546_v22, %v1218_v38  ;;  %v9748_v41 = vpop.f32.mrb[13].mxu0 }
 0x636   :  { %12237 = vtanh.f32 %v1070_v37 }
 0x637   :  { %12239 = vtanh.f32 %v1219_v40 }
 0x640   :  { %v12238_v42 = vpop.eup %12237 }
 0x641   :  { %v12240_v43 = vpop.eup %12239  ;;  %9736 = vmatmul.mubr.msk.f32.vlgmr.msra.gmra.mrb[14].mxu1 %vm171_vm2, %v12238_v42 }
 0x642   :  { %9766 = vmatmul.mubr.msk.f32.vlgmr.msra.gmra.mrb[14].mxu0 %vm171_vm2, %v12240_v43  ;;  %11354 = vmatpush3.bf16.msra.mxu1 %v12458_v4 }
 0x643   :  { %11372 = vmatpush3.bf16.msra.mxu0 %v12458_v4  ;;  %11355 = vmatprep.subr.bf16.mxu1 %v12387_v3 }
 0x644   :  { %11373 = vmatprep.subr.bf16.mxu0 %v12387_v3  ;;  %9776 = vmatprep.mubr.msk.f32.mxu1 %vm12388_vm0, %v12389_v6 }
 0x645   :  { %9806 = vmatprep.mubr.msk.f32.mxu0 %vm12388_vm0, %v12389_v6 }
 0x646   :  { %11357 = vmatpush3.bf16.msra.mxu1 %v12469_v7 }
 0x647   :  { %11375 = vmatpush3.bf16.msra.mxu0 %v12469_v7  ;;  %11358 = vmatprep.subr.bf16.mxu1 %v12387_v3 }
 0x648   :  { %11376 = vmatprep.subr.bf16.mxu0 %v12387_v3 }
 0x714   :  { %v1143_v44 = vpop.f32.mrb[14].mxu1 }
 0x715   :  { %v1144_v45 = vadd.f32 %v12567_v31, %v1143_v44  ;;  %v1292_v46 = vpop.f32.mrb[14].mxu0  ;;  %v9737_v47 = vpop.f32.mrb[15].mxu1 }
 0x716   :  { %v1293_v49 = vadd.f32 %v12567_v31, %v1292_v46  ;;  %v9767_v50 = vpop.f32.mrb[15].mxu0 }
 0x717   :  { %v1296_v51 = vadd.f32 %v1144_v45, %v994_v33 }
 0x718   :  { %v1300_v52 = vadd.f32 %v1293_v49, %v996_v36 }
 0x719   :  { %v1298_v53 = vmul.f32 %v1297_v48, %v1296_v51  ;;  %v2205_v51 = vstv %s8630_s26 }
 0x71a   :  { %v1301_v54 = vmul.f32 %v1300_v52, %v1297_v48 }
 0x71b   :  { %v12706_v55 = vadd.f32 %v1298_v53, %v12484_v10 }
 0x71c   :  { %v12709_v56 = vadd.f32 %v1301_v54, %v12489_v11 }
 0x71d   :  { %3719 = vrot.lane.b32.xlu0 %v12706_v55, %s12390_s25  ;;  %9777 = vmatmul.mubr.msk.f32.vlgmr.msra.gmra.mrb[16].mxu1 %vm90_vm1, %v12706_v55 }
 0x71e   :  { %9807 = vmatmul.mubr.msk.f32.vlgmr.msra.gmra.mrb[16].mxu0 %vm90_vm1, %v12709_v56  ;;  %11360 = vmatpush3.bf16.msra.mxu1 %v12491_v12 }
 0x71f   :  { %11378 = vmatpush3.bf16.msra.mxu0 %v12491_v12  ;;  %11361 = vmatprep.subr.bf16.mxu1 %v12387_v3 }
 0x720   :  { %11379 = vmatprep.subr.bf16.mxu0 %v12387_v3  ;;  %9795 = vmatprep.mubr.msk.f32.mxu1 %vm12388_vm0, %v12389_v6 }
 0x721   :  { %3734 = vrot.lane.b32.xlu0 %v12709_v56, %s12390_s25  ;;  %9825 = vmatprep.mubr.msk.f32.mxu0 %vm12388_vm0, %v12389_v6 }
 0x722   :  { %11363 = vmatpush3.bf16.msra.mxu1 %v12513_v15 }
 0x723   :  { %11381 = vmatpush3.bf16.msra.mxu0 %v12513_v15  ;;  %11364 = vmatprep.subr.bf16.mxu1 %v12387_v3 }
 0x724   :  { %11382 = vmatprep.subr.bf16.mxu0 %v12387_v3 }
 0x726   :  { %11366 = vmatpush3.bf16.msra.mxu1 %v12525_v18 }
 0x727   :  { %11384 = vmatpush3.bf16.msra.mxu0 %v12525_v18  ;;  %11367 = vmatprep.subr.bf16.mxu1 %v12387_v3 }
 0x728   :  { %11385 = vmatprep.subr.bf16.mxu0 %v12387_v3 }
 0x72a   :  { %11369 = vmatpush3.bf16.msra.mxu1 %v12535_v21 }
 0x72b   :  { %11387 = vmatpush3.bf16.msra.mxu0 %v12535_v21  ;;  %11388 = vmatprep.subr.bf16.mxu1 %v12387_v3 }
 0x72c   :  { %11406 = vmatprep.subr.bf16.mxu0 %v12387_v3 }
 0x7f0   :  { %v1375_v10 = vpop.f32.mrb[16].mxu1 }
 0x7f1   :  { %v1376_v11 = vadd.f32 %v12546_v22, %v1375_v10  ;;  %v1522_v57 = vpop.f32.mrb[16].mxu0  ;;  %v9778_v58 = vpop.f32.mrb[17].mxu1 }
 0x7f2   :  { %v1523_v59 = vadd.f32 %v12546_v22, %v1522_v57  ;;  %v9808_v60 = vpop.f32.mrb[17].mxu0 }
 0x7f3   :  { %12241 = vtanh.f32 %v1376_v11 }
 0x7f4   :  { %12243 = vtanh.f32 %v1523_v59 }
 0x7fd   :  { %v12242_v61 = vpop.eup %12241 }
 0x7fe   :  { %v12244_v62 = vpop.eup %12243  ;;  %9796 = vmatmul.mubr.msk.f32.vlgmr.msra.gmra.mrb[18].mxu1 %vm171_vm2, %v12242_v61 }
 0x7ff   :  { %9826 = vmatmul.mubr.msk.f32.vlgmr.msra.gmra.mrb[18].mxu0 %vm171_vm2, %v12244_v62  ;;  %11390 = vmatpush3.bf16.msra.mxu1 %v12458_v4 }
 0x800   :  { %11408 = vmatpush3.bf16.msra.mxu0 %v12458_v4  ;;  %11391 = vmatprep.subr.bf16.mxu1 %v12387_v3 }
 0x801   :  { %11409 = vmatprep.subr.bf16.mxu0 %v12387_v3  ;;  %9836 = vmatprep.mubr.msk.f32.mxu1 %vm12388_vm0, %v12389_v6 }
 0x802   :  { %9866 = vmatprep.mubr.msk.f32.mxu0 %vm12388_vm0, %v12389_v6 }
 0x803   :  { %11393 = vmatpush3.bf16.msra.mxu1 %v12469_v7 }
 0x804   :  { %11411 = vmatpush3.bf16.msra.mxu0 %v12469_v7  ;;  %11394 = vmatprep.subr.bf16.mxu1 %v12387_v3 }
 0x805   :  { %11412 = vmatprep.subr.bf16.mxu0 %v12387_v3 }
 0x8d1   :  { %v1449_v63 = vpop.f32.mrb[18].mxu1 }
 0x8d2   :  { %v12756_v1 = vadd.f32 %v12567_v31, %v1449_v63  ;;  %v1596_v2 = vpop.f32.mrb[18].mxu0  ;;  %v9797_v5 = vpop.f32.mrb[19].mxu1 }
 0x8d3   :  { %v12759_v8 = vadd.f32 %v12567_v31, %v1596_v2  ;;  %v9827_v9 = vpop.f32.mrb[19].mxu0 }
 0x8d4   :  { %v1601_v13 = vmul.f32 %v1600_v0, %v12756_v1 }
 0x8d5   :  { %v1750_v14 = vmul.f32 %v1600_v0, %v12759_v8 }
 0x8d6   :  { %v1602_v16 = vadd.f32 %v1601_v13, %v12706_v55 }
 0x8d7   :  { %v1751_v17 = vadd.f32 %v1750_v14, %v12709_v56 }
 0x8d8   :  { %9837 = vmatmul.mubr.msk.f32.vlgmr.msra.gmra.mrb[20].mxu1 %vm90_vm1, %v1602_v16 }
 0x8d9   :  { %9867 = vmatmul.mubr.msk.f32.vlgmr.msra.gmra.mrb[20].mxu0 %vm90_vm1, %v1751_v17  ;;  %11396 = vmatpush3.bf16.msra.mxu1 %v12491_v12 }
 0x8da   :  { %11414 = vmatpush3.bf16.msra.mxu0 %v12491_v12  ;;  %11397 = vmatprep.subr.bf16.mxu1 %v12387_v3 }
 0x8db   :  { %11415 = vmatprep.subr.bf16.mxu0 %v12387_v3  ;;  %9855 = vmatprep.mubr.msk.f32.mxu1 %vm12388_vm0, %v12389_v6 }
 0x8dc   :  { %9885 = vmatprep.mubr.msk.f32.mxu0 %vm12388_vm0, %v12389_v6 }
 0x8dd   :  { %11399 = vmatpush3.bf16.msra.mxu1 %v12513_v15 }
 0x8de   :  { %11417 = vmatpush3.bf16.msra.mxu0 %v12513_v15  ;;  %11400 = vmatprep.subr.bf16.mxu1 %v12387_v3 }
 0x8df   :  { %11418 = vmatprep.subr.bf16.mxu0 %v12387_v3 }
 0x8e1   :  { %11402 = vmatpush3.bf16.msra.mxu1 %v12525_v18 }
 0x8e2   :  { %11420 = vmatpush3.bf16.msra.mxu0 %v12525_v18  ;;  %11403 = vmatprep.subr.bf16.mxu1 %v12387_v3 }
 0x8e3   :  { %11421 = vmatprep.subr.bf16.mxu0 %v12387_v3 }
 0x8e5   :  { %11405 = vmatpush3.bf16.msra.mxu1 %v12535_v21 }
 0x8e6   :  { %11423 = vmatpush3.bf16.msra.mxu0 %v12535_v21  ;;  %11424 = vmatprep.subr.bf16.mxu1 %v12387_v3 }
 0x8e7   :  { %11442 = vmatprep.subr.bf16.mxu0 %v12387_v3 }
 0x9ab   :  { %v1672_v19 = vpop.f32.mrb[20].mxu1 }
 0x9ac   :  { %v1673_v20 = vadd.f32 %v12546_v22, %v1672_v19  ;;  %v1821_v23 = vpop.f32.mrb[20].mxu0  ;;  %v9838_v24 = vpop.f32.mrb[21].mxu1 }
 0x9ad   :  { %v1822_v25 = vadd.f32 %v12546_v22, %v1821_v23  ;;  %v9868_v26 = vpop.f32.mrb[21].mxu0 }
 0x9ae   :  { %12245 = vtanh.f32 %v1673_v20  ;;  %v2505_v26 = vstv %s8632_s27  ;;  %s8706_s27 = sld [smem:[#allocation2 + $0x5]] }
 0x9af   :  { %12247 = vtanh.f32 %v1822_v25 }
 0x9b8   :  { %v12246_v27 = vpop.eup %12245 }
 0x9b9   :  { %v12248_v28 = vpop.eup %12247  ;;  %9856 = vmatmul.mubr.msk.f32.vlgmr.msra.gmra.mrb[22].mxu1 %vm171_vm2, %v12246_v27 }
 0x9ba   :  { %9886 = vmatmul.mubr.msk.f32.vlgmr.msra.gmra.mrb[22].mxu0 %vm171_vm2, %v12248_v28  ;;  %11426 = vmatpush3.bf16.msra.mxu1 %v12458_v4 }
 0x9bb   :  { %11444 = vmatpush3.bf16.msra.mxu0 %v12458_v4  ;;  %11427 = vmatprep.subr.bf16.mxu1 %v12387_v3 }
 0x9bc   :  { %11445 = vmatprep.subr.bf16.mxu0 %v12387_v3  ;;  %9896 = vmatprep.mubr.msk.f32.mxu1 %vm12388_vm0, %v12389_v6 }
 0x9bd   :  { %9926 = vmatprep.mubr.msk.f32.mxu0 %vm12388_vm0, %v12389_v6 }
 0x9be   :  { %11429 = vmatpush3.bf16.msra.mxu1 %v12469_v7 }
 0x9bf   :  { %11447 = vmatpush3.bf16.msra.mxu0 %v12469_v7  ;;  %11430 = vmatprep.subr.bf16.mxu1 %v12387_v3 }
 0x9c0   :  { %11448 = vmatprep.subr.bf16.mxu0 %v12387_v3 }
 0xa8c   :  { %v1746_v29 = vpop.f32.mrb[22].mxu1 }
 0xa8d   :  { %v1747_v30 = vadd.f32 %v12567_v31, %v1746_v29  ;;  %v1895_v32 = vpop.f32.mrb[22].mxu0  ;;  %v9857_v33 = vpop.f32.mrb[23].mxu1 }
 0xa8e   :  { %v1896_v35 = vadd.f32 %v12567_v31, %v1895_v32  ;;  %v9887_v36 = vpop.f32.mrb[23].mxu0 }
 0xa8f   :  { %v1903_v34 = vmul.f32 %v1747_v30, %v1600_v0  ;;  %v1899_v48 = vmul.f32 2.0, %v1747_v30 }
 0xa90   :  { %v2052_v37 = vmul.f32 %v1896_v35, %v1600_v0  ;;  %v1901_v49 = vmul.f32 2.0, %v1896_v35 }
 0xa91   :  { %v1904_v38 = vadd.f32 %v1903_v34, %v12706_v55  ;;  %v1900_v57 = vadd.f32 %v1899_v48, %v12756_v1 }
 0xa92   :  { %v2053_v39 = vadd.f32 %v2052_v37, %v12709_v56  ;;  %v1902_v60 = vadd.f32 %v1901_v49, %v12759_v8 }
 0xa93   :  { %9897 = vmatmul.mubr.msk.f32.vlgmr.msra.gmra.mrb[24].mxu1 %vm90_vm1, %v1904_v38 }
 0xa94   :  { %9927 = vmatmul.mubr.msk.f32.vlgmr.msra.gmra.mrb[24].mxu0 %vm90_vm1, %v2053_v39  ;;  %11432 = vmatpush3.bf16.msra.mxu1 %v12491_v12 }
 0xa95   :  { %11450 = vmatpush3.bf16.msra.mxu0 %v12491_v12  ;;  %11433 = vmatprep.subr.bf16.mxu1 %v12387_v3 }
 0xa96   :  { %11451 = vmatprep.subr.bf16.mxu0 %v12387_v3  ;;  %9915 = vmatprep.mubr.msk.f32.mxu1 %vm12388_vm0, %v12389_v6 }
 0xa97   :  { %9945 = vmatprep.mubr.msk.f32.mxu0 %vm12388_vm0, %v12389_v6 }
 0xa98   :  { %11435 = vmatpush3.bf16.msra.mxu1 %v12513_v15 }
 0xa99   :  { %11453 = vmatpush3.bf16.msra.mxu0 %v12513_v15  ;;  %11436 = vmatprep.subr.bf16.mxu1 %v12387_v3 }
 0xa9a   :  { %11454 = vmatprep.subr.bf16.mxu0 %v12387_v3 }
 0xa9c   :  { %11438 = vmatpush3.bf16.msra.mxu1 %v12525_v18 }
 0xa9d   :  { %11456 = vmatpush3.bf16.msra.mxu0 %v12525_v18  ;;  %11439 = vmatprep.subr.bf16.mxu1 %v12387_v3 }
 0xa9e   :  { %11457 = vmatprep.subr.bf16.mxu0 %v12387_v3 }
 0xaa0   :  { %11441 = vmatpush3.bf16.msra.mxu1 %v12535_v21 }
 0xaa1   :  { %11459 = vmatpush3.bf16.msra.mxu0 %v12535_v21  ;;  %11460 = vmatprep.subr.bf16.mxu1 %v12387_v3 }
 0xaa2   :  { %11478 = vmatprep.subr.bf16.mxu0 %v12387_v3 }
 0xb66   :  { %v1974_v40 = vpop.f32.mrb[24].mxu1 }
 0xb67   :  { %v1975_v41 = vadd.f32 %v12546_v22, %v1974_v40  ;;  %v2123_v42 = vpop.f32.mrb[24].mxu0  ;;  %v9898_v43 = vpop.f32.mrb[25].mxu1 }
 0xb68   :  { %v2124_v44 = vadd.f32 %v12546_v22, %v2123_v42  ;;  %v9928_v45 = vpop.f32.mrb[25].mxu0  ;;  %v2808_v42 = vstv %s8650_s29  ;;  %s8708_s29 = sld [smem:[#allocation6 + $0x5]] }
 0xb69   :  { %12249 = vtanh.f32 %v1975_v41 }
 0xb6a   :  { %12251 = vtanh.f32 %v2124_v44 }
 0xb73   :  { %v12250_v46 = vpop.eup %12249 }
 0xb74   :  { %v12252_v47 = vpop.eup %12251  ;;  %9916 = vmatmul.mubr.msk.f32.vlgmr.msra.gmra.mrb[26].mxu1 %vm171_vm2, %v12250_v46 }
 0xb75   :  { %9946 = vmatmul.mubr.msk.f32.vlgmr.msra.gmra.mrb[26].mxu0 %vm171_vm2, %v12252_v47  ;;  %11462 = vmatpush3.bf16.msra.mxu1 %v12458_v4 }
 0xb76   :  { %11480 = vmatpush3.bf16.msra.mxu0 %v12458_v4  ;;  %11463 = vmatprep.subr.bf16.mxu1 %v12387_v3 }
 0xb77   :  { %11481 = vmatprep.subr.bf16.mxu0 %v12387_v3  ;;  %9956 = vmatprep.mubr.msk.f32.mxu1 %vm12388_vm0, %v12389_v6 }
 0xb78   :  { %9986 = vmatprep.mubr.msk.f32.mxu0 %vm12388_vm0, %v12389_v6 }
 0xb79   :  { %11465 = vmatpush3.bf16.msra.mxu1 %v12469_v7 }
 0xb7a   :  { %11483 = vmatpush3.bf16.msra.mxu0 %v12469_v7  ;;  %11466 = vmatprep.subr.bf16.mxu1 %v12387_v3 }
 0xb7b   :  { %11484 = vmatprep.subr.bf16.mxu0 %v12387_v3 }
 0xc47   :  { %v2048_v50 = vpop.f32.mrb[26].mxu1 }
 0xc48   :  { %v2049_v52 = vadd.f32 %v12567_v31, %v2048_v50  ;;  %v2197_v53 = vpop.f32.mrb[26].mxu0  ;;  %v9917_v54 = vpop.f32.mrb[27].mxu1 }
 0xc49   :  { %v2198_v10 = vadd.f32 %v12567_v31, %v2197_v53  ;;  %v9947_v11 = vpop.f32.mrb[27].mxu0  ;;  %v12976_v53 = vld [vmem:[%s13865_s5] ss:$0 sm:$0xff] }
 0xc4a   :  { %v2201_v58 = vmul.f32 2.0, %v2049_v52  ;;  %v2206_v59 = vmul.f32 %v2205_v51, %v2049_v52 }
 0xc4b   :  { %v2203_v61 = vmul.f32 2.0, %v2198_v10  ;;  %v2355_v62 = vmul.f32 %v2205_v51, %v2198_v10 }
 0xc4c   :  { %v2207_v63 = vadd.f32 %v2206_v59, %v12706_v55  ;;  %v2202_v0 = vadd.f32 %v2201_v58, %v1900_v57 }
 0xc4d   :  { %v2356_v2 = vadd.f32 %v2355_v62, %v12709_v56  ;;  %v2204_v5 = vadd.f32 %v2203_v61, %v1902_v60 }
 0xc4e   :  { %9957 = vmatmul.mubr.msk.f32.vlgmr.msra.gmra.mrb[28].mxu1 %vm90_vm1, %v2207_v63 }
 0xc4f   :  { %9987 = vmatmul.mubr.msk.f32.vlgmr.msra.gmra.mrb[28].mxu0 %vm90_vm1, %v2356_v2  ;;  %11468 = vmatpush3.bf16.msra.mxu1 %v12491_v12  ;;  %v12998_v2 = vld [vmem:[%s13867_s7] ss:$0 sm:$0xff] }
 0xc50   :  { %11486 = vmatpush3.bf16.msra.mxu0 %v12491_v12  ;;  %11469 = vmatprep.subr.bf16.mxu1 %v12387_v3 }
 0xc51   :  { %11487 = vmatprep.subr.bf16.mxu0 %v12387_v3  ;;  %9975 = vmatprep.mubr.msk.f32.mxu1 %vm12388_vm0, %v12389_v6 }
 0xc52   :  { %10005 = vmatprep.mubr.msk.f32.mxu0 %vm12388_vm0, %v12389_v6 }
 0xc53   :  { %11471 = vmatpush3.bf16.msra.mxu1 %v12513_v15 }
 0xc54   :  { %11489 = vmatpush3.bf16.msra.mxu0 %v12513_v15  ;;  %11472 = vmatprep.subr.bf16.mxu1 %v12387_v3 }
 0xc55   :  { %11490 = vmatprep.subr.bf16.mxu0 %v12387_v3 }
 0xc57   :  { %11474 = vmatpush3.bf16.msra.mxu1 %v12525_v18 }
 0xc58   :  { %11492 = vmatpush3.bf16.msra.mxu0 %v12525_v18  ;;  %11475 = vmatprep.subr.bf16.mxu1 %v12387_v3 }
 0xc59   :  { %11493 = vmatprep.subr.bf16.mxu0 %v12387_v3 }
 0xc5b   :  { %11477 = vmatpush3.bf16.msra.mxu1 %v12535_v21 }
 0xc5c   :  { %11495 = vmatpush3.bf16.msra.mxu0 %v12535_v21  ;;  %11496 = vmatprep.subr.bf16.mxu1 %v12387_v3 }
 0xc5d   :  { %11514 = vmatprep.subr.bf16.mxu0 %v12387_v3 }
 0xd21   :  { %v2277_v1 = vpop.f32.mrb[28].mxu1 }
 0xd22   :  { %v2278_v8 = vadd.f32 %v12546_v22, %v2277_v1  ;;  %v2426_v9 = vpop.f32.mrb[28].mxu0  ;;  %v9958_v13 = vpop.f32.mrb[29].mxu1 }
 0xd23   :  { %v2427_v14 = vadd.f32 %v12546_v22, %v2426_v9  ;;  %v9988_v16 = vpop.f32.mrb[29].mxu0 }
 0xd24   :  { %12253 = vtanh.f32 %v2278_v8 }
 0xd25   :  { %12255 = vtanh.f32 %v2427_v14 }
 0xd2e   :  { %v12254_v17 = vpop.eup %12253 }
 0xd2f   :  { %v12256_v19 = vpop.eup %12255  ;;  %9976 = vmatmul.mubr.msk.f32.vlgmr.msra.gmra.mrb[30].mxu1 %vm171_vm2, %v12254_v17 }
 0xd30   :  { %10006 = vmatmul.mubr.msk.f32.vlgmr.msra.gmra.mrb[30].mxu0 %vm171_vm2, %v12256_v19  ;;  %11498 = vmatpush3.bf16.msra.mxu1 %v12458_v4 }
 0xd31   :  { %11516 = vmatpush3.bf16.msra.mxu0 %v12458_v4  ;;  %11499 = vmatprep.subr.bf16.mxu1 %v12387_v3 }
 0xd32   :  { %11517 = vmatprep.subr.bf16.mxu0 %v12387_v3  ;;  %10016 = vmatprep.mubr.msk.f32.mxu1 %vm12388_vm0, %v12389_v6 }
 0xd33   :  { %10046 = vmatprep.mubr.msk.f32.mxu0 %vm12388_vm0, %v12389_v6 }
 0xd34   :  { %11501 = vmatpush3.bf16.msra.mxu1 %v12469_v7 }
 0xd35   :  { %11519 = vmatpush3.bf16.msra.mxu0 %v12469_v7  ;;  %11502 = vmatprep.subr.bf16.mxu1 %v12387_v3 }
 0xd36   :  { %11520 = vmatprep.subr.bf16.mxu0 %v12387_v3 }
 0xe02   :  { %v2351_v20 = vpop.f32.mrb[30].mxu1 }
 0xe03   :  { %v2352_v23 = vadd.f32 %v12567_v31, %v2351_v20  ;;  %v2500_v24 = vpop.f32.mrb[30].mxu0  ;;  %v9977_v25 = vpop.f32.mrb[31].mxu1 }
 0xe04   :  { %v2501_v27 = vadd.f32 %v12567_v31, %v2500_v24  ;;  %v10007_v28 = vpop.f32.mrb[31].mxu0 }
 0xe05   :  { %v2504_v29 = vadd.f32 %v2352_v23, %v2202_v0 }
 0xe06   :  { %v2508_v30 = vadd.f32 %v2501_v27, %v2204_v5 }
 0xe07   :  { %v2506_v32 = vmul.f32 %v2505_v26, %v2504_v29  ;;  %v3413_v29 = vstv %s8649_s12 }
 0xe08   :  { %v2509_v33 = vmul.f32 %v2508_v30, %v2505_v26 }
 0xe09   :  { %v12892_v35 = vadd.f32 %v2506_v32, %v12706_v55 }
 0xe0a   :  { %v12895_v36 = vadd.f32 %v2509_v33, %v12709_v56 }
 0xe0b   :  { %3722 = vrot.lane.b32.xlu0 %v12892_v35, %s12391_s28  ;;  %10017 = vmatmul.mubr.msk.f32.vlgmr.msra.gmra.mrb[32].mxu1 %vm90_vm1, %v12892_v35 }
 0xe0c   :  { %3737 = vrot.lane.b32.xlu1 %v12895_v36, %s12391_s28  ;;  %10047 = vmatmul.mubr.msk.f32.vlgmr.msra.gmra.mrb[32].mxu0 %vm90_vm1, %v12895_v36 }
 0xe0d   :  { %11504 = vmatpush3.bf16.msra.mxu1 %v12491_v12  ;;  %11522 = vmatpush3.bf16.msra.mxu0 %v12491_v12 }
 0xe0e   :  { %11505 = vmatprep.subr.bf16.mxu1 %v12387_v3  ;;  %11523 = vmatprep.subr.bf16.mxu0 %v12387_v3 }
 0xe0f   :  { %10035 = vmatprep.mubr.msk.f32.mxu1 %vm12388_vm0, %v12389_v6  ;;  %10065 = vmatprep.mubr.msk.f32.mxu0 %vm12388_vm0, %v12389_v6 }
 0xe11   :  { %11507 = vmatpush3.bf16.msra.mxu1 %v12513_v15  ;;  %11525 = vmatpush3.bf16.msra.mxu0 %v12513_v15 }
 0xe12   :  { %11508 = vmatprep.subr.bf16.mxu1 %v12387_v3  ;;  %11526 = vmatprep.subr.bf16.mxu0 %v12387_v3 }
 0xe15   :  { %11510 = vmatpush3.bf16.msra.mxu1 %v12525_v18  ;;  %11528 = vmatpush3.bf16.msra.mxu0 %v12525_v18 }
 0xe16   :  { %11511 = vmatprep.subr.bf16.mxu1 %v12387_v3  ;;  %11529 = vmatprep.subr.bf16.mxu0 %v12387_v3 }
 0xe19   :  { %11513 = vmatpush3.bf16.msra.mxu1 %v12535_v21  ;;  %11531 = vmatpush3.bf16.msra.mxu0 %v12535_v21 }
 0xe1a   :  { %11532 = vmatprep.subr.bf16.mxu1 %v12387_v3  ;;  %11550 = vmatprep.subr.bf16.mxu0 %v12387_v3 }
 0xede   :  { %v2583_v55 = vpop.f32.mrb[32].mxu1 }
 0xedf   :  { %v2584_v56 = vadd.f32 %v12546_v22, %v2583_v55  ;;  %v2730_v34 = vpop.f32.mrb[32].mxu0  ;;  %v10018_v37 = vpop.f32.mrb[33].mxu1 }
 0xee0   :  { %v2731_v38 = vadd.f32 %v12546_v22, %v2730_v34  ;;  %v10048_v39 = vpop.f32.mrb[33].mxu0 }
 0xee1   :  { %12257 = vtanh.f32 %v2584_v56 }
 0xee2   :  { %12259 = vtanh.f32 %v2731_v38 }
 0xeeb   :  { %v12258_v40 = vpop.eup %12257 }
 0xeec   :  { %v12260_v41 = vpop.eup %12259  ;;  %10036 = vmatmul.mubr.msk.f32.vlgmr.msra.gmra.mrb[34].mxu1 %vm171_vm2, %v12258_v40 }
 0xeed   :  { %10066 = vmatmul.mubr.msk.f32.vlgmr.msra.gmra.mrb[34].mxu0 %vm171_vm2, %v12260_v41  ;;  %11534 = vmatpush3.bf16.msra.mxu1 %v12458_v4 }
 0xeee   :  { %11552 = vmatpush3.bf16.msra.mxu0 %v12458_v4  ;;  %11535 = vmatprep.subr.bf16.mxu1 %v12387_v3 }
 0xeef   :  { %11553 = vmatprep.subr.bf16.mxu0 %v12387_v3  ;;  %10076 = vmatprep.mubr.msk.f32.mxu1 %vm12388_vm0, %v12389_v6 }
 0xef0   :  { %10106 = vmatprep.mubr.msk.f32.mxu0 %vm12388_vm0, %v12389_v6 }
 0xef1   :  { %11537 = vmatpush3.bf16.msra.mxu1 %v12469_v7 }
 0xef2   :  { %11555 = vmatpush3.bf16.msra.mxu0 %v12469_v7  ;;  %11538 = vmatprep.subr.bf16.mxu1 %v12387_v3 }
 0xef3   :  { %11556 = vmatprep.subr.bf16.mxu0 %v12387_v3 }
 0xfbf   :  { %v2657_v22 = vpop.f32.mrb[34].mxu1 }
 0xfc0   :  { %v12942_v43 = vadd.f32 %v12567_v31, %v2657_v22  ;;  %v2804_v44 = vpop.f32.mrb[34].mxu0  ;;  %v10037_v45 = vpop.f32.mrb[35].mxu1 }
 0xfc1   :  { %v12945_v46 = vadd.f32 %v12567_v31, %v2804_v44  ;;  %v10067_v47 = vpop.f32.mrb[35].mxu0 }
 0xfc2   :  { %v2809_v48 = vmul.f32 %v2808_v42, %v12942_v43 }
 0xfc3   :  { %v2958_v49 = vmul.f32 %v2808_v42, %v12945_v46 }
 0xfc4   :  { %v2810_v50 = vadd.f32 %v2809_v48, %v12892_v35 }
 0xfc5   :  { %v2959_v51 = vadd.f32 %v2958_v49, %v12895_v36 }
 0xfc6   :  { %10077 = vmatmul.mubr.msk.f32.vlgmr.msra.gmra.mrb[36].mxu1 %vm90_vm1, %v2810_v50 }
 0xfc7   :  { %10107 = vmatmul.mubr.msk.f32.vlgmr.msra.gmra.mrb[36].mxu0 %vm90_vm1, %v2959_v51  ;;  %11540 = vmatpush3.bf16.msra.mxu1 %v12491_v12 }
 0xfc8   :  { %11558 = vmatpush3.bf16.msra.mxu0 %v12491_v12  ;;  %11541 = vmatprep.subr.bf16.mxu1 %v12387_v3 }
 0xfc9   :  { %11559 = vmatprep.subr.bf16.mxu0 %v12387_v3  ;;  %10095 = vmatprep.mubr.msk.f32.mxu1 %vm12388_vm0, %v12389_v6 }
 0xfca   :  { %10125 = vmatprep.mubr.msk.f32.mxu0 %vm12388_vm0, %v12389_v6 }
 0xfcb   :  { %11543 = vmatpush3.bf16.msra.mxu1 %v12513_v15 }
 0xfcc   :  { %11561 = vmatpush3.bf16.msra.mxu0 %v12513_v15  ;;  %11544 = vmatprep.subr.bf16.mxu1 %v12387_v3 }
 0xfcd   :  { %11562 = vmatprep.subr.bf16.mxu0 %v12387_v3 }
 0xfcf   :  { %11546 = vmatpush3.bf16.msra.mxu1 %v12525_v18 }
 0xfd0   :  { %11564 = vmatpush3.bf16.msra.mxu0 %v12525_v18  ;;  %11547 = vmatprep.subr.bf16.mxu1 %v12387_v3 }
 0xfd1   :  { %11565 = vmatprep.subr.bf16.mxu0 %v12387_v3 }
 0xfd3   :  { %11549 = vmatpush3.bf16.msra.mxu1 %v12535_v21 }
 0xfd4   :  { %11567 = vmatpush3.bf16.msra.mxu0 %v12535_v21  ;;  %11568 = vmatprep.subr.bf16.mxu1 %v12387_v3 }
 0xfd5   :  { %11586 = vmatprep.subr.bf16.mxu0 %v12387_v3 }
0x1099   :  { %v2880_v52 = vpop.f32.mrb[36].mxu1 }
0x109a   :  { %v2881_v54 = vadd.f32 %v12976_v53, %v2880_v52  ;;  %v3029_v10 = vpop.f32.mrb[36].mxu0  ;;  %v10078_v11 = vpop.f32.mrb[37].mxu1 }
0x109b   :  { %v3030_v57 = vadd.f32 %v12976_v53, %v3029_v10  ;;  %v10108_v58 = vpop.f32.mrb[37].mxu0 }
0x109c   :  { %12261 = vtanh.f32 %v2881_v54  ;;  %v3713_v58 = vstv %s8651_s13 }
0x109d   :  { %12263 = vtanh.f32 %v3030_v57 }
0x10a6   :  { %v12262_v59 = vpop.eup %12261 }
0x10a7   :  { %v12264_v60 = vpop.eup %12263  ;;  %10096 = vmatmul.mubr.msk.f32.vlgmr.msra.gmra.mrb[38].mxu1 %vm171_vm2, %v12262_v59 }
0x10a8   :  { %10126 = vmatmul.mubr.msk.f32.vlgmr.msra.gmra.mrb[38].mxu0 %vm171_vm2, %v12264_v60  ;;  %11570 = vmatpush3.bf16.msra.mxu1 %v12458_v4 }
0x10a9   :  { %11588 = vmatpush3.bf16.msra.mxu0 %v12458_v4  ;;  %11571 = vmatprep.subr.bf16.mxu1 %v12387_v3 }
0x10aa   :  { %11589 = vmatprep.subr.bf16.mxu0 %v12387_v3  ;;  %10136 = vmatprep.mubr.msk.f32.mxu1 %vm12388_vm0, %v12389_v6 }
0x10ab   :  { %10166 = vmatprep.mubr.msk.f32.mxu0 %vm12388_vm0, %v12389_v6 }
0x10ac   :  { %11573 = vmatpush3.bf16.msra.mxu1 %v12469_v7 }
0x10ad   :  { %11591 = vmatpush3.bf16.msra.mxu0 %v12469_v7  ;;  %11574 = vmatprep.subr.bf16.mxu1 %v12387_v3 }
0x10ae   :  { %11592 = vmatprep.subr.bf16.mxu0 %v12387_v3 }
0x117a   :  { %v2954_v61 = vpop.f32.mrb[38].mxu1 }
0x117b   :  { %v2955_v62 = vadd.f32 %v12567_v31, %v2954_v61  ;;  %v3103_v63 = vpop.f32.mrb[38].mxu0  ;;  %v10097_v0 = vpop.f32.mrb[39].mxu1 }
0x117c   :  { %v3104_v5 = vadd.f32 %v12998_v2, %v3103_v63  ;;  %v10127_v1 = vpop.f32.mrb[39].mxu0 }
0x117d   :  { %v3111_v8 = vmul.f32 %v2955_v62, %v2808_v42  ;;  %v3107_v26 = vmul.f32 2.0, %v2955_v62 }
0x117e   :  { %v3260_v9 = vmul.f32 %v3104_v5, %v2808_v42  ;;  %v3109_v27 = vmul.f32 2.0, %v3104_v5 }
0x117f   :  { %v3112_v13 = vadd.f32 %v3111_v8, %v12892_v35  ;;  %v3108_v34 = vadd.f32 %v3107_v26, %v12942_v43 }
0x1180   :  { %v3261_v14 = vadd.f32 %v3260_v9, %v12895_v36  ;;  %v3110_v39 = vadd.f32 %v3109_v27, %v12945_v46  ;;  %v3738_v9 = vpop.permute.xlu1 %3737 }
0x1181   :  { %10137 = vmatmul.mubr.msk.f32.vlgmr.msra.gmra.mrb[40].mxu1 %vm90_vm1, %v3112_v13  ;;  %v12339_v13 = vld [vmem:[%s13863_s3] sm:$0xff] }
0x1182   :  { %10167 = vmatmul.mubr.msk.f32.vlgmr.msra.gmra.mrb[40].mxu0 %vm90_vm1, %v3261_v14  ;;  %11576 = vmatpush3.bf16.msra.mxu1 %v12491_v12 }
0x1183   :  { %11594 = vmatpush3.bf16.msra.mxu0 %v12491_v12  ;;  %11577 = vmatprep.subr.bf16.mxu1 %v12387_v3 }
0x1184   :  { %11595 = vmatprep.subr.bf16.mxu0 %v12387_v3  ;;  %10155 = vmatprep.mubr.msk.f32.mxu1 %vm12388_vm0, %v12389_v6 }
0x1185   :  { %10185 = vmatprep.mubr.msk.f32.mxu0 %vm12388_vm0, %v12389_v6 }
0x1186   :  { %11579 = vmatpush3.bf16.msra.mxu1 %v12513_v15 }
0x1187   :  { %11597 = vmatpush3.bf16.msra.mxu0 %v12513_v15  ;;  %11580 = vmatprep.subr.bf16.mxu1 %v12387_v3 }
0x1188   :  { %11598 = vmatprep.subr.bf16.mxu0 %v12387_v3 }
0x118a   :  { %11582 = vmatpush3.bf16.msra.mxu1 %v12525_v18 }
0x118b   :  { %11600 = vmatpush3.bf16.msra.mxu0 %v12525_v18  ;;  %11583 = vmatprep.subr.bf16.mxu1 %v12387_v3 }
0x118c   :  { %11601 = vmatprep.subr.bf16.mxu0 %v12387_v3 }
0x118e   :  { %11585 = vmatpush3.bf16.msra.mxu1 %v12535_v21 }
0x118f   :  { %11603 = vmatpush3.bf16.msra.mxu0 %v12535_v21  ;;  %11604 = vmatprep.subr.bf16.mxu1 %v12387_v3 }
0x1190   :  { %11622 = vmatprep.subr.bf16.mxu0 %v12387_v3 }
0x1254   :  { %v3182_v31 = vpop.f32.mrb[40].mxu1 }
0x1255   :  { %v3183_v16 = vadd.f32 %v12976_v53, %v3182_v31  ;;  %v3331_v17 = vpop.f32.mrb[40].mxu0  ;;  %v10138_v19 = vpop.f32.mrb[41].mxu1  ;;  %v12340_v31 = vld [vmem:[%s13863_s3 + $0x8] sm:$0xff]  ;;  %s8669_s3 = sld [smem:[#allocation4 + $0x3]] }
0x1256   :  { %v3332_v20 = vadd.f32 %v12976_v53, %v3331_v17  ;;  %v10168_v23 = vpop.f32.mrb[41].mxu0 }
0x1257   :  { %12265 = vtanh.f32 %v3183_v16 }
0x1258   :  { %12267 = vtanh.f32 %v3332_v20 }
0x1261   :  { %v12266_v24 = vpop.eup %12265 }
0x1262   :  { %v12268_v25 = vpop.eup %12267  ;;  %10156 = vmatmul.mubr.msk.f32.vlgmr.msra.gmra.mrb[42].mxu1 %vm171_vm2, %v12266_v24 }
0x1263   :  { %10186 = vmatmul.mubr.msk.f32.vlgmr.msra.gmra.mrb[42].mxu0 %vm171_vm2, %v12268_v25  ;;  %11606 = vmatpush3.bf16.msra.mxu1 %v12458_v4 }
0x1264   :  { %11624 = vmatpush3.bf16.msra.mxu0 %v12458_v4  ;;  %11607 = vmatprep.subr.bf16.mxu1 %v12387_v3 }
0x1265   :  { %11625 = vmatprep.subr.bf16.mxu0 %v12387_v3  ;;  %10196 = vmatprep.mubr.msk.f32.mxu1 %vm12388_vm0, %v12389_v6 }
0x1266   :  { %10226 = vmatprep.mubr.msk.f32.mxu0 %vm12388_vm0, %v12389_v6 }
0x1267   :  { %11609 = vmatpush3.bf16.msra.mxu1 %v12469_v7 }
0x1268   :  { %11627 = vmatpush3.bf16.msra.mxu0 %v12469_v7  ;;  %11610 = vmatprep.subr.bf16.mxu1 %v12387_v3 }
0x1269   :  { %11628 = vmatprep.subr.bf16.mxu0 %v12387_v3 }
0x1335   :  { %v3256_v28 = vpop.f32.mrb[42].mxu1 }
0x1336   :  { %v3257_v30 = vadd.f32 %v12998_v2, %v3256_v28  ;;  %v3405_v32 = vpop.f32.mrb[42].mxu0  ;;  %v10157_v33 = vpop.f32.mrb[43].mxu1 }
0x1337   :  { %v3406_v55 = vadd.f32 %v12998_v2, %v3405_v32  ;;  %v10187_v56 = vpop.f32.mrb[43].mxu0 }
0x1338   :  { %v3409_v37 = vmul.f32 2.0, %v3257_v30  ;;  %v3414_v38 = vmul.f32 %v3413_v29, %v3257_v30 }
0x1339   :  { %v3411_v40 = vmul.f32 2.0, %v3406_v55  ;;  %v3563_v41 = vmul.f32 %v3413_v29, %v3406_v55 }
0x133a   :  { %v3415_v22 = vadd.f32 %v3414_v38, %v12892_v35  ;;  %v3410_v42 = vadd.f32 %v3409_v37, %v3108_v34  ;;  %v4043_v34 = vstv %s8669_s3 }
0x133b   :  { %v3564_v44 = vadd.f32 %v3563_v41, %v12895_v36  ;;  %v3412_v45 = vadd.f32 %v3411_v40, %v3110_v39 }
0x133c   :  { %10197 = vmatmul.mubr.msk.f32.vlgmr.msra.gmra.mrb[44].mxu1 %vm90_vm1, %v3415_v22 }
0x133d   :  { %10227 = vmatmul.mubr.msk.f32.vlgmr.msra.gmra.mrb[44].mxu0 %vm90_vm1, %v3564_v44  ;;  %11612 = vmatpush3.bf16.msra.mxu1 %v12491_v12 }
0x133e   :  { %11630 = vmatpush3.bf16.msra.mxu0 %v12491_v12  ;;  %11613 = vmatprep.subr.bf16.mxu1 %v12387_v3 }
0x133f   :  { %11631 = vmatprep.subr.bf16.mxu0 %v12387_v3  ;;  %10215 = vmatprep.mubr.msk.f32.mxu1 %vm12388_vm0, %v12389_v6 }
0x1340   :  { %10245 = vmatprep.mubr.msk.f32.mxu0 %vm12388_vm0, %v12389_v6 }
0x1341   :  { %11615 = vmatpush3.bf16.msra.mxu1 %v12513_v15 }
0x1342   :  { %11633 = vmatpush3.bf16.msra.mxu0 %v12513_v15  ;;  %11616 = vmatprep.subr.bf16.mxu1 %v12387_v3 }
0x1343   :  { %11634 = vmatprep.subr.bf16.mxu0 %v12387_v3 }
0x1345   :  { %11618 = vmatpush3.bf16.msra.mxu1 %v12525_v18 }
0x1346   :  { %11636 = vmatpush3.bf16.msra.mxu0 %v12525_v18  ;;  %11619 = vmatprep.subr.bf16.mxu1 %v12387_v3 }
0x1347   :  { %11637 = vmatprep.subr.bf16.mxu0 %v12387_v3 }
0x1349   :  { %11621 = vmatpush3.bf16.msra.mxu1 %v12535_v21 }
0x134a   :  { %11639 = vmatpush3.bf16.msra.mxu0 %v12535_v21  ;;  %11640 = vmatprep.subr.bf16.mxu1 %v12387_v3 }
0x134b   :  { %11658 = vmatprep.subr.bf16.mxu0 %v12387_v3 }
0x140f   :  { %v3485_v43 = vpop.f32.mrb[44].mxu1 }
0x1410   :  { %v3486_v46 = vadd.f32 %v12976_v53, %v3485_v43  ;;  %v3634_v47 = vpop.f32.mrb[44].mxu0  ;;  %v10198_v48 = vpop.f32.mrb[45].mxu1 }
0x1411   :  { %v3635_v49 = vadd.f32 %v12976_v53, %v3634_v47  ;;  %v10228_v50 = vpop.f32.mrb[45].mxu0 }
0x1412   :  { %12269 = vtanh.f32 %v3486_v46 }
0x1413   :  { %12271 = vtanh.f32 %v3635_v49 }
0x141c   :  { %v12270_v51 = vpop.eup %12269 }
0x141d   :  { %v12272_v52 = vpop.eup %12271  ;;  %10216 = vmatmul.mubr.msk.f32.vlgmr.msra.gmra.mrb[46].mxu1 %vm171_vm2, %v12270_v51 }
0x141e   :  { %10246 = vmatmul.mubr.msk.f32.vlgmr.msra.gmra.mrb[46].mxu0 %vm171_vm2, %v12272_v52  ;;  %11642 = vmatpush3.bf16.msra.mxu1 %v12458_v4 }
0x141f   :  { %11660 = vmatpush3.bf16.msra.mxu0 %v12458_v4  ;;  %11643 = vmatprep.subr.bf16.mxu1 %v12387_v3 }
0x1420   :  { %11661 = vmatprep.subr.bf16.mxu0 %v12387_v3  ;;  %10256 = vmatprep.mubr.msk.f32.mxu1 %vm12388_vm0, %v12389_v6 }
0x1421   :  { %10286 = vmatprep.mubr.msk.f32.mxu0 %vm12388_vm0, %v12389_v6 }
0x1422   :  { %11645 = vmatpush3.bf16.msra.mxu1 %v12469_v7 }
0x1423   :  { %11663 = vmatpush3.bf16.msra.mxu0 %v12469_v7  ;;  %11646 = vmatprep.subr.bf16.mxu1 %v12387_v3 }
0x1424   :  { %11664 = vmatprep.subr.bf16.mxu0 %v12387_v3 }
0x14f0   :  { %v3559_v54 = vpop.f32.mrb[46].mxu1 }
0x14f1   :  { %v3560_v10 = vadd.f32 %v12998_v2, %v3559_v54  ;;  %v3708_v11 = vpop.f32.mrb[46].mxu0  ;;  %v10217_v57 = vpop.f32.mrb[47].mxu1 }
0x14f2   :  { %v3709_v59 = vadd.f32 %v12998_v2, %v3708_v11  ;;  %v10247_v60 = vpop.f32.mrb[47].mxu0 }
0x14f3   :  { %v3712_v61 = vadd.f32 %v3560_v10, %v3410_v42 }
0x14f4   :  { %v3716_v62 = vadd.f32 %v3709_v59, %v3412_v45 }
0x14f5   :  { %v3714_v63 = vmul.f32 %v3713_v58, %v3712_v61 }
0x14f6   :  { %v3717_v0 = vmul.f32 %v3716_v62, %v3713_v58 }
0x14f7   :  { %v13088_v5 = vadd.f32 %v3714_v63, %v12892_v35  ;;  %v3720_v35 = vpop.permute.xlu0 %3719 }
0x14f8   :  { %v13091_v1 = vadd.f32 %v3717_v0, %v12895_v36  ;;  %v3729_v14 = vsel %vm90_vm1, %v12339_v13, %v3720_v35 }
0x14f9   :  { %3726 = vrot.lane.b32.xlu0 %v13088_v5, %s12392_s1  ;;  %10257 = vmatmul.mubr.msk.f32.vlgmr.msra.gmra.mrb[48].mxu1 %vm90_vm1, %v13088_v5 }
0x14fa   :  { %3741 = vrot.lane.b32.xlu1 %v13091_v1, %s12392_s1  ;;  %10287 = vmatmul.mubr.msk.f32.vlgmr.msra.gmra.mrb[48].mxu0 %vm90_vm1, %v13091_v1 }
0x14fb   :  { %11648 = vmatpush3.bf16.msra.mxu1 %v12491_v12  ;;  %11666 = vmatpush3.bf16.msra.mxu0 %v12491_v12  ;;  %v3735_v36 = vpop.permute.xlu0 %3734 }
0x14fc   :  { %11649 = vmatprep.subr.bf16.mxu1 %v12387_v3  ;;  %11667 = vmatprep.subr.bf16.mxu0 %v12387_v3  ;;  %v3744_v16 = vsel %vm90_vm1, %v12340_v31, %v3735_v36 }
0x14fd   :  { %10275 = vmatprep.mubr.msk.f32.mxu1 %vm12388_vm0, %v12389_v6  ;;  %10305 = vmatprep.mubr.msk.f32.mxu0 %vm12388_vm0, %v12389_v6  ;;  %v3745_v20 = vsel %vm171_vm2, %v3744_v16, %v3738_v9 }
0x14ff   :  { %11651 = vmatpush3.bf16.msra.mxu1 %v12513_v15  ;;  %11669 = vmatpush3.bf16.msra.mxu0 %v12513_v15  ;;  %v3723_v8 = vpop.permute.xlu0 %3722 }
0x1500   :  { %11652 = vmatprep.subr.bf16.mxu1 %v12387_v3  ;;  %11670 = vmatprep.subr.bf16.mxu0 %v12387_v3  ;;  %v3730_v17 = vsel %vm171_vm2, %v3729_v14, %v3723_v8 }
0x1503   :  { %11654 = vmatpush3.bf16.msra.mxu1 %v12525_v18  ;;  %11672 = vmatpush3.bf16.msra.mxu0 %v12525_v18 }
0x1504   :  { %11655 = vmatprep.subr.bf16.mxu1 %v12387_v3  ;;  %11673 = vmatprep.subr.bf16.mxu0 %v12387_v3 }
0x1507   :  { %11657 = vmatpush3.bf16.msra.mxu1 %v12535_v21  ;;  %11675 = vmatpush3.bf16.msra.mxu0 %v12535_v21 }
0x1508   :  { %11676 = vmatprep.subr.bf16.mxu1 %v12387_v3  ;;  %11694 = vmatprep.subr.bf16.mxu0 %v12387_v3 }
0x156b   :  { %v3727_v19 = vpop.permute.xlu0 %3726 }
0x156c   :  { %v3742_v23 = vpop.permute.xlu1 %3741  ;;  %v3732_v24 = vsel %vm3731_vm3, %v3730_v17, %v3727_v19 }
0x156d   :  { %v3746_v25 = vsel %vm3731_vm3, %v3745_v20, %v3742_v23  ;;  %3733 = vst [vmem:[%s13868_s8] sm:$0xff] %v3732_v24  ;;  %v4648_v20 = vstv %s8668_s6 }
0x156e   :  { %3747 = vst [vmem:[%s13868_s8 + $0x10] sm:$0xff] %v3746_v25 }
0x15cc   :  { %v3819_v26 = vpop.f32.mrb[48].mxu1 }
0x15cd   :  { %v3820_v27 = vadd.f32 %v12976_v53, %v3819_v26  ;;  %v3965_v28 = vpop.f32.mrb[48].mxu0  ;;  %v10258_v29 = vpop.f32.mrb[49].mxu1 }
0x15ce   :  { %v3966_v30 = vadd.f32 %v12976_v53, %v3965_v28  ;;  %v10288_v32 = vpop.f32.mrb[49].mxu0 }
0x15cf   :  { %12273 = vtanh.f32 %v3820_v27 }
0x15d0   :  { %12275 = vtanh.f32 %v3966_v30 }
0x15d9   :  { %v12274_v33 = vpop.eup %12273 }
0x15da   :  { %v12276_v55 = vpop.eup %12275  ;;  %10276 = vmatmul.mubr.msk.f32.vlgmr.msra.gmra.mrb[50].mxu1 %vm171_vm2, %v12274_v33 }
0x15db   :  { %10306 = vmatmul.mubr.msk.f32.vlgmr.msra.gmra.mrb[50].mxu0 %vm171_vm2, %v12276_v55  ;;  %11678 = vmatpush3.bf16.msra.mxu1 %v12458_v4 }
0x15dc   :  { %11696 = vmatpush3.bf16.msra.mxu0 %v12458_v4  ;;  %11679 = vmatprep.subr.bf16.mxu1 %v12387_v3 }
0x15dd   :  { %11697 = vmatprep.subr.bf16.mxu0 %v12387_v3  ;;  %10316 = vmatprep.mubr.msk.f32.mxu1 %vm12388_vm0, %v12389_v6 }
0x15de   :  { %10346 = vmatprep.mubr.msk.f32.mxu0 %vm12388_vm0, %v12389_v6 }
0x15df   :  { %11681 = vmatpush3.bf16.msra.mxu1 %v12469_v7 }
0x15e0   :  { %11699 = vmatpush3.bf16.msra.mxu0 %v12469_v7  ;;  %11682 = vmatprep.subr.bf16.mxu1 %v12387_v3 }
0x15e1   :  { %11700 = vmatprep.subr.bf16.mxu0 %v12387_v3 }
0x16ad   :  { %v3893_v56 = vpop.f32.mrb[50].mxu1 }
0x16ae   :  { %v13156_v37 = vadd.f32 %v12998_v2, %v3893_v56  ;;  %v4039_v38 = vpop.f32.mrb[50].mxu0  ;;  %v10277_v39 = vpop.f32.mrb[51].mxu1 }
0x16af   :  { %v13159_v40 = vadd.f32 %v12998_v2, %v4039_v38  ;;  %v10307_v41 = vpop.f32.mrb[51].mxu0 }
0x16b0   :  { %v4044_v22 = vmul.f32 %v4043_v34, %v13156_v37 }
0x16b1   :  { %v4193_v42 = vmul.f32 %v4043_v34, %v13159_v40 }
0x16b2   :  { %v4045_v44 = vadd.f32 %v4044_v22, %v13088_v5 }
0x16b3   :  { %v4194_v45 = vadd.f32 %v4193_v42, %v13091_v1 }
0x16b4   :  { %10317 = vmatmul.mubr.msk.f32.vlgmr.msra.gmra.mrb[52].mxu1 %vm90_vm1, %v4045_v44 }
0x16b5   :  { %10347 = vmatmul.mubr.msk.f32.vlgmr.msra.gmra.mrb[52].mxu0 %vm90_vm1, %v4194_v45  ;;  %11684 = vmatpush3.bf16.msra.mxu1 %v12491_v12 }
0x16b6   :  { %11702 = vmatpush3.bf16.msra.mxu0 %v12491_v12  ;;  %11685 = vmatprep.subr.bf16.mxu1 %v12387_v3 }
0x16b7   :  { %11703 = vmatprep.subr.bf16.mxu0 %v12387_v3  ;;  %10335 = vmatprep.mubr.msk.f32.mxu1 %vm12388_vm0, %v12389_v6 }
0x16b8   :  { %10365 = vmatprep.mubr.msk.f32.mxu0 %vm12388_vm0, %v12389_v6 }
0x16b9   :  { %11687 = vmatpush3.bf16.msra.mxu1 %v12513_v15 }
0x16ba   :  { %11705 = vmatpush3.bf16.msra.mxu0 %v12513_v15  ;;  %11688 = vmatprep.subr.bf16.mxu1 %v12387_v3 }
0x16bb   :  { %11706 = vmatprep.subr.bf16.mxu0 %v12387_v3 }
0x16bd   :  { %11690 = vmatpush3.bf16.msra.mxu1 %v12525_v18 }
0x16be   :  { %11708 = vmatpush3.bf16.msra.mxu0 %v12525_v18  ;;  %11691 = vmatprep.subr.bf16.mxu1 %v12387_v3 }
0x16bf   :  { %11709 = vmatprep.subr.bf16.mxu0 %v12387_v3 }
0x16c1   :  { %11693 = vmatpush3.bf16.msra.mxu1 %v12535_v21 }
0x16c2   :  { %11711 = vmatpush3.bf16.msra.mxu0 %v12535_v21  ;;  %11712 = vmatprep.subr.bf16.mxu1 %v12387_v3 }
0x16c3   :  { %11730 = vmatprep.subr.bf16.mxu0 %v12387_v3 }
0x1787   :  { %v4115_v43 = vpop.f32.mrb[52].mxu1 }
0x1788   :  { %v4116_v46 = vadd.f32 %v12976_v53, %v4115_v43  ;;  %v4264_v47 = vpop.f32.mrb[52].mxu0  ;;  %v10318_v48 = vpop.f32.mrb[53].mxu1 }
0x1789   :  { %v4265_v49 = vadd.f32 %v12976_v53, %v4264_v47  ;;  %v10348_v50 = vpop.f32.mrb[53].mxu0 }
0x178a   :  { %12277 = vtanh.f32 %v4116_v46  ;;  %v4948_v50 = vstv %s8670_s20 }
0x178b   :  { %12279 = vtanh.f32 %v4265_v49 }
0x1794   :  { %v12278_v51 = vpop.eup %12277 }
0x1795   :  { %v12280_v52 = vpop.eup %12279  ;;  %10336 = vmatmul.mubr.msk.f32.vlgmr.msra.gmra.mrb[54].mxu1 %vm171_vm2, %v12278_v51 }
0x1796   :  { %10366 = vmatmul.mubr.msk.f32.vlgmr.msra.gmra.mrb[54].mxu0 %vm171_vm2, %v12280_v52  ;;  %11714 = vmatpush3.bf16.msra.mxu1 %v12458_v4 }
0x1797   :  { %11732 = vmatpush3.bf16.msra.mxu0 %v12458_v4  ;;  %11715 = vmatprep.subr.bf16.mxu1 %v12387_v3 }
0x1798   :  { %11733 = vmatprep.subr.bf16.mxu0 %v12387_v3  ;;  %10376 = vmatprep.mubr.msk.f32.mxu1 %vm12388_vm0, %v12389_v6 }
0x1799   :  { %10406 = vmatprep.mubr.msk.f32.mxu0 %vm12388_vm0, %v12389_v6 }
0x179a   :  { %11717 = vmatpush3.bf16.msra.mxu1 %v12469_v7 }
0x179b   :  { %11735 = vmatpush3.bf16.msra.mxu0 %v12469_v7  ;;  %11718 = vmatprep.subr.bf16.mxu1 %v12387_v3 }
0x179c   :  { %11736 = vmatprep.subr.bf16.mxu0 %v12387_v3 }
0x1868   :  { %v4189_v54 = vpop.f32.mrb[54].mxu1 }
0x1869   :  { %v4190_v10 = vadd.f32 %v12998_v2, %v4189_v54  ;;  %v4338_v11 = vpop.f32.mrb[54].mxu0  ;;  %v10337_v57 = vpop.f32.mrb[55].mxu1 }
0x186a   :  { %v4339_v58 = vadd.f32 %v12998_v2, %v4338_v11  ;;  %v10367_v59 = vpop.f32.mrb[55].mxu0 }
0x186b   :  { %v4346_v60 = vmul.f32 %v4190_v10, %v4043_v34  ;;  %v4342_v16 = vmul.f32 2.0, %v4190_v10 }
0x186c   :  { %v4495_v61 = vmul.f32 %v4339_v58, %v4043_v34  ;;  %v4344_v17 = vmul.f32 2.0, %v4339_v58 }
0x186d   :  { %v4347_v62 = vadd.f32 %v4346_v60, %v13088_v5  ;;  %v4343_v28 = vadd.f32 %v4342_v16, %v13156_v37 }
0x186e   :  { %v4496_v63 = vadd.f32 %v4495_v61, %v13091_v1  ;;  %v4345_v32 = vadd.f32 %v4344_v17, %v13159_v40 }
0x186f   :  { %10377 = vmatmul.mubr.msk.f32.vlgmr.msra.gmra.mrb[56].mxu1 %vm90_vm1, %v4347_v62 }
0x1870   :  { %10407 = vmatmul.mubr.msk.f32.vlgmr.msra.gmra.mrb[56].mxu0 %vm90_vm1, %v4496_v63  ;;  %11720 = vmatpush3.bf16.msra.mxu1 %v12491_v12 }
0x1871   :  { %11738 = vmatpush3.bf16.msra.mxu0 %v12491_v12  ;;  %11721 = vmatprep.subr.bf16.mxu1 %v12387_v3 }
0x1872   :  { %11739 = vmatprep.subr.bf16.mxu0 %v12387_v3  ;;  %10395 = vmatprep.mubr.msk.f32.mxu1 %vm12388_vm0, %v12389_v6 }
0x1873   :  { %10425 = vmatprep.mubr.msk.f32.mxu0 %vm12388_vm0, %v12389_v6 }
0x1874   :  { %11723 = vmatpush3.bf16.msra.mxu1 %v12513_v15 }
0x1875   :  { %11741 = vmatpush3.bf16.msra.mxu0 %v12513_v15  ;;  %11724 = vmatprep.subr.bf16.mxu1 %v12387_v3 }
0x1876   :  { %11742 = vmatprep.subr.bf16.mxu0 %v12387_v3 }
0x1878   :  { %11726 = vmatpush3.bf16.msra.mxu1 %v12525_v18 }
0x1879   :  { %11744 = vmatpush3.bf16.msra.mxu0 %v12525_v18  ;;  %11727 = vmatprep.subr.bf16.mxu1 %v12387_v3 }
0x187a   :  { %11745 = vmatprep.subr.bf16.mxu0 %v12387_v3 }
0x187c   :  { %11729 = vmatpush3.bf16.msra.mxu1 %v12535_v21 }
0x187d   :  { %11747 = vmatpush3.bf16.msra.mxu0 %v12535_v21  ;;  %11748 = vmatprep.subr.bf16.mxu1 %v12387_v3 }
0x187e   :  { %11766 = vmatprep.subr.bf16.mxu0 %v12387_v3 }
0x1942   :  { %v4417_v0 = vpop.f32.mrb[56].mxu1 }
0x1943   :  { %v4418_v35 = vadd.f32 %v12976_v53, %v4417_v0  ;;  %v4566_v36 = vpop.f32.mrb[56].mxu0  ;;  %v10378_v8 = vpop.f32.mrb[57].mxu1 }
0x1944   :  { %v4567_v9 = vadd.f32 %v12976_v53, %v4566_v36  ;;  %v10408_v13 = vpop.f32.mrb[57].mxu0  ;;  %v5251_v8 = vstv %s8688_s21 }
0x1945   :  { %12281 = vtanh.f32 %v4418_v35 }
0x1946   :  { %12283 = vtanh.f32 %v4567_v9 }
0x194f   :  { %v12282_v14 = vpop.eup %12281 }
0x1950   :  { %v12284_v31 = vpop.eup %12283  ;;  %10396 = vmatmul.mubr.msk.f32.vlgmr.msra.gmra.mrb[58].mxu1 %vm171_vm2, %v12282_v14 }
0x1951   :  { %10426 = vmatmul.mubr.msk.f32.vlgmr.msra.gmra.mrb[58].mxu0 %vm171_vm2, %v12284_v31  ;;  %11750 = vmatpush3.bf16.msra.mxu1 %v12458_v4 }
0x1952   :  { %11768 = vmatpush3.bf16.msra.mxu0 %v12458_v4  ;;  %11751 = vmatprep.subr.bf16.mxu1 %v12387_v3 }
0x1953   :  { %11769 = vmatprep.subr.bf16.mxu0 %v12387_v3  ;;  %10436 = vmatprep.mubr.msk.f32.mxu1 %vm12388_vm0, %v12389_v6 }
0x1954   :  { %10466 = vmatprep.mubr.msk.f32.mxu0 %vm12388_vm0, %v12389_v6 }
0x1955   :  { %11753 = vmatpush3.bf16.msra.mxu1 %v12469_v7 }
0x1956   :  { %11771 = vmatpush3.bf16.msra.mxu0 %v12469_v7  ;;  %11754 = vmatprep.subr.bf16.mxu1 %v12387_v3 }
0x1957   :  { %11772 = vmatprep.subr.bf16.mxu0 %v12387_v3 }
0x1a23   :  { %v4491_v19 = vpop.f32.mrb[58].mxu1 }
0x1a24   :  { %v4492_v23 = vadd.f32 %v12998_v2, %v4491_v19  ;;  %v4640_v24 = vpop.f32.mrb[58].mxu0  ;;  %v10397_v25 = vpop.f32.mrb[59].mxu1 }
0x1a25   :  { %v4641_v26 = vadd.f32 %v12998_v2, %v4640_v24  ;;  %v10427_v27 = vpop.f32.mrb[59].mxu0 }
0x1a26   :  { %v4644_v29 = vmul.f32 2.0, %v4492_v23  ;;  %v4649_v30 = vmul.f32 %v4648_v20, %v4492_v23 }
0x1a27   :  { %v4646_v33 = vmul.f32 2.0, %v4641_v26  ;;  %v4798_v55 = vmul.f32 %v4648_v20, %v4641_v26 }
0x1a28   :  { %v4650_v56 = vadd.f32 %v4649_v30, %v13088_v5  ;;  %v4645_v34 = vadd.f32 %v4644_v29, %v4343_v28 }
0x1a29   :  { %v4799_v38 = vadd.f32 %v4798_v55, %v13091_v1  ;;  %v4647_v39 = vadd.f32 %v4646_v33, %v4345_v32 }
0x1a2a   :  { %10437 = vmatmul.mubr.msk.f32.vlgmr.msra.gmra.mrb[60].mxu1 %vm90_vm1, %v4650_v56 }
0x1a2b   :  { %10467 = vmatmul.mubr.msk.f32.vlgmr.msra.gmra.mrb[60].mxu0 %vm90_vm1, %v4799_v38  ;;  %11756 = vmatpush3.bf16.msra.mxu1 %v12491_v12 }
0x1a2c   :  { %11774 = vmatpush3.bf16.msra.mxu0 %v12491_v12  ;;  %11757 = vmatprep.subr.bf16.mxu1 %v12387_v3 }
0x1a2d   :  { %11775 = vmatprep.subr.bf16.mxu0 %v12387_v3  ;;  %10455 = vmatprep.mubr.msk.f32.mxu1 %vm12388_vm0, %v12389_v6 }
0x1a2e   :  { %10485 = vmatprep.mubr.msk.f32.mxu0 %vm12388_vm0, %v12389_v6 }
0x1a2f   :  { %11759 = vmatpush3.bf16.msra.mxu1 %v12513_v15 }
0x1a30   :  { %11777 = vmatpush3.bf16.msra.mxu0 %v12513_v15  ;;  %11760 = vmatprep.subr.bf16.mxu1 %v12387_v3 }
0x1a31   :  { %11778 = vmatprep.subr.bf16.mxu0 %v12387_v3 }
0x1a33   :  { %11762 = vmatpush3.bf16.msra.mxu1 %v12525_v18 }
0x1a34   :  { %11780 = vmatpush3.bf16.msra.mxu0 %v12525_v18  ;;  %11763 = vmatprep.subr.bf16.mxu1 %v12387_v3 }
0x1a35   :  { %11781 = vmatprep.subr.bf16.mxu0 %v12387_v3 }
0x1a37   :  { %11765 = vmatpush3.bf16.msra.mxu1 %v12535_v21 }
0x1a38   :  { %11783 = vmatpush3.bf16.msra.mxu0 %v12535_v21  ;;  %11784 = vmatprep.subr.bf16.mxu1 %v12387_v3 }
0x1a39   :  { %11802 = vmatprep.subr.bf16.mxu0 %v12387_v3 }
0x1afd   :  { %v4720_v37 = vpop.f32.mrb[60].mxu1 }
0x1afe   :  { %v4721_v40 = vadd.f32 %v12976_v53, %v4720_v37  ;;  %v4869_v41 = vpop.f32.mrb[60].mxu0  ;;  %v10438_v22 = vpop.f32.mrb[61].mxu1 }
0x1aff   :  { %v4870_v42 = vadd.f32 %v12976_v53, %v4869_v41  ;;  %v10468_v44 = vpop.f32.mrb[61].mxu0  ;;  %v13414_v22 = vld [vmem:[%s13865_s5] ss:$0 sm:$0xff] }
0x1b00   :  { %12285 = vtanh.f32 %v4721_v40 }
0x1b01   :  { %12287 = vtanh.f32 %v4870_v42 }
0x1b0a   :  { %v12286_v45 = vpop.eup %12285 }
0x1b0b   :  { %v12288_v43 = vpop.eup %12287  ;;  %10456 = vmatmul.mubr.msk.f32.vlgmr.msra.gmra.mrb[62].mxu1 %vm171_vm2, %v12286_v45 }
0x1b0c   :  { %10486 = vmatmul.mubr.msk.f32.vlgmr.msra.gmra.mrb[62].mxu0 %vm171_vm2, %v12288_v43  ;;  %11786 = vmatpush3.bf16.msra.mxu1 %v12458_v4 }
0x1b0d   :  { %11804 = vmatpush3.bf16.msra.mxu0 %v12458_v4  ;;  %11787 = vmatprep.subr.bf16.mxu1 %v12387_v3 }
0x1b0e   :  { %11805 = vmatprep.subr.bf16.mxu0 %v12387_v3  ;;  %10496 = vmatprep.mubr.msk.f32.mxu1 %vm12388_vm0, %v12389_v6 }
0x1b0f   :  { %10526 = vmatprep.mubr.msk.f32.mxu0 %vm12388_vm0, %v12389_v6 }
0x1b10   :  { %11789 = vmatpush3.bf16.msra.mxu1 %v12469_v7 }
0x1b11   :  { %11807 = vmatpush3.bf16.msra.mxu0 %v12469_v7  ;;  %11790 = vmatprep.subr.bf16.mxu1 %v12387_v3 }
0x1b12   :  { %11808 = vmatprep.subr.bf16.mxu0 %v12387_v3 }
0x1bde   :  { %v4794_v46 = vpop.f32.mrb[62].mxu1 }
0x1bdf   :  { %v4795_v47 = vadd.f32 %v12998_v2, %v4794_v46  ;;  %v4943_v48 = vpop.f32.mrb[62].mxu0  ;;  %v10457_v49 = vpop.f32.mrb[63].mxu1 }
0x1be0   :  { %v4944_v51 = vadd.f32 %v12998_v2, %v4943_v48  ;;  %v10487_v52 = vpop.f32.mrb[63].mxu0 }
0x1be1   :  { %v4947_v54 = vadd.f32 %v4795_v47, %v4645_v34  ;;  %v5856_v52 = vstv %s8687_s24 }
0x1be2   :  { %v4951_v10 = vadd.f32 %v4944_v51, %v4647_v39 }
0x1be3   :  { %v4949_v11 = vmul.f32 %v4948_v50, %v4947_v54  ;;  %v13435_v54 = vld [vmem:[%s13867_s7] ss:$0 sm:$0xff]  ;;  %s8689_s7 = sld [smem:[#allocation6 + $0x4]] }
0x1be4   :  { %v4952_v57 = vmul.f32 %v4951_v10, %v4948_v50 }
0x1be5   :  { %v13292_v58 = vadd.f32 %v4949_v11, %v13088_v5 }
0x1be6   :  { %v13295_v59 = vadd.f32 %v4952_v57, %v13091_v1 }
0x1be7   :  { %10497 = vmatmul.mubr.msk.f32.vlgmr.msra.gmra.mrb[64].mxu1 %vm90_vm1, %v13292_v58 }
0x1be8   :  { %10527 = vmatmul.mubr.msk.f32.vlgmr.msra.gmra.mrb[64].mxu0 %vm90_vm1, %v13295_v59  ;;  %11792 = vmatpush3.bf16.msra.mxu1 %v12491_v12 }
0x1be9   :  { %11810 = vmatpush3.bf16.msra.mxu0 %v12491_v12  ;;  %11793 = vmatprep.subr.bf16.mxu1 %v12387_v3 }
0x1bea   :  { %11811 = vmatprep.subr.bf16.mxu0 %v12387_v3  ;;  %10515 = vmatprep.mubr.msk.f32.mxu1 %vm12388_vm0, %v12389_v6 }
0x1beb   :  { %10545 = vmatprep.mubr.msk.f32.mxu0 %vm12388_vm0, %v12389_v6 }
0x1bec   :  { %11795 = vmatpush3.bf16.msra.mxu1 %v12513_v15 }
0x1bed   :  { %11813 = vmatpush3.bf16.msra.mxu0 %v12513_v15  ;;  %11796 = vmatprep.subr.bf16.mxu1 %v12387_v3 }
0x1bee   :  { %11814 = vmatprep.subr.bf16.mxu0 %v12387_v3 }
0x1bf0   :  { %11798 = vmatpush3.bf16.msra.mxu1 %v12525_v18 }
0x1bf1   :  { %11816 = vmatpush3.bf16.msra.mxu0 %v12525_v18  ;;  %11799 = vmatprep.subr.bf16.mxu1 %v12387_v3 }
0x1bf2   :  { %11817 = vmatprep.subr.bf16.mxu0 %v12387_v3 }
0x1bf4   :  { %11801 = vmatpush3.bf16.msra.mxu1 %v12535_v21 }
0x1bf5   :  { %11819 = vmatpush3.bf16.msra.mxu0 %v12535_v21  ;;  %11820 = vmatprep.subr.bf16.mxu1 %v12387_v3 }
0x1bf6   :  { %11838 = vmatprep.subr.bf16.mxu0 %v12387_v3 }
0x1cba   :  { %v5026_v5 = vpop.f32.mrb[64].mxu1 }
0x1cbb   :  { %v5027_v1 = vadd.f32 %v12976_v53, %v5026_v5  ;;  %v5173_v60 = vpop.f32.mrb[64].mxu0  ;;  %v10498_v61 = vpop.f32.mrb[65].mxu1 }
0x1cbc   :  { %v5174_v62 = vadd.f32 %v12976_v53, %v5173_v60  ;;  %v10528_v63 = vpop.f32.mrb[65].mxu0 }
0x1cbd   :  { %12289 = vtanh.f32 %v5027_v1 }
0x1cbe   :  { %12291 = vtanh.f32 %v5174_v62 }
0x1cc7   :  { %v12290_v0 = vpop.eup %12289 }
0x1cc8   :  { %v12292_v35 = vpop.eup %12291  ;;  %10516 = vmatmul.mubr.msk.f32.vlgmr.msra.gmra.mrb[66].mxu1 %vm171_vm2, %v12290_v0 }
0x1cc9   :  { %10546 = vmatmul.mubr.msk.f32.vlgmr.msra.gmra.mrb[66].mxu0 %vm171_vm2, %v12292_v35  ;;  %11822 = vmatpush3.bf16.msra.mxu1 %v12458_v4 }
0x1cca   :  { %11840 = vmatpush3.bf16.msra.mxu0 %v12458_v4  ;;  %11823 = vmatprep.subr.bf16.mxu1 %v12387_v3 }
0x1ccb   :  { %11841 = vmatprep.subr.bf16.mxu0 %v12387_v3  ;;  %10556 = vmatprep.mubr.msk.f32.mxu1 %vm12388_vm0, %v12389_v6 }
0x1ccc   :  { %10586 = vmatprep.mubr.msk.f32.mxu0 %vm12388_vm0, %v12389_v6 }
0x1ccd   :  { %11825 = vmatpush3.bf16.msra.mxu1 %v12469_v7 }
0x1cce   :  { %11843 = vmatpush3.bf16.msra.mxu0 %v12469_v7  ;;  %11826 = vmatprep.subr.bf16.mxu1 %v12387_v3 }
0x1ccf   :  { %11844 = vmatprep.subr.bf16.mxu0 %v12387_v3 }
0x1d9b   :  { %v5100_v36 = vpop.f32.mrb[66].mxu1 }
0x1d9c   :  { %v13338_v9 = vadd.f32 %v12998_v2, %v5100_v36  ;;  %v5247_v13 = vpop.f32.mrb[66].mxu0  ;;  %v10517_v14 = vpop.f32.mrb[67].mxu1 }
0x1d9d   :  { %v13341_v31 = vadd.f32 %v12998_v2, %v5247_v13  ;;  %v10547_v16 = vpop.f32.mrb[67].mxu0 }
0x1d9e   :  { %v5252_v17 = vmul.f32 %v5251_v8, %v13338_v9 }
0x1d9f   :  { %v5401_v19 = vmul.f32 %v5251_v8, %v13341_v31 }
0x1da0   :  { %v5253_v20 = vadd.f32 %v5252_v17, %v13292_v58 }
0x1da1   :  { %v5402_v23 = vadd.f32 %v5401_v19, %v13295_v59 }
0x1da2   :  { %10557 = vmatmul.mubr.msk.f32.vlgmr.msra.gmra.mrb[68].mxu1 %vm90_vm1, %v5253_v20 }
0x1da3   :  { %10587 = vmatmul.mubr.msk.f32.vlgmr.msra.gmra.mrb[68].mxu0 %vm90_vm1, %v5402_v23  ;;  %11828 = vmatpush3.bf16.msra.mxu1 %v12491_v12 }
0x1da4   :  { %11846 = vmatpush3.bf16.msra.mxu0 %v12491_v12  ;;  %11829 = vmatprep.subr.bf16.mxu1 %v12387_v3 }
0x1da5   :  { %11847 = vmatprep.subr.bf16.mxu0 %v12387_v3  ;;  %10575 = vmatprep.mubr.msk.f32.mxu1 %vm12388_vm0, %v12389_v6 }
0x1da6   :  { %10605 = vmatprep.mubr.msk.f32.mxu0 %vm12388_vm0, %v12389_v6 }
0x1da7   :  { %11831 = vmatpush3.bf16.msra.mxu1 %v12513_v15 }
0x1da8   :  { %11849 = vmatpush3.bf16.msra.mxu0 %v12513_v15  ;;  %11832 = vmatprep.subr.bf16.mxu1 %v12387_v3 }
0x1da9   :  { %11850 = vmatprep.subr.bf16.mxu0 %v12387_v3 }
0x1dab   :  { %11834 = vmatpush3.bf16.msra.mxu1 %v12525_v18 }
0x1dac   :  { %11852 = vmatpush3.bf16.msra.mxu0 %v12525_v18  ;;  %11835 = vmatprep.subr.bf16.mxu1 %v12387_v3 }
0x1dad   :  { %11853 = vmatprep.subr.bf16.mxu0 %v12387_v3 }
0x1daf   :  { %11837 = vmatpush3.bf16.msra.mxu1 %v12535_v21 }
0x1db0   :  { %11855 = vmatpush3.bf16.msra.mxu0 %v12535_v21  ;;  %11856 = vmatprep.subr.bf16.mxu1 %v12387_v3 }
0x1db1   :  { %11874 = vmatprep.subr.bf16.mxu0 %v12387_v3 }
0x1e75   :  { %v5323_v24 = vpop.f32.mrb[68].mxu1 }
0x1e76   :  { %v5324_v25 = vadd.f32 %v12976_v53, %v5323_v24  ;;  %v5472_v26 = vpop.f32.mrb[68].mxu0  ;;  %v10558_v27 = vpop.f32.mrb[69].mxu1 }
0x1e77   :  { %v5473_v28 = vadd.f32 %v12976_v53, %v5472_v26  ;;  %v10588_v29 = vpop.f32.mrb[69].mxu0 }
0x1e78   :  { %12293 = vtanh.f32 %v5324_v25  ;;  %v6156_v29 = vstv %s8689_s7 }
0x1e79   :  { %12295 = vtanh.f32 %v5473_v28 }
0x1e82   :  { %v12294_v30 = vpop.eup %12293 }
0x1e83   :  { %v12296_v32 = vpop.eup %12295  ;;  %10576 = vmatmul.mubr.msk.f32.vlgmr.msra.gmra.mrb[70].mxu1 %vm171_vm2, %v12294_v30 }
0x1e84   :  { %10606 = vmatmul.mubr.msk.f32.vlgmr.msra.gmra.mrb[70].mxu0 %vm171_vm2, %v12296_v32  ;;  %11858 = vmatpush3.bf16.msra.mxu1 %v12458_v4 }
0x1e85   :  { %11876 = vmatpush3.bf16.msra.mxu0 %v12458_v4  ;;  %11859 = vmatprep.subr.bf16.mxu1 %v12387_v3 }
0x1e86   :  { %11877 = vmatprep.subr.bf16.mxu0 %v12387_v3  ;;  %10616 = vmatprep.mubr.msk.f32.mxu1 %vm12388_vm0, %v12389_v6 }
0x1e87   :  { %10646 = vmatprep.mubr.msk.f32.mxu0 %vm12388_vm0, %v12389_v6 }
0x1e88   :  { %11861 = vmatpush3.bf16.msra.mxu1 %v12469_v7 }
0x1e89   :  { %11879 = vmatpush3.bf16.msra.mxu0 %v12469_v7  ;;  %11862 = vmatprep.subr.bf16.mxu1 %v12387_v3 }
0x1e8a   :  { %11880 = vmatprep.subr.bf16.mxu0 %v12387_v3 }
0x1f56   :  { %v5397_v53 = vpop.f32.mrb[70].mxu1 }
0x1f57   :  { %v5398_v33 = vadd.f32 %v12998_v2, %v5397_v53  ;;  %v5546_v55 = vpop.f32.mrb[70].mxu0  ;;  %v10577_v56 = vpop.f32.mrb[71].mxu1 }
0x1f58   :  { %v5547_v34 = vadd.f32 %v12998_v2, %v5546_v55  ;;  %v10607_v38 = vpop.f32.mrb[71].mxu0 }
0x1f59   :  { %v5554_v39 = vmul.f32 %v5398_v33, %v5251_v8  ;;  %v5550_v49 = vmul.f32 2.0, %v5398_v33 }
0x1f5a   :  { %v5703_v37 = vmul.f32 %v5547_v34, %v5251_v8  ;;  %v5552_v50 = vmul.f32 2.0, %v5547_v34 }
0x1f5b   :  { %v5555_v40 = vadd.f32 %v5554_v39, %v13292_v58  ;;  %v5551_v60 = vadd.f32 %v5550_v49, %v13338_v9 }
0x1f5c   :  { %v5704_v41 = vadd.f32 %v5703_v37, %v13295_v59  ;;  %v5553_v63 = vadd.f32 %v5552_v50, %v13341_v31 }
0x1f5d   :  { %10617 = vmatmul.mubr.msk.f32.vlgmr.msra.gmra.mrb[72].mxu1 %vm90_vm1, %v5555_v40 }
0x1f5e   :  { %10647 = vmatmul.mubr.msk.f32.vlgmr.msra.gmra.mrb[72].mxu0 %vm90_vm1, %v5704_v41  ;;  %11864 = vmatpush3.bf16.msra.mxu1 %v12491_v12 }
0x1f5f   :  { %11882 = vmatpush3.bf16.msra.mxu0 %v12491_v12  ;;  %11865 = vmatprep.subr.bf16.mxu1 %v12387_v3 }
0x1f60   :  { %11883 = vmatprep.subr.bf16.mxu0 %v12387_v3  ;;  %10635 = vmatprep.mubr.msk.f32.mxu1 %vm12388_vm0, %v12389_v6 }
0x1f61   :  { %10665 = vmatprep.mubr.msk.f32.mxu0 %vm12388_vm0, %v12389_v6 }
0x1f62   :  { %11867 = vmatpush3.bf16.msra.mxu1 %v12513_v15 }
0x1f63   :  { %11885 = vmatpush3.bf16.msra.mxu0 %v12513_v15  ;;  %11868 = vmatprep.subr.bf16.mxu1 %v12387_v3 }
0x1f64   :  { %11886 = vmatprep.subr.bf16.mxu0 %v12387_v3 }
0x1f66   :  { %11870 = vmatpush3.bf16.msra.mxu1 %v12525_v18 }
0x1f67   :  { %11888 = vmatpush3.bf16.msra.mxu0 %v12525_v18  ;;  %11871 = vmatprep.subr.bf16.mxu1 %v12387_v3 }
0x1f68   :  { %11889 = vmatprep.subr.bf16.mxu0 %v12387_v3 }
0x1f6a   :  { %11873 = vmatpush3.bf16.msra.mxu1 %v12535_v21 }
0x1f6b   :  { %11891 = vmatpush3.bf16.msra.mxu0 %v12535_v21  ;;  %11892 = vmatprep.subr.bf16.mxu1 %v12387_v3 }
0x1f6c   :  { %11910 = vmatprep.subr.bf16.mxu0 %v12387_v3 }
0x2030   :  { %v5625_v2 = vpop.f32.mrb[72].mxu1 }
0x2031   :  { %v5626_v42 = vadd.f32 %v13414_v22, %v5625_v2  ;;  %v5774_v44 = vpop.f32.mrb[72].mxu0  ;;  %v10618_v45 = vpop.f32.mrb[73].mxu1 }
0x2032   :  { %v5775_v43 = vadd.f32 %v13414_v22, %v5774_v44  ;;  %v10648_v46 = vpop.f32.mrb[73].mxu0 }
0x2033   :  { %12297 = vtanh.f32 %v5626_v42 }
0x2034   :  { %12299 = vtanh.f32 %v5775_v43 }
0x203d   :  { %v12298_v47 = vpop.eup %12297 }
0x203e   :  { %v12300_v48 = vpop.eup %12299  ;;  %10636 = vmatmul.mubr.msk.f32.vlgmr.msra.gmra.mrb[74].mxu1 %vm171_vm2, %v12298_v47 }
0x203f   :  { %10666 = vmatmul.mubr.msk.f32.vlgmr.msra.gmra.mrb[74].mxu0 %vm171_vm2, %v12300_v48  ;;  %11894 = vmatpush3.bf16.msra.mxu1 %v12458_v4 }
0x2040   :  { %11912 = vmatpush3.bf16.msra.mxu0 %v12458_v4  ;;  %11895 = vmatprep.subr.bf16.mxu1 %v12387_v3 }
0x2041   :  { %11913 = vmatprep.subr.bf16.mxu0 %v12387_v3  ;;  %10676 = vmatprep.mubr.msk.f32.mxu1 %vm12388_vm0, %v12389_v6 }
0x2042   :  { %10706 = vmatprep.mubr.msk.f32.mxu0 %vm12388_vm0, %v12389_v6 }
0x2043   :  { %11897 = vmatpush3.bf16.msra.mxu1 %v12469_v7 }
0x2044   :  { %11915 = vmatpush3.bf16.msra.mxu0 %v12469_v7  ;;  %11898 = vmatprep.subr.bf16.mxu1 %v12387_v3 }
0x2045   :  { %11916 = vmatprep.subr.bf16.mxu0 %v12387_v3 }
0x2111   :  { %v5699_v51 = vpop.f32.mrb[74].mxu1 }
0x2112   :  { %v5700_v10 = vadd.f32 %v13435_v54, %v5699_v51  ;;  %v5848_v11 = vpop.f32.mrb[74].mxu0  ;;  %v10637_v57 = vpop.f32.mrb[75].mxu1 }
0x2113   :  { %v5849_v5 = vadd.f32 %v13435_v54, %v5848_v11  ;;  %v10667_v1 = vpop.f32.mrb[75].mxu0 }
0x2114   :  { %v5852_v61 = vmul.f32 2.0, %v5700_v10  ;;  %v5857_v62 = vmul.f32 %v5856_v52, %v5700_v10 }
0x2115   :  { %v5854_v0 = vmul.f32 2.0, %v5849_v5  ;;  %v6006_v35 = vmul.f32 %v5856_v52, %v5849_v5 }
0x2116   :  { %v5858_v36 = vadd.f32 %v5857_v62, %v13292_v58  ;;  %v5853_v8 = vadd.f32 %v5852_v61, %v5551_v60 }
0x2117   :  { %v6007_v13 = vadd.f32 %v6006_v35, %v13295_v59  ;;  %v5855_v14 = vadd.f32 %v5854_v0, %v5553_v63 }
0x2118   :  { %10677 = vmatmul.mubr.msk.f32.vlgmr.msra.gmra.mrb[76].mxu1 %vm90_vm1, %v5858_v36 }
0x2119   :  { %10707 = vmatmul.mubr.msk.f32.vlgmr.msra.gmra.mrb[76].mxu0 %vm90_vm1, %v6007_v13  ;;  %11900 = vmatpush3.bf16.msra.mxu1 %v12491_v12 }
0x211a   :  { %11918 = vmatpush3.bf16.msra.mxu0 %v12491_v12  ;;  %11901 = vmatprep.subr.bf16.mxu1 %v12387_v3 }
0x211b   :  { %11919 = vmatprep.subr.bf16.mxu0 %v12387_v3  ;;  %10695 = vmatprep.mubr.msk.f32.mxu1 %vm12388_vm0, %v12389_v6 }
0x211c   :  { %10725 = vmatprep.mubr.msk.f32.mxu0 %vm12388_vm0, %v12389_v6 }
0x211d   :  { %11903 = vmatpush3.bf16.msra.mxu1 %v12513_v15 }
0x211e   :  { %11921 = vmatpush3.bf16.msra.mxu0 %v12513_v15  ;;  %11904 = vmatprep.subr.bf16.mxu1 %v12387_v3 }
0x211f   :  { %11922 = vmatprep.subr.bf16.mxu0 %v12387_v3 }
0x2121   :  { %11906 = vmatpush3.bf16.msra.mxu1 %v12525_v18 }
0x2122   :  { %11924 = vmatpush3.bf16.msra.mxu0 %v12525_v18  ;;  %11907 = vmatprep.subr.bf16.mxu1 %v12387_v3 }
0x2123   :  { %11925 = vmatprep.subr.bf16.mxu0 %v12387_v3 }
0x2125   :  { %11909 = vmatpush3.bf16.msra.mxu1 %v12535_v21 }
0x2126   :  { %11927 = vmatpush3.bf16.msra.mxu0 %v12535_v21  ;;  %11928 = vmatprep.subr.bf16.mxu1 %v12387_v3 }
0x2127   :  { %11946 = vmatprep.subr.bf16.mxu0 %v12387_v3 }
0x21eb   :  { %v5928_v9 = vpop.f32.mrb[76].mxu1 }
0x21ec   :  { %v5929_v31 = vadd.f32 %v13414_v22, %v5928_v9  ;;  %v6077_v16 = vpop.f32.mrb[76].mxu0  ;;  %v10678_v17 = vpop.f32.mrb[77].mxu1 }
0x21ed   :  { %v6078_v19 = vadd.f32 %v13414_v22, %v6077_v16  ;;  %v10708_v20 = vpop.f32.mrb[77].mxu0 }
0x21ee   :  { %12301 = vtanh.f32 %v5929_v31 }
0x21ef   :  { %12303 = vtanh.f32 %v6078_v19 }
0x21f8   :  { %v12302_v23 = vpop.eup %12301 }
0x21f9   :  { %v12304_v24 = vpop.eup %12303  ;;  %10696 = vmatmul.mubr.msk.f32.vlgmr.msra.gmra.mrb[78].mxu1 %vm171_vm2, %v12302_v23 }
0x21fa   :  { %10726 = vmatmul.mubr.msk.f32.vlgmr.msra.gmra.mrb[78].mxu0 %vm171_vm2, %v12304_v24  ;;  %11930 = vmatpush3.bf16.msra.mxu1 %v12458_v4 }
0x21fb   :  { %11948 = vmatpush3.bf16.msra.mxu0 %v12458_v4  ;;  %11931 = vmatprep.subr.bf16.mxu1 %v12387_v3 }
0x21fc   :  { %11949 = vmatprep.subr.bf16.mxu0 %v12387_v3  ;;  %10736 = vmatprep.mubr.msk.f32.mxu1 %vm12388_vm0, %v12389_v6 }
0x21fd   :  { %10766 = vmatprep.mubr.msk.f32.mxu0 %vm12388_vm0, %v12389_v6 }
0x21fe   :  { %11933 = vmatpush3.bf16.msra.mxu1 %v12469_v7 }
0x21ff   :  { %11951 = vmatpush3.bf16.msra.mxu0 %v12469_v7  ;;  %11934 = vmatprep.subr.bf16.mxu1 %v12387_v3 }
0x2200   :  { %11952 = vmatprep.subr.bf16.mxu0 %v12387_v3 }
0x22cc   :  { %v6002_v25 = vpop.f32.mrb[78].mxu1 }
0x22cd   :  { %v6003_v26 = vadd.f32 %v13435_v54, %v6002_v25  ;;  %v6151_v27 = vpop.f32.mrb[78].mxu0  ;;  %v10697_v28 = vpop.f32.mrb[79].mxu1 }
0x22ce   :  { %v6152_v30 = vadd.f32 %v13435_v54, %v6151_v27  ;;  %v10727_v32 = vpop.f32.mrb[79].mxu0 }
0x22cf   :  { %v6155_v53 = vadd.f32 %v6003_v26, %v5853_v8 }
0x22d0   :  { %v6159_v33 = vadd.f32 %v6152_v30, %v5855_v14 }
0x22d1   :  { %v6157_v55 = vmul.f32 %v6156_v29, %v6155_v53 }
0x22d2   :  { %v6160_v56 = vmul.f32 %v6159_v33, %v6156_v29 }
0x22d3   :  { %v13484_v34 = vadd.f32 %v6157_v55, %v13292_v58  ;;  %v7064_v55 = vstv %s8706_s27 }
0x22d4   :  { %v13487_v38 = vadd.f32 %v6160_v56, %v13295_v59 }
0x22d5   :  { %8578 = vrot.lane.b32.xlu1 %v13484_v34, %s12390_s25  ;;  %10737 = vmatmul.mubr.msk.f32.vlgmr.msra.gmra.mrb[80].mxu1 %vm90_vm1, %v13484_v34 }
0x22d6   :  { %10767 = vmatmul.mubr.msk.f32.vlgmr.msra.gmra.mrb[80].mxu0 %vm90_vm1, %v13487_v38  ;;  %11936 = vmatpush3.bf16.msra.mxu1 %v12491_v12 }
0x22d7   :  { %11954 = vmatpush3.bf16.msra.mxu0 %v12491_v12  ;;  %11937 = vmatprep.subr.bf16.mxu1 %v12387_v3 }
0x22d8   :  { %11955 = vmatprep.subr.bf16.mxu0 %v12387_v3  ;;  %10755 = vmatprep.mubr.msk.f32.mxu1 %vm12388_vm0, %v12389_v6 }
0x22d9   :  { %8592 = vrot.lane.b32.xlu1 %v13487_v38, %s12390_s25  ;;  %10785 = vmatprep.mubr.msk.f32.mxu0 %vm12388_vm0, %v12389_v6  ;;  %s8707_s25 = sld [smem:[#allocation4 + $0x5]] }
0x22da   :  { %11939 = vmatpush3.bf16.msra.mxu1 %v12513_v15 }
0x22db   :  { %11957 = vmatpush3.bf16.msra.mxu0 %v12513_v15  ;;  %11940 = vmatprep.subr.bf16.mxu1 %v12387_v3 }
0x22dc   :  { %11958 = vmatprep.subr.bf16.mxu0 %v12387_v3 }
0x22de   :  { %11942 = vmatpush3.bf16.msra.mxu1 %v12525_v18 }
0x22df   :  { %11960 = vmatpush3.bf16.msra.mxu0 %v12525_v18  ;;  %11943 = vmatprep.subr.bf16.mxu1 %v12387_v3  ;;  %v6459_v46 = vstv %s8707_s25 }
0x22e0   :  { %11961 = vmatprep.subr.bf16.mxu0 %v12387_v3 }
0x22e2   :  { %11945 = vmatpush3.bf16.msra.mxu1 %v12535_v21 }
0x22e3   :  { %11963 = vmatpush3.bf16.msra.mxu0 %v12535_v21  ;;  %11964 = vmatprep.subr.bf16.mxu1 %v12387_v3 }
0x22e4   :  { %11982 = vmatprep.subr.bf16.mxu0 %v12387_v3 }
0x23a8   :  { %v6234_v39 = vpop.f32.mrb[80].mxu1 }
0x23a9   :  { %v6235_v37 = vadd.f32 %v13414_v22, %v6234_v39  ;;  %v6381_v40 = vpop.f32.mrb[80].mxu0  ;;  %v10738_v41 = vpop.f32.mrb[81].mxu1 }
0x23aa   :  { %v6382_v2 = vadd.f32 %v13414_v22, %v6381_v40  ;;  %v10768_v42 = vpop.f32.mrb[81].mxu0 }
0x23ab   :  { %12305 = vtanh.f32 %v6235_v37 }
0x23ac   :  { %12307 = vtanh.f32 %v6382_v2 }
0x23b5   :  { %v12306_v44 = vpop.eup %12305 }
0x23b6   :  { %v12308_v45 = vpop.eup %12307  ;;  %10756 = vmatmul.mubr.msk.f32.vlgmr.msra.gmra.mrb[82].mxu1 %vm171_vm2, %v12306_v44 }
0x23b7   :  { %10786 = vmatmul.mubr.msk.f32.vlgmr.msra.gmra.mrb[82].mxu0 %vm171_vm2, %v12308_v45  ;;  %11966 = vmatpush3.bf16.msra.mxu1 %v12458_v4 }
0x23b8   :  { %11984 = vmatpush3.bf16.msra.mxu0 %v12458_v4  ;;  %11967 = vmatprep.subr.bf16.mxu1 %v12387_v3 }
0x23b9   :  { %11985 = vmatprep.subr.bf16.mxu0 %v12387_v3  ;;  %10796 = vmatprep.mubr.msk.f32.mxu1 %vm12388_vm0, %v12389_v6 }
0x23ba   :  { %10826 = vmatprep.mubr.msk.f32.mxu0 %vm12388_vm0, %v12389_v6 }
0x23bb   :  { %11969 = vmatpush3.bf16.msra.mxu1 %v12469_v7 }
0x23bc   :  { %11987 = vmatpush3.bf16.msra.mxu0 %v12469_v7  ;;  %11970 = vmatprep.subr.bf16.mxu1 %v12387_v3 }
0x23bd   :  { %11988 = vmatprep.subr.bf16.mxu0 %v12387_v3 }
0x2489   :  { %v6308_v43 = vpop.f32.mrb[82].mxu1 }
0x248a   :  { %v13534_v47 = vadd.f32 %v13435_v54, %v6308_v43  ;;  %v6455_v48 = vpop.f32.mrb[82].mxu0  ;;  %v10757_v49 = vpop.f32.mrb[83].mxu1 }
0x248b   :  { %v13537_v50 = vadd.f32 %v13435_v54, %v6455_v48  ;;  %v10787_v51 = vpop.f32.mrb[83].mxu0 }
0x248c   :  { %v6460_v52 = vmul.f32 %v6459_v46, %v13534_v47 }
0x248d   :  { %v6609_v10 = vmul.f32 %v6459_v46, %v13537_v50 }
0x248e   :  { %v6461_v11 = vadd.f32 %v6460_v52, %v13484_v34 }
0x248f   :  { %v6610_v57 = vadd.f32 %v6609_v10, %v13487_v38 }
0x2490   :  { %10797 = vmatmul.mubr.msk.f32.vlgmr.msra.gmra.mrb[84].mxu1 %vm90_vm1, %v6461_v11 }
0x2491   :  { %10827 = vmatmul.mubr.msk.f32.vlgmr.msra.gmra.mrb[84].mxu0 %vm90_vm1, %v6610_v57  ;;  %11972 = vmatpush3.bf16.msra.mxu1 %v12491_v12 }
0x2492   :  { %11990 = vmatpush3.bf16.msra.mxu0 %v12491_v12  ;;  %11973 = vmatprep.subr.bf16.mxu1 %v12387_v3 }
0x2493   :  { %11991 = vmatprep.subr.bf16.mxu0 %v12387_v3  ;;  %10815 = vmatprep.mubr.msk.f32.mxu1 %vm12388_vm0, %v12389_v6 }
0x2494   :  { %10845 = vmatprep.mubr.msk.f32.mxu0 %vm12388_vm0, %v12389_v6 }
0x2495   :  { %11975 = vmatpush3.bf16.msra.mxu1 %v12513_v15 }
0x2496   :  { %11993 = vmatpush3.bf16.msra.mxu0 %v12513_v15  ;;  %11976 = vmatprep.subr.bf16.mxu1 %v12387_v3 }
0x2497   :  { %11994 = vmatprep.subr.bf16.mxu0 %v12387_v3 }
0x2499   :  { %11978 = vmatpush3.bf16.msra.mxu1 %v12525_v18 }
0x249a   :  { %11996 = vmatpush3.bf16.msra.mxu0 %v12525_v18  ;;  %11979 = vmatprep.subr.bf16.mxu1 %v12387_v3 }
0x249b   :  { %11997 = vmatprep.subr.bf16.mxu0 %v12387_v3 }
0x249d   :  { %11981 = vmatpush3.bf16.msra.mxu1 %v12535_v21 }
0x249e   :  { %11999 = vmatpush3.bf16.msra.mxu0 %v12535_v21  ;;  %12000 = vmatprep.subr.bf16.mxu1 %v12387_v3 }
0x249f   :  { %12018 = vmatprep.subr.bf16.mxu0 %v12387_v3 }
0x2563   :  { %v6531_v5 = vpop.f32.mrb[84].mxu1 }
0x2564   :  { %v6532_v1 = vadd.f32 %v13414_v22, %v6531_v5  ;;  %v6680_v60 = vpop.f32.mrb[84].mxu0  ;;  %v10798_v61 = vpop.f32.mrb[85].mxu1 }
0x2565   :  { %v6681_v62 = vadd.f32 %v13414_v22, %v6680_v60  ;;  %v10828_v63 = vpop.f32.mrb[85].mxu0 }
0x2566   :  { %12309 = vtanh.f32 %v6532_v1 }
0x2567   :  { %12311 = vtanh.f32 %v6681_v62 }
0x2570   :  { %v12310_v0 = vpop.eup %12309 }
0x2571   :  { %v12312_v35 = vpop.eup %12311  ;;  %10816 = vmatmul.mubr.msk.f32.vlgmr.msra.gmra.mrb[86].mxu1 %vm171_vm2, %v12310_v0 }
0x2572   :  { %10846 = vmatmul.mubr.msk.f32.vlgmr.msra.gmra.mrb[86].mxu0 %vm171_vm2, %v12312_v35  ;;  %12002 = vmatpush3.bf16.msra.mxu1 %v12458_v4  ;;  %v7364_v35 = vstv %s8708_s29 }
0x2573   :  { %12020 = vmatpush3.bf16.msra.mxu0 %v12458_v4  ;;  %12003 = vmatprep.subr.bf16.mxu1 %v12387_v3 }
0x2574   :  { %12021 = vmatprep.subr.bf16.mxu0 %v12387_v3  ;;  %10856 = vmatprep.mubr.msk.f32.mxu1 %vm12388_vm0, %v12389_v6 }
0x2575   :  { %10886 = vmatprep.mubr.msk.f32.mxu0 %vm12388_vm0, %v12389_v6 }
0x2576   :  { %12005 = vmatpush3.bf16.msra.mxu1 %v12469_v7 }
0x2577   :  { %12023 = vmatpush3.bf16.msra.mxu0 %v12469_v7  ;;  %12006 = vmatprep.subr.bf16.mxu1 %v12387_v3 }
0x2578   :  { %12024 = vmatprep.subr.bf16.mxu0 %v12387_v3 }
0x2644   :  { %v6605_v36 = vpop.f32.mrb[86].mxu1 }
0x2645   :  { %v6606_v8 = vadd.f32 %v13435_v54, %v6605_v36  ;;  %v6754_v13 = vpop.f32.mrb[86].mxu0  ;;  %v10817_v14 = vpop.f32.mrb[87].mxu1 }
0x2646   :  { %v6755_v9 = vadd.f32 %v13435_v54, %v6754_v13  ;;  %v10847_v31 = vpop.f32.mrb[87].mxu0 }
0x2647   :  { %v6762_v16 = vmul.f32 %v6606_v8, %v6459_v46  ;;  %v6758_v32 = vmul.f32 2.0, %v6606_v8 }
0x2648   :  { %v6911_v17 = vmul.f32 %v6755_v9, %v6459_v46  ;;  %v6760_v53 = vmul.f32 2.0, %v6755_v9 }
0x2649   :  { %v6763_v19 = vadd.f32 %v6762_v16, %v13484_v34  ;;  %v6759_v2 = vadd.f32 %v6758_v32, %v13534_v47 }
0x264a   :  { %v6912_v20 = vadd.f32 %v6911_v17, %v13487_v38  ;;  %v6761_v45 = vadd.f32 %v6760_v53, %v13537_v50 }
0x264b   :  { %10857 = vmatmul.mubr.msk.f32.vlgmr.msra.gmra.mrb[88].mxu1 %vm90_vm1, %v6763_v19 }
0x264c   :  { %10887 = vmatmul.mubr.msk.f32.vlgmr.msra.gmra.mrb[88].mxu0 %vm90_vm1, %v6912_v20  ;;  %12008 = vmatpush3.bf16.msra.mxu1 %v12491_v12 }
0x264d   :  { %12026 = vmatpush3.bf16.msra.mxu0 %v12491_v12  ;;  %12009 = vmatprep.subr.bf16.mxu1 %v12387_v3 }
0x264e   :  { %12027 = vmatprep.subr.bf16.mxu0 %v12387_v3  ;;  %10875 = vmatprep.mubr.msk.f32.mxu1 %vm12388_vm0, %v12389_v6 }
0x264f   :  { %10905 = vmatprep.mubr.msk.f32.mxu0 %vm12388_vm0, %v12389_v6 }
0x2650   :  { %12011 = vmatpush3.bf16.msra.mxu1 %v12513_v15 }
0x2651   :  { %12029 = vmatpush3.bf16.msra.mxu0 %v12513_v15  ;;  %12012 = vmatprep.subr.bf16.mxu1 %v12387_v3 }
0x2652   :  { %12030 = vmatprep.subr.bf16.mxu0 %v12387_v3 }
0x2654   :  { %12014 = vmatpush3.bf16.msra.mxu1 %v12525_v18 }
0x2655   :  { %12032 = vmatpush3.bf16.msra.mxu0 %v12525_v18  ;;  %12015 = vmatprep.subr.bf16.mxu1 %v12387_v3 }
0x2656   :  { %12033 = vmatprep.subr.bf16.mxu0 %v12387_v3 }
0x2658   :  { %12017 = vmatpush3.bf16.msra.mxu1 %v12535_v21 }
0x2659   :  { %12035 = vmatpush3.bf16.msra.mxu0 %v12535_v21  ;;  %12036 = vmatprep.subr.bf16.mxu1 %v12387_v3 }
0x265a   :  { %12054 = vmatprep.subr.bf16.mxu0 %v12387_v3 }
0x271e   :  { %v6833_v23 = vpop.f32.mrb[88].mxu1 }
0x271f   :  { %v6834_v24 = vadd.f32 %v13414_v22, %v6833_v23  ;;  %v6982_v25 = vpop.f32.mrb[88].mxu0  ;;  %v10858_v26 = vpop.f32.mrb[89].mxu1 }
0x2720   :  { %v6983_v27 = vadd.f32 %v13414_v22, %v6982_v25  ;;  %v10888_v28 = vpop.f32.mrb[89].mxu0 }
0x2721   :  { %12313 = vtanh.f32 %v6834_v24 }
0x2722   :  { %12315 = vtanh.f32 %v6983_v27 }
0x272b   :  { %v12314_v29 = vpop.eup %12313 }
0x272c   :  { %v12316_v30 = vpop.eup %12315  ;;  %10876 = vmatmul.mubr.msk.f32.vlgmr.msra.gmra.mrb[90].mxu1 %vm171_vm2, %v12314_v29 }
0x272d   :  { %10906 = vmatmul.mubr.msk.f32.vlgmr.msra.gmra.mrb[90].mxu0 %vm171_vm2, %v12316_v30  ;;  %12038 = vmatpush3.bf16.msra.mxu1 %v12458_v4 }
0x272e   :  { %12056 = vmatpush3.bf16.msra.mxu0 %v12458_v4  ;;  %12039 = vmatprep.subr.bf16.mxu1 %v12387_v3 }
0x272f   :  { %12057 = vmatprep.subr.bf16.mxu0 %v12387_v3  ;;  %10916 = vmatprep.mubr.msk.f32.mxu1 %vm12388_vm0, %v12389_v6 }
0x2730   :  { %10946 = vmatprep.mubr.msk.f32.mxu0 %vm12388_vm0, %v12389_v6 }
0x2731   :  { %12041 = vmatpush3.bf16.msra.mxu1 %v12469_v7 }
0x2732   :  { %12059 = vmatpush3.bf16.msra.mxu0 %v12469_v7  ;;  %12042 = vmatprep.subr.bf16.mxu1 %v12387_v3 }
0x2733   :  { %12060 = vmatprep.subr.bf16.mxu0 %v12387_v3 }
0x27ff   :  { %v6907_v33 = vpop.f32.mrb[90].mxu1 }
0x2800   :  { %v6908_v56 = vadd.f32 %v13435_v54, %v6907_v33  ;;  %v7056_v39 = vpop.f32.mrb[90].mxu0  ;;  %v10877_v37 = vpop.f32.mrb[91].mxu1 }
0x2801   :  { %v7057_v40 = vadd.f32 %v13435_v54, %v7056_v39  ;;  %v10907_v41 = vpop.f32.mrb[91].mxu0 }
0x2802   :  { %v7060_v42 = vmul.f32 2.0, %v6908_v56  ;;  %v7065_v44 = vmul.f32 %v7064_v55, %v6908_v56 }
0x2803   :  { %v7062_v43 = vmul.f32 2.0, %v7057_v40  ;;  %v7214_v46 = vmul.f32 %v7064_v55, %v7057_v40 }
0x2804   :  { %v7066_v48 = vadd.f32 %v7065_v44, %v13484_v34  ;;  %v7061_v49 = vadd.f32 %v7060_v42, %v6759_v2 }
0x2805   :  { %v7215_v51 = vadd.f32 %v7214_v46, %v13487_v38  ;;  %v7063_v52 = vadd.f32 %v7062_v43, %v6761_v45 }
0x2806   :  { %10917 = vmatmul.mubr.msk.f32.vlgmr.msra.gmra.mrb[92].mxu1 %vm90_vm1, %v7066_v48 }
0x2807   :  { %10947 = vmatmul.mubr.msk.f32.vlgmr.msra.gmra.mrb[92].mxu0 %vm90_vm1, %v7215_v51  ;;  %12044 = vmatpush3.bf16.msra.mxu1 %v12491_v12 }
0x2808   :  { %12062 = vmatpush3.bf16.msra.mxu0 %v12491_v12  ;;  %12045 = vmatprep.subr.bf16.mxu1 %v12387_v3 }
0x2809   :  { %12063 = vmatprep.subr.bf16.mxu0 %v12387_v3  ;;  %10935 = vmatprep.mubr.msk.f32.mxu1 %vm12388_vm0, %v12389_v6 }
0x280a   :  { %10965 = vmatprep.mubr.msk.f32.mxu0 %vm12388_vm0, %v12389_v6 }
0x280b   :  { %12047 = vmatpush3.bf16.msra.mxu1 %v12513_v15 }
0x280c   :  { %12065 = vmatpush3.bf16.msra.mxu0 %v12513_v15  ;;  %12048 = vmatprep.subr.bf16.mxu1 %v12387_v3 }
0x280d   :  { %12066 = vmatprep.subr.bf16.mxu0 %v12387_v3 }
0x280f   :  { %12050 = vmatpush3.bf16.msra.mxu1 %v12525_v18 }
0x2810   :  { %12068 = vmatpush3.bf16.msra.mxu0 %v12525_v18  ;;  %12051 = vmatprep.subr.bf16.mxu1 %v12387_v3 }
0x2811   :  { %12069 = vmatprep.subr.bf16.mxu0 %v12387_v3 }
0x2813   :  { %12053 = vmatpush3.bf16.msra.mxu1 %v12535_v21 }
0x2814   :  { %12071 = vmatpush3.bf16.msra.mxu0 %v12535_v21  ;;  %12072 = vmatprep.subr.bf16.mxu1 %v12387_v3 }
0x2815   :  { %12090 = vmatprep.subr.bf16.mxu0 %v12387_v3 }
0x28d9   :  { %v7136_v47 = vpop.f32.mrb[92].mxu1 }
0x28da   :  { %v7137_v50 = vadd.f32 %v13414_v22, %v7136_v47  ;;  %v7285_v10 = vpop.f32.mrb[92].mxu0  ;;  %v10918_v11 = vpop.f32.mrb[93].mxu1 }
0x28db   :  { %v7286_v57 = vadd.f32 %v13414_v22, %v7285_v10  ;;  %v10948_v5 = vpop.f32.mrb[93].mxu0 }
0x28dc   :  { %12317 = vtanh.f32 %v7137_v50 }
0x28dd   :  { %12319 = vtanh.f32 %v7286_v57 }
0x28e6   :  { %v12318_v1 = vpop.eup %12317 }
0x28e7   :  { %v12320_v60 = vpop.eup %12319  ;;  %10936 = vmatmul.mubr.msk.f32.vlgmr.msra.gmra.mrb[94].mxu1 %vm171_vm2, %v12318_v1 }
0x28e8   :  { %10966 = vmatmul.mubr.msk.f32.vlgmr.msra.gmra.mrb[94].mxu0 %vm171_vm2, %v12320_v60  ;;  %12074 = vmatpush3.bf16.msra.mxu1 %v12458_v4 }
0x28e9   :  { %12092 = vmatpush3.bf16.msra.mxu0 %v12458_v4  ;;  %12075 = vmatprep.subr.bf16.mxu1 %v12387_v3 }
0x28ea   :  { %12093 = vmatprep.subr.bf16.mxu0 %v12387_v3  ;;  %10976 = vmatprep.mubr.msk.f32.mxu1 %vm12388_vm0, %v12389_v6 }
0x28eb   :  { %11006 = vmatprep.mubr.msk.f32.mxu0 %vm12388_vm0, %v12389_v6 }
0x28ec   :  { %12077 = vmatpush3.bf16.msra.mxu1 %v12469_v7 }
0x28ed   :  { %12095 = vmatpush3.bf16.msra.mxu0 %v12469_v7  ;;  %12078 = vmatprep.subr.bf16.mxu1 %v12387_v3 }
0x28ee   :  { %12096 = vmatprep.subr.bf16.mxu0 %v12387_v3 }
0x29ba   :  { %v7210_v61 = vpop.f32.mrb[94].mxu1 }
0x29bb   :  { %v7211_v62 = vadd.f32 %v13435_v54, %v7210_v61  ;;  %v7359_v63 = vpop.f32.mrb[94].mxu0  ;;  %v10937_v0 = vpop.f32.mrb[95].mxu1 }
0x29bc   :  { %v7360_v36 = vadd.f32 %v13435_v54, %v7359_v63  ;;  %v10967_v8 = vpop.f32.mrb[95].mxu0 }
0x29bd   :  { %v7363_v13 = vadd.f32 %v7211_v62, %v7061_v49 }
0x29be   :  { %v7367_v14 = vadd.f32 %v7360_v36, %v7063_v52 }
0x29bf   :  { %v7365_v9 = vmul.f32 %v7364_v35, %v7363_v13  ;;  %v8272_v13 = vstv %s8725_s30 }
0x29c0   :  { %v7368_v31 = vmul.f32 %v7367_v14, %v7364_v35 }
0x29c1   :  { %v13670_v16 = vadd.f32 %v7365_v9, %v13484_v34 }
0x29c2   :  { %v13673_v17 = vadd.f32 %v7368_v31, %v13487_v38 }
0x29c3   :  { %8581 = vrot.lane.b32.xlu0 %v13670_v16, %s12391_s28  ;;  %10977 = vmatmul.mubr.msk.f32.vlgmr.msra.gmra.mrb[96].mxu1 %vm90_vm1, %v13670_v16 }
0x29c4   :  { %11007 = vmatmul.mubr.msk.f32.vlgmr.msra.gmra.mrb[96].mxu0 %vm90_vm1, %v13673_v17  ;;  %8595 = vrot.lane.b32.xlu1 %v13673_v17, %s12391_s28  ;;  %s8726_s28 = sld [smem:[#allocation4 + $0x6]] }
0x29c5   :  { %12080 = vmatpush3.bf16.msra.mxu1 %v12491_v12  ;;  %12098 = vmatpush3.bf16.msra.mxu0 %v12491_v12 }
0x29c6   :  { %12081 = vmatprep.subr.bf16.mxu1 %v12387_v3  ;;  %12099 = vmatprep.subr.bf16.mxu0 %v12387_v3 }
0x29c7   :  { %10995 = vmatprep.mubr.msk.f32.mxu1 %vm12388_vm0, %v12389_v6  ;;  %11025 = vmatprep.mubr.msk.f32.mxu0 %vm12388_vm0, %v12389_v6 }
0x29c9   :  { %12083 = vmatpush3.bf16.msra.mxu1 %v12513_v15  ;;  %12101 = vmatpush3.bf16.msra.mxu0 %v12513_v15 }
0x29ca   :  { %12084 = vmatprep.subr.bf16.mxu1 %v12387_v3  ;;  %12102 = vmatprep.subr.bf16.mxu0 %v12387_v3  ;;  %v7667_v28 = vstv %s8726_s28 }
0x29cd   :  { %12086 = vmatpush3.bf16.msra.mxu1 %v12525_v18  ;;  %12104 = vmatpush3.bf16.msra.mxu0 %v12525_v18 }
0x29ce   :  { %12087 = vmatprep.subr.bf16.mxu1 %v12387_v3  ;;  %12105 = vmatprep.subr.bf16.mxu0 %v12387_v3 }
0x29d1   :  { %12089 = vmatpush3.bf16.msra.mxu1 %v12535_v21  ;;  %12107 = vmatpush3.bf16.msra.mxu0 %v12535_v21 }
0x29d2   :  { %12108 = vmatprep.subr.bf16.mxu1 %v12387_v3  ;;  %12126 = vmatprep.subr.bf16.mxu0 %v12387_v3 }
0x2a96   :  { %v7442_v34 = vpop.f32.mrb[96].mxu1 }
0x2a97   :  { %v7443_v38 = vadd.f32 %v13414_v22, %v7442_v34  ;;  %v7589_v19 = vpop.f32.mrb[96].mxu0  ;;  %v10978_v20 = vpop.f32.mrb[97].mxu1 }
0x2a98   :  { %v7590_v23 = vadd.f32 %v13414_v22, %v7589_v19  ;;  %v11008_v24 = vpop.f32.mrb[97].mxu0 }
0x2a99   :  { %12321 = vtanh.f32 %v7443_v38 }
0x2a9a   :  { %12323 = vtanh.f32 %v7590_v23 }
0x2aa3   :  { %v12322_v25 = vpop.eup %12321 }
0x2aa4   :  { %v12324_v26 = vpop.eup %12323  ;;  %10996 = vmatmul.mubr.msk.f32.vlgmr.msra.gmra.mrb[98].mxu1 %vm171_vm2, %v12322_v25 }
0x2aa5   :  { %11026 = vmatmul.mubr.msk.f32.vlgmr.msra.gmra.mrb[98].mxu0 %vm171_vm2, %v12324_v26  ;;  %12110 = vmatpush3.bf16.msra.mxu1 %v12458_v4 }
0x2aa6   :  { %12128 = vmatpush3.bf16.msra.mxu0 %v12458_v4  ;;  %12111 = vmatprep.subr.bf16.mxu1 %v12387_v3 }
0x2aa7   :  { %12129 = vmatprep.subr.bf16.mxu0 %v12387_v3  ;;  %11036 = vmatprep.mubr.msk.f32.mxu1 %vm12388_vm0, %v12389_v6 }
0x2aa8   :  { %11066 = vmatprep.mubr.msk.f32.mxu0 %vm12388_vm0, %v12389_v6 }
0x2aa9   :  { %12113 = vmatpush3.bf16.msra.mxu1 %v12469_v7 }
0x2aaa   :  { %12131 = vmatpush3.bf16.msra.mxu0 %v12469_v7  ;;  %12114 = vmatprep.subr.bf16.mxu1 %v12387_v3 }
0x2aab   :  { %12132 = vmatprep.subr.bf16.mxu0 %v12387_v3 }
0x2b77   :  { %v7516_v27 = vpop.f32.mrb[98].mxu1 }
0x2b78   :  { %v13720_v29 = vadd.f32 %v13435_v54, %v7516_v27  ;;  %v7663_v30 = vpop.f32.mrb[98].mxu0  ;;  %v10997_v32 = vpop.f32.mrb[99].mxu1 }
0x2b79   :  { %v13723_v53 = vadd.f32 %v13435_v54, %v7663_v30  ;;  %v11027_v33 = vpop.f32.mrb[99].mxu0 }
0x2b7a   :  { %v7668_v55 = vmul.f32 %v7667_v28, %v13720_v29 }
0x2b7b   :  { %v7817_v56 = vmul.f32 %v7667_v28, %v13723_v53 }
0x2b7c   :  { %v7669_v39 = vadd.f32 %v7668_v55, %v13670_v16 }
0x2b7d   :  { %v7818_v37 = vadd.f32 %v7817_v56, %v13673_v17 }
0x2b7e   :  { %11037 = vmatmul.mubr.msk.f32.vlgmr.msra.gmra.mrb[100].mxu1 %vm90_vm1, %v7669_v39 }
0x2b7f   :  { %11067 = vmatmul.mubr.msk.f32.vlgmr.msra.gmra.mrb[100].mxu0 %vm90_vm1, %v7818_v37  ;;  %12116 = vmatpush3.bf16.msra.mxu1 %v12491_v12  ;;  %v8572_v37 = vstv %s8727_s11 }
0x2b80   :  { %12134 = vmatpush3.bf16.msra.mxu0 %v12491_v12  ;;  %12117 = vmatprep.subr.bf16.mxu1 %v12387_v3 }
0x2b81   :  { %12135 = vmatprep.subr.bf16.mxu0 %v12387_v3  ;;  %11055 = vmatprep.mubr.msk.f32.mxu1 %vm12388_vm0, %v12389_v6 }
0x2b82   :  { %11085 = vmatprep.mubr.msk.f32.mxu0 %vm12388_vm0, %v12389_v6 }
0x2b83   :  { %12119 = vmatpush3.bf16.msra.mxu1 %v12513_v15 }
0x2b84   :  { %12137 = vmatpush3.bf16.msra.mxu0 %v12513_v15  ;;  %12120 = vmatprep.subr.bf16.mxu1 %v12387_v3 }
0x2b85   :  { %12138 = vmatprep.subr.bf16.mxu0 %v12387_v3 }
0x2b87   :  { %12122 = vmatpush3.bf16.msra.mxu1 %v12525_v18 }
0x2b88   :  { %12140 = vmatpush3.bf16.msra.mxu0 %v12525_v18  ;;  %12123 = vmatprep.subr.bf16.mxu1 %v12387_v3 }
0x2b89   :  { %12141 = vmatprep.subr.bf16.mxu0 %v12387_v3 }
0x2b8b   :  { %12125 = vmatpush3.bf16.msra.mxu1 %v12535_v21 }
0x2b8c   :  { %12143 = vmatpush3.bf16.msra.mxu0 %v12535_v21  ;;  %12144 = vmatprep.subr.bf16.mxu1 %v12387_v3 }
0x2b8d   :  { %12162 = vmatprep.subr.bf16.mxu0 %v12387_v3 }
0x2c51   :  { %v7739_v40 = vpop.f32.mrb[100].mxu1 }
0x2c52   :  { %v7740_v41 = vadd.f32 %v13414_v22, %v7739_v40  ;;  %v7888_v2 = vpop.f32.mrb[100].mxu0  ;;  %v11038_v42 = vpop.f32.mrb[101].mxu1 }
0x2c53   :  { %v7889_v44 = vadd.f32 %v13414_v22, %v7888_v2  ;;  %v11068_v45 = vpop.f32.mrb[101].mxu0 }
0x2c54   :  { %12325 = vtanh.f32 %v7740_v41 }
0x2c55   :  { %12327 = vtanh.f32 %v7889_v44 }
0x2c5e   :  { %v12326_v43 = vpop.eup %12325 }
0x2c5f   :  { %v12328_v46 = vpop.eup %12327  ;;  %11056 = vmatmul.mubr.msk.f32.vlgmr.msra.gmra.mrb[102].mxu1 %vm171_vm2, %v12326_v43 }
0x2c60   :  { %11086 = vmatmul.mubr.msk.f32.vlgmr.msra.gmra.mrb[102].mxu0 %vm171_vm2, %v12328_v46  ;;  %12146 = vmatpush3.bf16.msra.mxu1 %v12458_v4 }
0x2c61   :  { %12164 = vmatpush3.bf16.msra.mxu0 %v12458_v4  ;;  %12147 = vmatprep.subr.bf16.mxu1 %v12387_v3 }
0x2c62   :  { %12165 = vmatprep.subr.bf16.mxu0 %v12387_v3  ;;  %11096 = vmatprep.mubr.msk.f32.mxu1 %vm12388_vm0, %v12389_v6 }
0x2c63   :  { %11126 = vmatprep.mubr.msk.f32.mxu0 %vm12388_vm0, %v12389_v6 }
0x2c64   :  { %12149 = vmatpush3.bf16.msra.mxu1 %v12469_v7 }
0x2c65   :  { %12167 = vmatpush3.bf16.msra.mxu0 %v12469_v7  ;;  %12150 = vmatprep.subr.bf16.mxu1 %v12387_v3 }
0x2c66   :  { %12168 = vmatprep.subr.bf16.mxu0 %v12387_v3 }
0x2d32   :  { %v7813_v48 = vpop.f32.mrb[102].mxu1 }
0x2d33   :  { %v7814_v49 = vadd.f32 %v13435_v54, %v7813_v48  ;;  %v7962_v51 = vpop.f32.mrb[102].mxu0  ;;  %v11057_v52 = vpop.f32.mrb[103].mxu1 }
0x2d34   :  { %v7963_v47 = vadd.f32 %v13435_v54, %v7962_v51  ;;  %v11087_v50 = vpop.f32.mrb[103].mxu0  ;;  %v8579_v48 = vpop.permute.xlu1 %8578 }
0x2d35   :  { %v7970_v10 = vmul.f32 %v7814_v49, %v7667_v28  ;;  %v8582_v51 = vpop.permute.xlu0 %8581 }
0x2d36   :  { %v8119_v11 = vmul.f32 %v7963_v47, %v7667_v28 }
0x2d37   :  { %v7971_v57 = vadd.f32 %v7970_v10, %v13670_v16 }
0x2d38   :  { %v8120_v5 = vadd.f32 %v8119_v11, %v13673_v17 }
0x2d39   :  { %11097 = vmatmul.mubr.msk.f32.vlgmr.msra.gmra.mrb[104].mxu1 %vm90_vm1, %v7971_v57 }
0x2d3a   :  { %11127 = vmatmul.mubr.msk.f32.vlgmr.msra.gmra.mrb[104].mxu0 %vm90_vm1, %v8120_v5  ;;  %12152 = vmatpush3.bf16.msra.mxu1 %v12491_v12 }
0x2d3b   :  { %12170 = vmatpush3.bf16.msra.mxu0 %v12491_v12  ;;  %12153 = vmatprep.subr.bf16.mxu1 %v12387_v3 }
0x2d3c   :  { %12171 = vmatprep.subr.bf16.mxu0 %v12387_v3  ;;  %11115 = vmatprep.mubr.msk.f32.mxu1 %vm12388_vm0, %v12389_v6 }
0x2d3d   :  { %11145 = vmatprep.mubr.msk.f32.mxu0 %vm12388_vm0, %v12389_v6 }
0x2d3e   :  { %12155 = vmatpush3.bf16.msra.mxu1 %v12513_v15 }
0x2d3f   :  { %12173 = vmatpush3.bf16.msra.mxu0 %v12513_v15  ;;  %12156 = vmatprep.subr.bf16.mxu1 %v12387_v3 }
0x2d40   :  { %12174 = vmatprep.subr.bf16.mxu0 %v12387_v3 }
0x2d42   :  { %12158 = vmatpush3.bf16.msra.mxu1 %v12525_v18 }
0x2d43   :  { %12176 = vmatpush3.bf16.msra.mxu0 %v12525_v18  ;;  %12159 = vmatprep.subr.bf16.mxu1 %v12387_v3 }
0x2d44   :  { %12177 = vmatprep.subr.bf16.mxu0 %v12387_v3 }
0x2d46   :  { %12161 = vmatpush3.bf16.msra.mxu1 %v12535_v21 }
0x2d47   :  { %12179 = vmatpush3.bf16.msra.mxu0 %v12535_v21  ;;  %12180 = vmatprep.subr.bf16.mxu1 %v12387_v3 }
0x2d48   :  { %12198 = vmatprep.subr.bf16.mxu0 %v12387_v3 }
0x2e0c   :  { %v8041_v1 = vpop.f32.mrb[104].mxu1 }
0x2e0d   :  { %v8042_v60 = vadd.f32 %v13414_v22, %v8041_v1  ;;  %v8190_v61 = vpop.f32.mrb[104].mxu0  ;;  %v11098_v62 = vpop.f32.mrb[105].mxu1 }
0x2e0e   :  { %v8191_v63 = vadd.f32 %v13414_v22, %v8190_v61  ;;  %v11128_v0 = vpop.f32.mrb[105].mxu0  ;;  %v7968_v22 = vmul.f32 2.0, %v7963_v47 }
0x2e0f   :  { %12329 = vtanh.f32 %v8042_v60 }
0x2e10   :  { %12331 = vtanh.f32 %v8191_v63  ;;  %v7969_v23 = vadd.f32 %v7968_v22, %v13723_v53 }
0x2e19   :  { %v12330_v35 = vpop.eup %12329 }
0x2e1a   :  { %v12332_v36 = vpop.eup %12331  ;;  %11116 = vmatmul.mubr.msk.f32.vlgmr.msra.gmra.mrb[106].mxu1 %vm171_vm2, %v12330_v35 }
0x2e1b   :  { %11146 = vmatmul.mubr.msk.f32.vlgmr.msra.gmra.mrb[106].mxu0 %vm171_vm2, %v12332_v36  ;;  %12182 = vmatpush3.bf16.msra.mxu1 %v12458_v4 }
0x2e1c   :  { %12200 = vmatpush3.bf16.msra.mxu0 %v12458_v4  ;;  %12183 = vmatprep.subr.bf16.mxu1 %v12387_v3  ;;  %v7966_v4 = vmul.f32 2.0, %v7814_v49  ;;  %v8593_v49 = vpop.permute.xlu1 %8592 }
0x2e1d   :  { %12201 = vmatprep.subr.bf16.mxu0 %v12387_v3  ;;  %11156 = vmatprep.mubr.msk.f32.mxu1 %vm12388_vm0, %v12389_v6  ;;  %v8602_v47 = vsel %vm90_vm1, %v13295_v59, %v8593_v49 }
0x2e1e   :  { %11186 = vmatprep.mubr.msk.f32.mxu0 %vm12388_vm0, %v12389_v6  ;;  %v7967_v19 = vadd.f32 %v7966_v4, %v13720_v29 }
0x2e1f   :  { %12185 = vmatpush3.bf16.msra.mxu1 %v12469_v7 }
0x2e20   :  { %12203 = vmatpush3.bf16.msra.mxu0 %v12469_v7  ;;  %12186 = vmatprep.subr.bf16.mxu1 %v12387_v3  ;;  %v8596_v52 = vpop.permute.xlu1 %8595 }
0x2e21   :  { %12204 = vmatprep.subr.bf16.mxu0 %v12387_v3 }
0x2eed   :  { %v8115_v8 = vpop.f32.mrb[106].mxu1 }
0x2eee   :  { %v8116_v14 = vadd.f32 %v13435_v54, %v8115_v8  ;;  %v8264_v9 = vpop.f32.mrb[106].mxu0  ;;  %v11117_v31 = vpop.f32.mrb[107].mxu1 }
0x2eef   :  { %v8265_v34 = vadd.f32 %v13435_v54, %v8264_v9  ;;  %v11147_v38 = vpop.f32.mrb[107].mxu0 }
0x2ef0   :  { %v8268_v20 = vmul.f32 2.0, %v8116_v14  ;;  %v8273_v7 = vmul.f32 %v8272_v13, %v8116_v14 }
0x2ef1   :  { %v8270_v24 = vmul.f32 2.0, %v8265_v34  ;;  %v8422_v25 = vmul.f32 %v8272_v13, %v8265_v34 }
0x2ef2   :  { %v8274_v26 = vadd.f32 %v8273_v7, %v13670_v16  ;;  %v8269_v27 = vadd.f32 %v8268_v20, %v7967_v19 }
0x2ef3   :  { %v8423_v28 = vadd.f32 %v8422_v25, %v13673_v17  ;;  %v8271_v30 = vadd.f32 %v8270_v24, %v7969_v23 }
0x2ef4   :  { %11157 = vmatmul.mubr.msk.f32.vlgmr.msra.gmra.mrb[108].mxu1 %vm90_vm1, %v8274_v26 }
0x2ef5   :  { %11187 = vmatmul.mubr.msk.f32.vlgmr.msra.gmra.mrb[108].mxu0 %vm90_vm1, %v8423_v28  ;;  %12188 = vmatpush3.bf16.msra.mxu1 %v12491_v12 }
0x2ef6   :  { %12206 = vmatpush3.bf16.msra.mxu0 %v12491_v12  ;;  %12189 = vmatprep.subr.bf16.mxu1 %v12387_v3  ;;  %v12343_v12 = vld [vmem:[%s13865_s5] ss:$0 sm:$0xff] }
0x2ef7   :  { %12207 = vmatprep.subr.bf16.mxu0 %v12387_v3  ;;  %11175 = vmatprep.mubr.msk.f32.mxu1 %vm12388_vm0, %v12389_v6 }
0x2ef8   :  { %11205 = vmatprep.mubr.msk.f32.mxu0 %vm12388_vm0, %v12389_v6 }
0x2ef9   :  { %12191 = vmatpush3.bf16.msra.mxu1 %v12513_v15 }
0x2efa   :  { %12209 = vmatpush3.bf16.msra.mxu0 %v12513_v15  ;;  %12192 = vmatprep.subr.bf16.mxu1 %v12387_v3 }
0x2efb   :  { %12210 = vmatprep.subr.bf16.mxu0 %v12387_v3 }
0x2efd   :  { %12194 = vmatpush3.bf16.msra.mxu1 %v12525_v18 }
0x2efe   :  { %12212 = vmatpush3.bf16.msra.mxu0 %v12525_v18  ;;  %12195 = vmatprep.subr.bf16.mxu1 %v12387_v3 }
0x2eff   :  { %12213 = vmatprep.subr.bf16.mxu0 %v12387_v3 }
0x2f01   :  { %12197 = vmatpush3.bf16.msra.mxu1 %v12535_v21 }
0x2f02   :  { %12215 = vmatpush3.bf16.msra.mxu0 %v12535_v21 }
0x2fc7   :  { %v8344_v6 = vpop.f32.mrb[108].mxu1 }
0x2fc8   :  { %v8345_v15 = vadd.f32 %v12343_v12, %v8344_v6  ;;  %v8493_v29 = vpop.f32.mrb[108].mxu0  ;;  %v11158_v32 = vpop.f32.mrb[109].mxu1 }
0x2fc9   :  { %v8494_v53 = vadd.f32 %v12343_v12, %v8493_v29  ;;  %v11188_v33 = vpop.f32.mrb[109].mxu0 }
0x2fca   :  { %12333 = vtanh.f32 %v8345_v15 }
0x2fcb   :  { %12335 = vtanh.f32 %v8494_v53 }
0x2fd4   :  { %v12334_v18 = vpop.eup %12333 }
0x2fd5   :  { %v12336_v55 = vpop.eup %12335  ;;  %11176 = vmatmul.mubr.msk.f32.vlgmr.msra.gmra.mrb[110].mxu1 %vm171_vm2, %v12334_v18 }
0x2fd6   :  { %11206 = vmatmul.mubr.msk.f32.vlgmr.msra.gmra.mrb[110].mxu0 %vm171_vm2, %v12336_v55 }
0x30a8   :  { %v8418_v3 = vpop.f32.mrb[110].mxu1 }
0x30a9   :  { %v8419_v21 = vadd.f32 %v13435_v54, %v8418_v3  ;;  %v8567_v56 = vpop.f32.mrb[110].mxu0  ;;  %v11177_v39 = vpop.f32.mrb[111].mxu1 }
0x30aa   :  { %v8568_v40 = vadd.f32 %v13435_v54, %v8567_v56  ;;  %v11207_v41 = vpop.f32.mrb[111].mxu0  ;;  %v8588_v54 = vsel %vm90_vm1, %v13292_v58, %v8579_v48 }
0x30ab   :  { %v8571_v2 = vadd.f32 %v8419_v21, %v8269_v27  ;;  %v8589_v50 = vsel %vm171_vm2, %v8588_v54, %v8582_v51 }
0x30ac   :  { %v8575_v42 = vadd.f32 %v8568_v40, %v8271_v30 }
0x30ad   :  { %v8573_v44 = vmul.f32 %v8572_v37, %v8571_v2 }
0x30ae   :  { %v8576_v45 = vmul.f32 %v8575_v42, %v8572_v37 }
0x30af   :  { %v8574_v43 = vadd.f32 %v8573_v44, %v13670_v16  ;;  %v8603_v16 = vsel %vm171_vm2, %v8602_v47, %v8596_v52 }
0x30b0   :  { %v8577_v46 = vadd.f32 %v8576_v45, %v13673_v17 }
0x30b1   :  { %8585 = vrot.lane.b32.xlu0 %v8574_v43, %s12392_s1 }
0x30b2   :  { %8599 = vrot.lane.b32.xlu1 %v8577_v46, %s12392_s1 }
0x3123   :  { %v8586_v10 = vpop.permute.xlu0 %8585 }
0x3124   :  { %v8600_v17 = vpop.permute.xlu1 %8599  ;;  %v8590_v11 = vsel %vm3731_vm3, %v8589_v50, %v8586_v10 }
0x3125   :  { %v8604_v57 = vsel %vm3731_vm3, %v8603_v16, %v8600_v17  ;;  %8591 = vst [vmem:[%s13868_s8 + $0x8] sm:$0xff] %v8590_v11 }
0x3126   :  { %8605 = vst [vmem:[%s13868_s8 + $0x18] sm:$0xff] %v8604_v57 }
0x3127   :  { %8610 = vsyncpa [#allocation3], 1 }
0x3128   :  { %8611 = vsyncpa [#allocation5], 1 }

</bundles_post_ra>
